<compile_context>
chip_gen: v5e
topology: v5e:2x2
jax: 0.10.0
libtpu: 0.0.40
codegen_flags: <defaults>
</compile_context>

<pallas_src>
import functools

import jax
import jax.numpy as jnp
from jax.experimental import pallas as pl
from jax.experimental.pallas import tpu as pltpu

LANE = 128
TILE_ROWS = 8192           # 8192 x 128 f32 = 4 MiB per block (per operand)
MIN_GRID_STEPS = 4         # >= 2 pipelined blocks per TensorCore on v7x megacore
SMALL_N_FALLBACK = 32768   # below this, a fused XLA elementwise is strictly faster


def _sublane_multiple(dtype) -> int:
    """Native packed-sublane granularity: 8 for 32-bit, 16 for 16-bit, 32 for 8-bit."""
    itemsize = jnp.dtype(dtype).itemsize
    return 8 * max(1, 4 // itemsize)


def _round_up(a: int, m: int) -> int:
    return ((a + m - 1) // m) * m


def _swish_static_kernel(x_ref, o_ref, *, beta: float):
    """Swish with a compile-time-constant beta (beta == 1.0 folds the multiply away)."""
    x = x_ref[...].astype(jnp.float32)
    z = x if beta == 1.0 else jnp.float32(beta) * x
    sig = 1.0 / (1.0 + jnp.exp(-z))          # exact sigmoid: EUP exp + exact divide
    o_ref[...] = (x * sig).astype(o_ref.dtype)


def _swish_smem_beta_kernel(beta_ref, x_ref, o_ref):
    """Swish with a runtime scalar beta held in SMEM (learnable parameter)."""
    beta = beta_ref[0]
    x = x_ref[...].astype(jnp.float32)
    z = beta * x
    sig = 1.0 / (1.0 + jnp.exp(-z))
    o_ref[...] = (x * sig).astype(o_ref.dtype)


def swish(x: jax.Array, beta=1.0) -> jax.Array:
    """Elementwise Swish: x * sigmoid(beta * x), any shape / float dtype."""
    orig_shape = x.shape
    dtype = x.dtype
    n = x.size
    beta_is_static = isinstance(beta, (int, float))

    # Tiny inputs: pallas_call fixed overhead + reshape plumbing dominates -> fuse in XLA.
    if n == 0 or n < SMALL_N_FALLBACK:
        xf = x.astype(jnp.float32)
        b = float(beta) if beta_is_static else jnp.asarray(beta, jnp.float32).reshape(())
        return (xf * jax.nn.sigmoid(b * xf)).astype(dtype)

    flat = x.reshape(-1)

    # Only the <128-element residual needs padding; aligned case (n % 128 == 0) is a
    # zero-copy reshape into a lane-dense [rows, 128] slab.
    padded = _round_up(n, LANE)
    needs_pad = padded != n
    if needs_pad:
        flat = jnp.pad(flat, (0, padded - n))

    x2d = flat.reshape(-1, LANE)
    rows = x2d.shape[0]

    sub = _sublane_multiple(dtype)
    if rows <= MIN_GRID_STEPS * TILE_ROWS:
        # Keep >= MIN_GRID_STEPS grid steps so v7x's two TCs each overlap DMA/compute;
        # harmless on single-TC v5e/v6e. block_rows is a multiple of `sub` or == rows.
        block_rows = min(rows, max(sub, _round_up(pl.cdiv(rows, MIN_GRID_STEPS), sub)))
    else:
        block_rows = TILE_ROWS
    grid = (pl.cdiv(rows, block_rows),)

    x_spec = pl.BlockSpec((block_rows, LANE), lambda i: (i, 0))
    o_spec = pl.BlockSpec((block_rows, LANE), lambda i: (i, 0))
    cparams = pltpu.CompilerParams(
        dimension_semantics=("parallel",),
        # 4 MiB blocks x 2 operands x 2 buffers = 16 MiB; raise scoped VMEM so v5e
        # (16 MiB default) has headroom. No-op for v6e/v7x (32 MiB defaults).
        vmem_limit_bytes=32 * 1024 * 1024,
    )
    out_shape = jax.ShapeDtypeStruct((rows, LANE), dtype)

    if beta_is_static:
        kernel = functools.partial(_swish_static_kernel, beta=float(beta))
        out2d = pl.pallas_call(
            kernel,
            out_shape=out_shape,
            grid=grid,
            in_specs=[x_spec],
            out_specs=o_spec,
            compiler_params=cparams,
        )(x2d)
    else:
        beta_arr = jnp.asarray(beta, dtype=jnp.float32).reshape((1,))
        out2d = pl.pallas_call(
            _swish_smem_beta_kernel,
            out_shape=out_shape,
            grid=grid,
            in_specs=[
                pl.BlockSpec(memory_space=pltpu.MemorySpace.SMEM),  # scalar beta
                x_spec,
            ],
            out_specs=o_spec,
            compiler_params=cparams,
        )(beta_arr, x2d)

    out_flat = out2d.reshape(-1)
    if needs_pad:
        out_flat = out_flat[:n]
    return out_flat.reshape(orig_shape)


class SwishPallas:
    """Mirror of the PyTorch Swish module using the Pallas kernel (forward only)."""
    # TODO(synk): autograd for the learnable beta (requires_grad) is out of scope here.

    def __init__(self, beta: bool = False):
        if beta:
            self.weight = jnp.array([1.0], dtype=jnp.float32)  # learnable scalar param
        else:
            self.weight = 1.0

    def __call__(self, x: jax.Array) -> jax.Array:
        return swish(x, self.weight)


if __name__ == "__main__":
    key = jax.random.PRNGKey(0)
    k1, k2, k3, k4 = jax.random.split(key, 4)

    act = SwishPallas(beta=False)

    # Small NCHW input consistent with the module (batch=2, channels=4, 16x16):
    # takes the tiny-input fused-XLA fallback path.
    x_small = jax.random.normal(k1, (2, 4, 16, 16), dtype=jnp.float32)
    y_small = jax.block_until_ready(act(x_small))
    ref_small = x_small * jax.nn.sigmoid(1.0 * x_small)
    assert y_small.shape == x_small.shape and y_small.dtype == x_small.dtype
    assert jnp.max(jnp.abs(y_small - ref_small)) < 5e-3

    # Larger aligned input: exercises the Pallas kernel with grid > 1 (4 blocks).
    x_big = jax.random.normal(k2, (2, 16, 128, 128), dtype=jnp.float32)
    y_big = jax.block_until_ready(act(x_big))
    ref_big = x_big * jax.nn.sigmoid(x_big)
    assert jnp.max(jnp.abs(y_big - ref_big)) < 5e-3

    # beta=True branch (learnable scalar param init 1.0 -> SMEM kernel).
    act_b = SwishPallas(beta=True)
    y_big_b = jax.block_until_ready(act_b(x_big))
    assert jnp.max(jnp.abs(y_big_b - ref_big)) < 5e-3

    # Unaligned element count (n % 128 != 0): small pad + masked partial row block.
    x_u = jax.random.normal(k3, (2, 4, 4099), dtype=jnp.float32)
    y_u = jax.block_until_ready(act(x_u))
    ref_u = x_u * jax.nn.sigmoid(x_u)
    assert y_u.shape == x_u.shape
    assert jnp.max(jnp.abs(y_u - ref_u)) < 5e-3

    # bf16 input: dtype-aware sublane multiple (16) keeps packed tiles native.
    x_bf = jax.random.normal(k4, (8, 64, 128), dtype=jnp.bfloat16)
    y_bf = jax.block_until_ready(act(x_bf))
    ref_bf32 = x_bf.astype(jnp.float32) * jax.nn.sigmoid(x_bf.astype(jnp.float32))
    assert y_bf.dtype == jnp.bfloat16 and y_bf.shape == x_bf.shape
    assert jnp.max(jnp.abs(y_bf.astype(jnp.float32) - ref_bf32)) < 5e-2

    print("KERNEL_OK")
</pallas_src>

<mosaic_0001>
module attributes {stable_mosaic.version = 11 : i64} {
  func.func @_swish_static_kernel(%arg0: i32, %arg1: memref<1024x128xf32, #tpu.memory_space<vmem>>, %arg2: memref<1024x128xf32, #tpu.memory_space<vmem>>) attributes {dimension_semantics = [#tpu.dimension_semantics<parallel>], iteration_bounds = array<i64: 4>, scalar_prefetch = 0 : i64, scratch_operands = 0 : i64, tpu.core_type = #tpu.core_type<tc>, window_params = [{transform_indices = @transform_0, window_bounds = array<i64: 1024, 128>}, {transform_indices = @transform_1, window_bounds = array<i64: 1024, 128>}]} {
    %c0 = arith.constant 0 : index
    %c0_0 = arith.constant 0 : index
    %0 = vector.load %arg1[%c0, %c0_0] : memref<1024x128xf32, #tpu.memory_space<vmem>>, vector<1024x128xf32>
    %cst = arith.constant 0.000000e+00 : f32
    %1 = vector.broadcast %cst : f32 to vector<1024x128xf32>
    %2 = arith.subf %1, %0 : vector<1024x128xf32>
    %3 = math.exp %2 : vector<1024x128xf32>
    %cst_1 = arith.constant 1.000000e+00 : f32
    %4 = vector.broadcast %cst_1 : f32 to vector<1024x128xf32>
    %5 = arith.addf %4, %3 : vector<1024x128xf32>
    %cst_2 = arith.constant 1.000000e+00 : f32
    %6 = vector.broadcast %cst_2 : f32 to vector<1024x128xf32>
    %7 = arith.divf %6, %5 : vector<1024x128xf32>
    %8 = arith.mulf %0, %7 : vector<1024x128xf32>
    %c0_3 = arith.constant 0 : index
    %c0_4 = arith.constant 0 : index
    %9 = vector.load %arg2[%c0_3, %c0_4] : memref<1024x128xf32, #tpu.memory_space<vmem>>, vector<1024x128xf32>
    tpu.vector_store %arg2[%c0_3, %c0_4], %8 {strides = array<i32>} : memref<1024x128xf32, #tpu.memory_space<vmem>>, vector<1024x128xf32>,
    return
  }
  func.func @transform_0(%arg0: i32) -> (i32, i32) {
    %c0_i32 = arith.constant 0 : i32
    %c0_i32_0 = arith.constant 0 : i32
    return %arg0, %c0_i32 : i32, i32
  }
  func.func @transform_1(%arg0: i32) -> (i32, i32) {
    %c0_i32 = arith.constant 0 : i32
    %c0_i32_0 = arith.constant 0 : i32
    return %arg0, %c0_i32 : i32, i32
  }
}

</mosaic_0001>

<bundles_post_ra>
// kernel: tpu_custom_call.1
= control target key start
LH: loop header
LB: loop body
LE: loop exit
PB: predicated region body
PF: predicated region fallthrough
CT: control target
= control target key end

     0   :  { %6 = vsyncpa [#allocation3], 0  ;;  %s7384_s0 = inlined_call_operand.hbm [shape: f32[4096,128], index: 0, kind: input, shape index: {}]   ;;  %s7385_s1 = inlined_call_operand.hbm [shape: f32[4096,128], index: 1, kind: output, shape index: {}]  }
   0x1   :  { %8 = vsyncpa [#allocation3 + $0x1], 0 }
   0x2   :  { %9 = vsyncpa [#allocation4], 0 }
   0x3   :  { %11 = vsyncpa [#allocation4 + $0x1], 0  ;;  %s3734_s6 = smov 0   ;;  %s3736_s7 = smov 0  }
   0x4   :  { %s3738_s8 = smov 0   ;;  %s3740_s9 = smov 0  }
   0x5 LB: > { %s3755_s10 = sadd.s32 4294967295, %s3718_s9   ;;  %s3044_s11 = sadd.s32 4294967294, %s3718_s9   ;;  %s3718_s9 = sphi %s3740_s9, %s7876_s9   ;;  %s3714_s8 = sphi %s3738_s8, %s7875_s8   ;;  %s3710_s7 = sphi %s3736_s7, %s7874_s7   ;;  %s3706_s6 = sphi %s3734_s6, %s7873_s6  }
   0x6   : > { %s3759_s12 = sadd.s32 1, %s3718_s9   ;;  %s24_s13 = sadd.s32 1, %s3714_s8 }
   0x7   : > { %s21_s14 = ssub.s32 %s3718_s9, %s3759_s12  ;;  %p31_p0 = scmp.ne.s32.totalorder %s3714_s8, %s3710_s7 }
   0x8   : > { %p22_p1 = scmp.eq.s32.totalorder %s21_s14, 0  ;;  %p32_p2 = scmp.eq.s32.totalorder %s3718_s9, 0 }
   0x9   : > { %p37_p3 = scmp.ne.s32.totalorder %s3710_s7, %s3706_s6  ;;  %p38_p4 = scmp.eq.s32.totalorder %s3755_s10, 0 }
   0xa   : > { %s3771_s15 = scalar_select %p22_p1, %s3714_s8, %s24_s13  }
   0xb   : > { %p3773_p5 = por %p32_p2, %p31_p0  ;;  %p3777_p6 = por %p38_p4, %p37_p3 }
   0xc   : > { %p61_p7 = scmp.eq.s32.totalorder %s3755_s10, 3  ;;  %p67_p8 = scmp.eq.s32.totalorder %s3044_s11, 3 }
   0xd   : > { %p3072_p9 = scmp.lt.s32.totalorder %s3718_s9, 4  ;;  %s87_s20 = sand.u32 1, %s3714_s8  }
   0xe   : > { %p3783_p10 = por %p61_p7, %p31_p0  ;;  %p3787_p11 = por %p67_p8, %p37_p3 }
   0xf   : > { %s3058_s21 = sshll.u32 %s3718_s9, 10  ;;  %s3047_s22 = sshll.u32 %s87_s20, 10 }
  0x10   : > { %s96_s25 = scalar_lea.hbm %s7384_s0, %s3058_s21  ;;  %s91_s27 = scalar_lea.vmem [#allocation2], %s3047_s22 }
  0x11   : > { %s97_s26 = sshll.u32 %s96_s25, 4  ;;  %s99_s28 = sshll.u32 %s91_s27, 4  ;;  %s98_s26 = int_to_ptr.hbm [resolvable:$true] %s97_s26  ;;  %s100_s28 = int_to_ptr.vmem [resolvable:$true] %s99_s28 }
  0x12   : > { %p3798_p12 = pnand %p3072_p9, %p3773_p5  ;;  %p3050_p13 = scmp.ge.s32.totalorder %s3718_s9, 1 }
  0x13   : > { %p107_p0 = scmp.lt.s32.totalorder %s3718_s9, 5  ;;  %s88_s30 = scalar_lea.sflag [#allocation3], %s87_s20 }
  0x14   : > { %s3622_s2 = sshra.s32 %s98_s26, 4  ;;  %p3626_p2 = pneg %p3798_p12  ;;  %s3623_s2 = int_to_ptr.hbm [resolvable:$true] %s3622_s2 }
  0x15   : > { %s3624_s3 = scalar_lea.hbm %s3623_s2, 1024  ;;  %s3629_s11 = scalar_lea.hbm %s7384_s0, 4096 }
  0x16   : > { %p3625_p1 = scmp.ne.s32.totalorder %s3623_s2, %s3624_s3  ;;  %p3630_p5 = scmp.lt.s32.totalorder %s3623_s2, %s7384_s0 }
  0x17   : > { %p3631_p7 = scmp.lt.s32.totalorder %s3629_s11, %s3624_s3 }
  0x18   : > { %p3627_p3 = pnand %p3626_p2, %p3625_p1 }
  0x19   : > { %p3632_p8 = por %p3631_p7, %p3630_p5 }
  0x1a   : > { %p3628_p4 = pneg %p3627_p3 }
  0x1c   : > { %p3633_p9 = pnand %p3632_p8, %p3628_p4 }
  0x1e   : > { %3636 = shalt.err (!%p3633_p9)
}
  0x1f   : > { %s3720_s16 = smov 128   ;;  %s3721_s20 = smov 8  }
  0x20   : > { %3067 = dma.hbm_to_vmem [thread:$0]  (!%p3798_p12), %s98_s26, 16384, %s100_s28, %s88_s30, %s3720_s16, %s3720_s16, %s3721_s20  }
  0x21   : > { %p108_p1 = pnand %p3050_p13, %p107_p0 }
  0x22   : > { %s3819_s21 = sand.u32 (!%p108_p1), 1, %s3710_s7  }
  0x23   : > { %111 = sbr.rel (%p108_p1) target bundleno = 642 (0x282), region = 24  ;;  %s3051_s22 = sshll.u32 (!%p108_p1), %s3819_s21, 10 }
  0x24   : > { %s114_s23 = scalar_lea.sflag (!%p108_p1), [#allocation3], %s3819_s21  ;;  %s3825_s24 = scalar_lea.vmem (!%p108_p1), [#allocation2], %s3051_s22 }
  0x28   : > { %3697 = dma.done.wait (%p3777_p6), %s114_s23, 16384  }
  0x29   : > { %3699 = vsyncadd (%p3777_p6), %s114_s23, 4294950912  ;;  %v3832_v0 = vld [vmem:[%s3825_s24] sm:$0xff]  ;;  %v3835_v1 = vld [vmem:[%s3825_s24 + $0x8] sm:$0xff]  ;;  %s3999_s17 = scalar_lea.vmem [#allocation5], %s3051_s22  ;;  %s3059_s25 = sshll.u32 %s3755_s10, 10 }
  0x2a   : > { %v3838_v2 = vld [vmem:[%s3825_s24 + $0x10] sm:$0xff]  ;;  %v267_v3 = vsub.f32 0.0, %v3832_v0  ;;  %v268_v4 = vsub.f32 0.0, %v3835_v1  ;;  %v3844_v6 = vld [vmem:[%s3825_s24 + $0x18] sm:$0xff]  ;;  %v3847_v7 = vld [vmem:[%s3825_s24 + $0x20] sm:$0xff]  ;;  %s2967_s28 = scalar_lea.hbm %s7385_s1, %s3059_s25  ;;  %s2968_s10 = sshll.u32 %s3999_s17, 4  ;;  %s2969_s10 = int_to_ptr.vmem [resolvable:$true] %s2968_s10 }
  0x2b   : > { %v269_v5 = vsub.f32 0.0, %v3838_v2  ;;  %v3850_v8 = vld [vmem:[%s3825_s24 + $0x28] sm:$0xff]  ;;  %v270_v9 = vsub.f32 0.0, %v3844_v6  ;;  %v271_v10 = vsub.f32 0.0, %v3847_v7  ;;  %v3856_v12 = vld [vmem:[%s3825_s24 + $0x30] sm:$0xff]  ;;  %v3859_v13 = vld [vmem:[%s3825_s24 + $0x38] sm:$0xff] }
  0x2c   : > { %v272_v11 = vsub.f32 0.0, %v3850_v8  ;;  %v395_v14 = vmul.f32 1.442695, %v267_v3  ;;  %v397_v15 = vmul.f32 1.442695, %v268_v4  ;;  %v273_v19 = vsub.f32 0.0, %v3856_v12 }
  0x2d   : > { %v399_v16 = vmul.f32 1.442695, %v269_v5  ;;  %v401_v17 = vmul.f32 1.442695, %v270_v9  ;;  %v403_v18 = vmul.f32 1.442695, %v271_v10 }
  0x2e   : > { %3110 = vpow2.f32 %v395_v14  ;;  %v274_v20 = vsub.f32 0.0, %v3859_v13  ;;  %v405_v21 = vmul.f32 1.442695, %v272_v11  ;;  %v3864_v22 = vld [vmem:[%s3825_s24 + $0x40] sm:$0xff]  ;;  %v407_v23 = vmul.f32 1.442695, %v273_v19 }
  0x2f   : > { %3112 = vpow2.f32 %v397_v15  ;;  %v275_v25 = vsub.f32 0.0, %v3864_v22  ;;  %v3868_v26 = vld [vmem:[%s3825_s24 + $0x48] sm:$0xff]  ;;  %v3873_v30 = vld [vmem:[%s3825_s24 + $0x50] sm:$0xff]  ;;  %v3876_v31 = vld [vmem:[%s3825_s24 + $0x58] sm:$0xff]  ;;  %s2970_s29 = sshll.u32 %s2967_s28, 4  ;;  %s2956_s30 = scalar_lea.sflag [#allocation4], %s3819_s21  ;;  %s2971_s29 = int_to_ptr.hbm [resolvable:$true] %s2970_s29 }
  0x30   : > { %3114 = vpow2.f32 %v399_v16  ;;  %v409_v24 = vmul.f32 1.442695, %v274_v20  ;;  %v276_v35 = vsub.f32 0.0, %v3868_v26  ;;  %v277_v40 = vsub.f32 0.0, %v3873_v30  ;;  %s3666_s2 = sshra.s32 %s2971_s29, 4  ;;  %s3672_s11 = scalar_lea.hbm %s7385_s1, 4096  ;;  %s3667_s2 = int_to_ptr.hbm [resolvable:$true] %s3666_s2 }
  0x31   : > { %3116 = vpow2.f32 %v401_v17  ;;  %v411_v34 = vmul.f32 1.442695, %v275_v25  ;;  %v278_v41 = vsub.f32 0.0, %v3876_v31  ;;  %s3668_s3 = scalar_lea.hbm %s3667_s2, 1024  ;;  %p3673_p0 = scmp.lt.s32.totalorder %s3667_s2, %s7385_s1 }
  0x32   : > { %3118 = vpow2.f32 %v403_v18  ;;  %v3896_v48 = vmul.f32 1.442695, %v276_v35  ;;  %p3669_p6 = scmp.ne.s32.totalorder %s3667_s2, %s3668_s3  ;;  %p3674_p2 = scmp.lt.s32.totalorder %s3672_s11, %s3668_s3 }
  0x33   : > { %3120 = vpow2.f32 %v405_v21 }
  0x34   : > { %v3111_v27 = vpop.eup %3110  ;;  %3122 = vpow2.f32 %v407_v23  ;;  %p3670_p12 = pnand %p3669_p6, %p3783_p10  ;;  %p3675_p3 = por %p3674_p2, %p3673_p0 }
  0x35   : > { %v3113_v28 = vpop.eup %3112  ;;  %v3870_v29 = vadd.f32 1.0, %v3111_v27  ;;  %3124 = vpow2.f32 %v409_v24 }
  0x36   : > { %v3115_v32 = vpop.eup %3114  ;;  %v3878_v33 = vadd.f32 1.0, %v3113_v28  ;;  %v4053_v28 = vld [vmem:[%s3825_s24 + $0x68] sm:$0xff]  ;;  %p3671_p13 = pneg %p3670_p12 }
  0x37   : > { %v3117_v36 = vpop.eup %3116  ;;  %3126 = vrcp.f32 %v3870_v29  ;;  %v790_v37 = vand.u32 2147483648, %v3870_v29  ;;  %v788_v39 = vand.u32 2147483647, %v3870_v29  ;;  %v3889_v45 = vadd.f32 1.0, %v3115_v32 }
  0x38   : > { %v3119_v38 = vpop.eup %3118  ;;  %3128 = vrcp.f32 %v3878_v33  ;;  %v803_v43 = vand.u32 2147483647, %v3878_v33  ;;  %v805_v44 = vand.u32 2147483648, %v3878_v33  ;;  %v3891_v46 = vadd.f32 1.0, %v3117_v36  ;;  %v4060_v36 = vld [vmem:[%s3825_s24 + $0x70] sm:$0xff]  ;;  %p3676_p4 = pnand %p3675_p3, %p3671_p13 }
  0x39   : > { %v3121_v42 = vpop.eup %3120  ;;  %vm784_vm0 = vweird.f32 %v3870_v29  ;;  %v3894_v47 = vadd.f32 1.0, %v3119_v38  ;;  %3130 = vpow2.f32 %v411_v34  ;;  %v3898_v50 = vor.u32 1.1754944e-38, %v790_v37 }
  0x3a   : > { %v3123_v49 = vpop.eup %3122  ;;  %vm799_vm1 = vweird.f32 %v3878_v33  ;;  %3132 = vrcp.f32 %v3889_v45  ;;  %v820_v51 = vand.u32 2147483648, %v3889_v45  ;;  %vm3903_vm2 = vcmp.eq.f32.partialorder %v788_v39, 8.507059e+37 }
  0x3b   : > { %v3125_v52 = vpop.eup %3124  ;;  %v818_v54 = vand.u32 2147483647, %v3889_v45  ;;  %3134 = vrcp.f32 %v3891_v46  ;;  %v835_v55 = vand.u32 2147483648, %v3891_v46  ;;  %v3910_v56 = vadd.f32 1.0, %v3121_v42 }
  0x3c   : > { %vm3912_vm3 = vcmp.eq.f32.partialorder %v803_v43, 8.507059e+37  ;;  %v806_v59 = vor.u32 1.1754944e-38, %v805_v44  ;;  %vm814_vm4 = vweird.f32 %v3889_v45  ;;  %v833_v60 = vand.u32 2147483647, %v3891_v46 }
  0x3d   : > { %v3127_v57 = vpop.eup %3126  ;;  %3136 = vrcp.f32 %v3894_v47  ;;  %v3920_v63 = vor.u32 1.1754944e-38, %v820_v51  ;;  %vm829_vm5 = vweird.f32 %v3891_v46  ;;  %vm844_vm6 = vweird.f32 %v3894_v47 }
  0x3e   : > { %v3129_v61 = vpop.eup %3128  ;;  %v780_v62 = vmul.f32 %v3127_v57, %v3870_v29  ;;  %vm785_vm7 = vweird.f32 %v3127_v57  ;;  %v848_v4 = vand.u32 2147483647, %v3894_v47  ;;  %v850_v5 = vand.u32 2147483648, %v3894_v47 }
  0x3f   : > { %v795_v3 = vmul.f32 %v3129_v61, %v3878_v33  ;;  %v3131_v9 = vpop.eup %3130  ;;  %vm800_vm8 = vweird.f32 %v3129_v61  ;;  %vm3927_vm9 = vcmp.eq.f32.partialorder %v818_v54, 8.507059e+37  ;;  %v836_v14 = vor.u32 1.1754944e-38, %v835_v55  ;;  %vm3947_vm13 = vmor %vm784_vm0, %vm785_vm7 }
  0x40   : > { %v781_v10 = vsub.f32 1.0, %v780_v62  ;;  %3138 = vrcp.f32 %v3910_v56  ;;  %v3133_v15 = vpop.eup %3132  ;;  %vm3932_vm10 = vcmp.eq.f32.partialorder %v833_v60, 8.507059e+37  ;;  %v863_v18 = vand.u32 2147483647, %v3910_v56  ;;  %vm3955_vm11 = vmor %vm799_vm1, %vm800_vm8 }
  0x41   : > { %v796_v16 = vsub.f32 1.0, %v795_v3  ;;  %v865_v19 = vand.u32 2147483648, %v3910_v56  ;;  %v3135_v20 = vpop.eup %3134  ;;  %v810_v23 = vmul.f32 %v3133_v15, %v3889_v45  ;;  %vm3940_vm12 = vcmp.eq.f32.partialorder %v848_v4, 8.507059e+37 }
  0x42   : > { %v782_v21 = vmul.f32 %v3127_v57, %v781_v10  ;;  %v851_v25 = vor.u32 1.1754944e-38, %v850_v5  ;;  %vm815_vm14 = vweird.f32 %v3133_v15  ;;  %v825_v34 = vmul.f32 %v3135_v20, %v3891_v46 }
  0x43   : > { %v3137_v27 = vpop.eup %3136  ;;  %v797_v32 = vmul.f32 %v3129_v61, %v796_v16  ;;  %vm830_vm15 = vweird.f32 %v3135_v20  ;;  %v811_v37 = vsub.f32 1.0, %v810_v23  ;;  %v866_v38 = vor.u32 1.1754944e-38, %v865_v19  ;;  %vm3974_vm1 = vmor %vm814_vm4, %vm815_vm14 }
  0x44   : > { %v783_v35 = vadd.f32 %v3127_v57, %v782_v21  ;;  %v840_v29 = vmul.f32 %v3137_v27, %v3894_v47  ;;  %v826_v42 = vsub.f32 1.0, %v825_v34  ;;  %vm845_vm0 = vweird.f32 %v3137_v27 }
  0x45   : > { %v798_v39 = vadd.f32 %v3129_v61, %v797_v32  ;;  %v3960_v43 = vadd.f32 1.0, %v3123_v49  ;;  %v812_v54 = vmul.f32 %v3133_v15, %v811_v37  ;;  %v3964_v33 = vadd.f32 1.0, %v3125_v52  ;;  %vm3993_vm4 = vmor %vm844_vm6, %vm845_vm0  ;;  %v4063_v37 = vld [vmem:[%s3825_s24 + $0x78] sm:$0xff] }
  0x46   : > { %v3139_v44 = vpop.eup %3138  ;;  %v787_v51 = vsel %vm3947_vm13, %v3127_v57, %v783_v35  ;;  %v841_v55 = vsub.f32 1.0, %v840_v29  ;;  %v827_v57 = vmul.f32 %v3135_v20, %v826_v42  ;;  %v4005_v47 = vadd.f32 1.0, %v3131_v9 }
  0x47   : > { %v792_v60 = vsel %vm3903_vm2, %v3898_v50, %v787_v51  ;;  %v802_v62 = vsel %vm3955_vm11, %v3129_v61, %v798_v39  ;;  %v855_v3 = vmul.f32 %v3139_v44, %v3910_v56  ;;  %v813_v4 = vadd.f32 %v3133_v15, %v812_v54  ;;  %vm3985_vm2 = vmor %vm829_vm5, %vm830_vm15 }
  0x48   : > { %v2699_v52 = vmul.f32 %v792_v60, %v3832_v0  ;;  %v807_v53 = vsel %vm3912_vm3, %v806_v59, %v802_v62  ;;  %v842_v45 = vmul.f32 %v3137_v27, %v841_v55  ;;  %v828_v5 = vadd.f32 %v3135_v20, %v827_v57  ;;  %v4079_v57 = vld [vmem:[%s3825_s24 + $0x80] sm:$0xff] }
  0x49   : > { %v2700_v61 = vmul.f32 %v807_v53, %v3835_v1  ;;  %v856_v58 = vsub.f32 1.0, %v855_v3  ;;  %vm860_vm3 = vweird.f32 %v3139_v44  ;;  %v817_v1 = vsel %vm3974_vm1, %v3133_v15, %v813_v4 }
  0x4a   : > { %2827 = vst [vmem:[%s3999_s17] sm:$0xff] %v2699_v52  ;;  %v843_v46 = vadd.f32 %v3137_v27, %v842_v45  ;;  %3140 = vrcp.f32 %v3960_v43  ;;  %v822_v59 = vsel %vm3927_vm9, %v3920_v63, %v817_v1  ;;  %v832_v10 = vsel %vm3985_vm2, %v3135_v20, %v828_v5  ;;  %v4028_v20 = vld [vmem:[%s3825_s24 + $0x60] sm:$0xff] }
  0x4b   : > { %2828 = vst [vmem:[%s3999_s17 + $0x8] sm:$0xff] %v2700_v61  ;;  %v857_v16 = vmul.f32 %v3139_v44, %v856_v58  ;;  %v878_v19 = vand.u32 2147483647, %v3960_v43  ;;  %v2701_v15 = vmul.f32 %v822_v59, %v3838_v2  ;;  %v837_v21 = vsel %vm3932_vm10, %v836_v14, %v832_v10 }
  0x4c   : > { %v847_v9 = vsel %vm3993_vm4, %v3137_v27, %v843_v46  ;;  %vm7411_vm5 = vweird.f32 %v3910_v56  ;;  %v880_v11 = vand.u32 2147483648, %v3960_v43  ;;  %v2702_v2 = vmul.f32 %v837_v21, %v3844_v6 }
  0x4d   : > { %vm4022_vm6 = vmor %vm7411_vm5, %vm860_vm3  ;;  %v852_v14 = vsel %vm3940_vm12, %v851_v25, %v847_v9  ;;  %v858_v17 = vadd.f32 %v3139_v44, %v857_v16  ;;  %vm864_vm7 = vcmp.eq.f32.partialorder %v863_v18, 8.507059e+37  ;;  %2829 = vst [vmem:[%s3999_s17 + $0x10] sm:$0xff] %v2701_v15  ;;  %3142 = vrcp.f32 %v3964_v33 }
  0x4e   : > { %v2703_v56 = vmul.f32 %v852_v14, %v3847_v7  ;;  %v415_v23 = vmul.f32 1.442695, %v277_v40  ;;  %v417_v27 = vmul.f32 1.442695, %v278_v41  ;;  %2830 = vst [vmem:[%s3999_s17 + $0x18] sm:$0xff] %v2702_v2  ;;  %vm874_vm8 = vweird.f32 %v3960_v43  ;;  %v4115_v2 = vld [vmem:[%s3825_s24 + $0x88] sm:$0xff] }
  0x4f   : > { %v862_v6 = vsel %vm4022_vm6, %v3139_v44, %v858_v17  ;;  %3144 = vrcp.f32 %v4005_v47  ;;  %v279_v7 = vsub.f32 0.0, %v4028_v20  ;;  %vm4047_vm9 = vcmp.eq.f32.partialorder %v878_v19, 8.507059e+37 }
  0x50   : > { %v3141_v18 = vpop.eup %3140  ;;  %2831 = vst [vmem:[%s3999_s17 + $0x20] sm:$0xff] %v2703_v56  ;;  %v867_v24 = vsel %vm864_vm7, %v866_v38, %v862_v6  ;;  %v881_v41 = vor.u32 1.1754944e-38, %v880_v11  ;;  %v893_v25 = vand.u32 2147483647, %v3964_v33  ;;  %vm889_vm10 = vweird.f32 %v3964_v33  ;;  %v4124_v56 = vld [vmem:[%s3825_s24 + $0x90] sm:$0xff] }
  0x51   : > { %v2704_v32 = vmul.f32 %v867_v24, %v3850_v8  ;;  %v870_v34 = vmul.f32 %v3141_v18, %v3960_v43  ;;  %v895_v35 = vand.u32 2147483648, %v3964_v33  ;;  %vm875_vm11 = vweird.f32 %v3141_v18 }
  0x52   : > { %vm904_vm12 = vweird.f32 %v4005_v47  ;;  %v908_v29 = vand.u32 2147483647, %v4005_v47  ;;  %3146 = vpow2.f32 %v3896_v48  ;;  %v419_v38 = vmul.f32 1.442695, %v279_v7  ;;  %vm4084_vm14 = vmor %vm874_vm8, %vm875_vm11 }
  0x53   : > { %2832 = vst [vmem:[%s3999_s17 + $0x28] sm:$0xff] %v2704_v32  ;;  %v871_v8 = vsub.f32 1.0, %v870_v34  ;;  %3148 = vpow2.f32 %v415_v23  ;;  %v280_v39 = vsub.f32 0.0, %v4053_v28  ;;  %v3143_v42 = vpop.eup %3142  ;;  %vm4070_vm13 = vcmp.eq.f32.partialorder %v893_v25, 8.507059e+37 }
  0x54   : > { %v910_v51 = vand.u32 2147483648, %v4005_v47  ;;  %v281_v54 = vsub.f32 0.0, %v4060_v36  ;;  %v282_v55 = vsub.f32 0.0, %v4063_v37  ;;  %v885_v62 = vmul.f32 %v3143_v42, %v3964_v33 }
  0x55   : > { %v3145_v60 = vpop.eup %3144  ;;  %v872_v48 = vmul.f32 %v3141_v18, %v871_v8  ;;  %v896_v49 = vor.u32 1.1754944e-38, %v895_v35  ;;  %3150 = vpow2.f32 %v417_v27  ;;  %vm890_vm15 = vweird.f32 %v3143_v42 }
  0x56   : > { %v900_v52 = vmul.f32 %v3145_v60, %v4005_v47  ;;  %v421_v53 = vmul.f32 1.442695, %v280_v39  ;;  %v423_v4 = vmul.f32 1.442695, %v281_v54  ;;  %v886_v45 = vsub.f32 1.0, %v885_v62  ;;  %vm4099_vm1 = vmor %vm889_vm10, %vm890_vm15 }
  0x57   : > { %v873_v50 = vadd.f32 %v3141_v18, %v872_v48  ;;  %3152 = vpow2.f32 %v419_v38  ;;  %v425_v61 = vmul.f32 1.442695, %v282_v55  ;;  %vm905_vm0 = vweird.f32 %v3145_v60 }
  0x58   : > { %v3147_v5 = vpop.eup %3146  ;;  %v901_v0 = vsub.f32 1.0, %v900_v52  ;;  %3154 = vpow2.f32 %v421_v53  ;;  %v283_v58 = vsub.f32 0.0, %v4079_v57  ;;  %v887_v46 = vmul.f32 %v3143_v42, %v886_v45  ;;  %vm4109_vm2 = vmor %vm904_vm12, %vm905_vm0 }
  0x59   : > { %v3149_v43 = vpop.eup %3148  ;;  %v877_v1 = vsel %vm4084_vm14, %v3141_v18, %v873_v50  ;;  %v4092_v59 = vadd.f32 1.0, %v3147_v5  ;;  %3156 = vpow2.f32 %v423_v4  ;;  %v911_v33 = vor.u32 1.1754944e-38, %v910_v51 }
  0x5a   : > { %v882_v10 = vsel %vm4047_vm9, %v881_v41, %v877_v1  ;;  %v902_v19 = vmul.f32 %v3145_v60, %v901_v0  ;;  %v4103_v15 = vadd.f32 1.0, %v3149_v43  ;;  %3158 = vpow2.f32 %v425_v61 }
  0x5b   : > { %v3151_v21 = vpop.eup %3150  ;;  %v2705_v9 = vmul.f32 %v882_v10, %v3856_v12  ;;  %v888_v63 = vadd.f32 %v3143_v42, %v887_v46  ;;  %3160 = vrcp.f32 %v4092_v59  ;;  %vm4117_vm4 = vcmp.eq.f32.partialorder %v908_v29, 8.507059e+37 }
  0x5c   : > { %v903_v14 = vadd.f32 %v3145_v60, %v902_v19  ;;  %v923_v12 = vand.u32 2147483647, %v4092_v59  ;;  %3162 = vrcp.f32 %v4103_v15  ;;  %v925_v27 = vand.u32 2147483648, %v4092_v59 }
  0x5d   : > { %v3153_v47 = vpop.eup %3152  ;;  %2833 = vst [vmem:[%s3999_s17 + $0x30] sm:$0xff] %v2705_v9  ;;  %v892_v23 = vsel %vm4099_vm1, %v3143_v42, %v888_v63  ;;  %v938_v6 = vand.u32 2147483647, %v4103_v15  ;;  %v940_v7 = vand.u32 2147483648, %v4103_v15  ;;  %v427_v41 = vmul.f32 1.442695, %v283_v58 }
  0x5e   : > { %v3155_v18 = vpop.eup %3154  ;;  %v897_v24 = vsel %vm4070_vm13, %v896_v49, %v892_v23  ;;  %v907_v40 = vsel %vm4109_vm2, %v3145_v60, %v903_v14  ;;  %v284_v25 = vsub.f32 0.0, %v4115_v2  ;;  %vm919_vm3 = vweird.f32 %v4092_v59 }
  0x5f   : > { %v3157_v32 = vpop.eup %3156  ;;  %v2706_v34 = vmul.f32 %v897_v24, %v3859_v13  ;;  %v912_v35 = vsel %vm4117_vm4, %v911_v33, %v907_v40  ;;  %v285_v29 = vsub.f32 0.0, %v4124_v56  ;;  %vm934_vm5 = vweird.f32 %v4103_v15 }
  0x60   : > { %v3159_v8 = vpop.eup %3158  ;;  %v2707_v38 = vmul.f32 %v912_v35, %v3864_v22  ;;  %v4144_v39 = vadd.f32 1.0, %v3151_v21  ;;  %v4146_v42 = vadd.f32 1.0, %v3153_v47  ;;  %vm4149_vm6 = vcmp.eq.f32.partialorder %v923_v12, 8.507059e+37 }
  0x61   : > { %v3161_v44 = vpop.eup %3160  ;;  %2834 = vst [vmem:[%s3999_s17 + $0x38] sm:$0xff] %v2706_v34  ;;  %v926_v51 = vor.u32 1.1754944e-38, %v925_v27  ;;  %vm4153_vm7 = vcmp.eq.f32.partialorder %v938_v6, 8.507059e+37  ;;  %v941_v55 = vor.u32 1.1754944e-38, %v940_v7  ;;  %v4160_v48 = vadd.f32 1.0, %v3155_v18  ;;  %v4308_v7 = vld [vmem:[%s3825_s24 + $0xb0] sm:$0xff] }
  0x62   : > { %v3163_v60 = vpop.eup %3162  ;;  %2835 = vst [vmem:[%s3999_s17 + $0x40] sm:$0xff] %v2707_v38  ;;  %v915_v22 = vmul.f32 %v3161_v44, %v4092_v59  ;;  %3164 = vrcp.f32 %v4144_v39  ;;  %v4162_v62 = vadd.f32 1.0, %v3157_v32  ;;  %v953_v3 = vand.u32 2147483647, %v4144_v39 }
  0x63   : > { %v930_v49 = vmul.f32 %v3163_v60, %v4103_v15  ;;  %v4166_v52 = vadd.f32 1.0, %v3159_v8  ;;  %3166 = vpow2.f32 %v427_v41  ;;  %vm920_vm8 = vweird.f32 %v3161_v44 }
  0x64   : > { %v916_v53 = vsub.f32 1.0, %v915_v22  ;;  %v955_v4 = vand.u32 2147483648, %v4144_v39  ;;  %3168 = vrcp.f32 %v4146_v42  ;;  %vm935_vm9 = vweird.f32 %v3163_v60  ;;  %vm4178_vm11 = vmor %vm919_vm3, %vm920_vm8 }
  0x65   : > { %v931_v50 = vsub.f32 1.0, %v930_v49  ;;  %v968_v45 = vand.u32 2147483647, %v4146_v42  ;;  %v970_v61 = vand.u32 2147483648, %v4146_v42  ;;  %vm949_vm10 = vweird.f32 %v4144_v39  ;;  %vm4190_vm14 = vmor %vm934_vm5, %vm935_vm9 }
  0x66   : > { %v917_v5 = vmul.f32 %v3161_v44, %v916_v53  ;;  %3170 = vrcp.f32 %v4160_v48  ;;  %v4174_v0 = vmul.f32 1.442695, %v284_v25  ;;  %vm4182_vm12 = vcmp.eq.f32.partialorder %v953_v3, 8.507059e+37 }
  0x67   : > { %v932_v43 = vmul.f32 %v3163_v60, %v931_v50  ;;  %vm964_vm13 = vweird.f32 %v4146_v42  ;;  %v983_v46 = vand.u32 2147483647, %v4160_v48  ;;  %v956_v59 = vor.u32 1.1754944e-38, %v955_v4 }
  0x68   : > { %v3165_v10 = vpop.eup %3164  ;;  %v918_v16 = vadd.f32 %v3161_v44, %v917_v5  ;;  %v985_v21 = vand.u32 2147483648, %v4160_v48  ;;  %3172 = vrcp.f32 %v4162_v62  ;;  %vm4197_vm15 = vcmp.eq.f32.partialorder %v968_v45, 8.507059e+37 }
  0x69   : > { %v3167_v9 = vpop.eup %3166  ;;  %v933_v63 = vadd.f32 %v3163_v60, %v932_v43  ;;  %v945_v11 = vmul.f32 %v3165_v10, %v4144_v39  ;;  %v971_v14 = vor.u32 1.1754944e-38, %v970_v61  ;;  %vm979_vm0 = vweird.f32 %v4160_v48 }
  0x6a   : > { %v3169_v15 = vpop.eup %3168  ;;  %v922_v17 = vsel %vm4178_vm11, %v3161_v44, %v918_v16  ;;  %vm950_vm1 = vweird.f32 %v3165_v10  ;;  %vm994_vm2 = vweird.f32 %v4162_v62  ;;  %v998_v12 = vand.u32 2147483647, %v4162_v62 }
  0x6b   : > { %v927_v47 = vsel %vm4149_vm6, %v926_v51, %v922_v17  ;;  %v937_v23 = vsel %vm4190_vm14, %v3163_v60, %v933_v63  ;;  %v946_v27 = vsub.f32 1.0, %v945_v11  ;;  %v960_v6 = vmul.f32 %v3169_v15, %v4146_v42  ;;  %vm4224_vm5 = vmor %vm949_vm10, %vm950_vm1  ;;  %v4290_v63 = vld [vmem:[%s3825_s24 + $0xa8] sm:$0xff] }
  0x6c   : > { %vm4211_vm4 = vcmp.eq.f32.partialorder %v983_v46, 8.507059e+37  ;;  %v3171_v18 = vpop.eup %3170  ;;  %v2708_v24 = vmul.f32 %v927_v47, %v3868_v26  ;;  %v942_v40 = vsel %vm4153_vm7, %v941_v55, %v937_v23  ;;  %vm965_vm3 = vweird.f32 %v3169_v15 }
  0x6d   : > { %v986_v41 = vor.u32 1.1754944e-38, %v985_v21  ;;  %v2709_v25 = vmul.f32 %v942_v40, %v3873_v30  ;;  %v947_v32 = vmul.f32 %v3165_v10, %v946_v27  ;;  %v961_v34 = vsub.f32 1.0, %v960_v6  ;;  %vm4236_vm7 = vmor %vm964_vm13, %vm965_vm3 }
  0x6e   : > { %v975_v35 = vmul.f32 %v3171_v18, %v4160_v48  ;;  %v3173_v8 = vpop.eup %3172  ;;  %2836 = vst [vmem:[%s3999_s17 + $0x48] sm:$0xff] %v2708_v24  ;;  %vm980_vm6 = vweird.f32 %v3171_v18  ;;  %v1000_v26 = vand.u32 2147483648, %v4162_v62  ;;  %3174 = vrcp.f32 %v4166_v52  ;;  %v4314_v24 = vld [vmem:[%s3825_s24 + $0xb8] sm:$0xff] }
  0x6f   : > { %v1013_v30 = vand.u32 2147483647, %v4166_v52  ;;  %2837 = vst [vmem:[%s3999_s17 + $0x50] sm:$0xff] %v2709_v25  ;;  %v948_v44 = vadd.f32 %v3165_v10, %v947_v32  ;;  %v962_v13 = vmul.f32 %v3169_v15, %v961_v34  ;;  %v990_v54 = vmul.f32 %v3173_v8, %v4162_v62  ;;  %vm4254_vm10 = vmor %vm979_vm0, %vm980_vm6  ;;  %v4284_v62 = vld [vmem:[%s3825_s24 + $0x98] sm:$0xff] }
  0x70   : > { %v976_v51 = vsub.f32 1.0, %v975_v35  ;;  %vm995_vm8 = vweird.f32 %v3173_v8  ;;  %vm4240_vm9 = vcmp.eq.f32.partialorder %v998_v12, 8.507059e+37  ;;  %v1015_v60 = vand.u32 2147483648, %v4166_v52 }
  0x71   : > { %v4245_v22 = vadd.f32 1.0, %v3167_v9  ;;  %v952_v49 = vsel %vm4224_vm5, %v3165_v10, %v948_v44  ;;  %v963_v3 = vadd.f32 %v3169_v15, %v962_v13  ;;  %v991_v4 = vsub.f32 1.0, %v990_v54  ;;  %vm4272_vm13 = vmor %vm994_vm2, %vm995_vm8  ;;  %v4287_v9 = vld [vmem:[%s3825_s24 + $0xa0] sm:$0xff]  ;;  %v4339_v54 = vld [vmem:[%s3825_s24 + $0xc8] sm:$0xff] }
  0x72   : > { %v977_v53 = vmul.f32 %v3171_v18, %v976_v51  ;;  %v957_v42 = vsel %vm4182_vm12, %v956_v59, %v952_v49  ;;  %v1001_v45 = vor.u32 1.1754944e-38, %v1000_v26  ;;  %vm1009_vm11 = vweird.f32 %v4166_v52  ;;  %v4328_v26 = vld [vmem:[%s3825_s24 + $0xc0] sm:$0xff] }
  0x73   : > { %3176 = vrcp.f32 %v4245_v22  ;;  %v2710_v61 = vmul.f32 %v957_v42, %v3876_v31  ;;  %v967_v5 = vsel %vm4236_vm7, %v3169_v15, %v963_v3  ;;  %v992_v48 = vmul.f32 %v3173_v8, %v991_v4 }
  0x74   : > { %v978_v58 = vadd.f32 %v3171_v18, %v977_v53  ;;  %vm4263_vm12 = vcmp.eq.f32.partialorder %v1013_v30, 8.507059e+37  ;;  %v3175_v1 = vpop.eup %3174  ;;  %v972_v46 = vsel %vm4197_vm15, %v971_v14, %v967_v5  ;;  %v1016_v10 = vor.u32 1.1754944e-38, %v1015_v60 }
  0x75   : > { %vm1024_vm14 = vweird.f32 %v4245_v22  ;;  %3178 = vpow2.f32 %v4174_v0  ;;  %2838 = vst [vmem:[%s3999_s17 + $0x58] sm:$0xff] %v2710_v61  ;;  %v2711_v16 = vmul.f32 %v972_v46, %v4028_v20  ;;  %v993_v59 = vadd.f32 %v3173_v8, %v992_v48 }
  0x76   : > { %v982_v19 = vsel %vm4254_vm10, %v3171_v18, %v978_v58  ;;  %v1005_v21 = vmul.f32 %v3175_v1, %v4166_v52  ;;  %vm1010_vm15 = vweird.f32 %v3175_v1  ;;  %v1028_v20 = vand.u32 2147483647, %v4245_v22  ;;  %v4361_v58 = vld [vmem:[%s3825_s24 + $0xd0] sm:$0xff] }
  0x77   : > { %v987_v0 = vsel %vm4211_vm4, %v986_v41, %v982_v19  ;;  %v1030_v11 = vand.u32 2147483648, %v4245_v22  ;;  %2839 = vst [vmem:[%s3999_s17 + $0x60] sm:$0xff] %v2711_v16  ;;  %v997_v14 = vsel %vm4272_vm13, %v3173_v8, %v993_v59  ;;  %v431_v17 = vmul.f32 1.442695, %v285_v29  ;;  %vm4319_vm1 = vmor %vm1009_vm11, %vm1010_vm15 }
  0x78   : > { %v2712_v33 = vmul.f32 %v987_v0, %v4053_v28  ;;  %v1006_v15 = vsub.f32 1.0, %v1005_v21  ;;  %v1002_v47 = vsel %vm4240_vm9, %v1001_v45, %v997_v14  ;;  %v286_v23 = vsub.f32 0.0, %v4284_v62 }
  0x79   : > { %v3177_v12 = vpop.eup %3176  ;;  %v287_v27 = vsub.f32 0.0, %v4287_v9  ;;  %v288_v6 = vsub.f32 0.0, %v4290_v63  ;;  %v2713_v28 = vmul.f32 %v1002_v47, %v4060_v36  ;;  %3180 = vpow2.f32 %v431_v17 }
  0x7a   : > { %2840 = vst [vmem:[%s3999_s17 + $0x68] sm:$0xff] %v2712_v33  ;;  %v1007_v18 = vmul.f32 %v3175_v1, %v1006_v15  ;;  %v1020_v29 = vmul.f32 %v3177_v12, %v4245_v22  ;;  %vm1025_vm0 = vweird.f32 %v3177_v12  ;;  %v433_v25 = vmul.f32 1.442695, %v286_v23 }
  0x7b   : > { %v3179_v40 = vpop.eup %3178  ;;  %v435_v32 = vmul.f32 1.442695, %v287_v27  ;;  %v437_v36 = vmul.f32 1.442695, %v288_v6  ;;  %2841 = vst [vmem:[%s3999_s17 + $0x70] sm:$0xff] %v2713_v28  ;;  %v289_v38 = vsub.f32 0.0, %v4308_v7  ;;  %vm4346_vm4 = vmor %vm1024_vm14, %vm1025_vm0 }
  0x7c   : > { %v1008_v34 = vadd.f32 %v3175_v1, %v1007_v18  ;;  %v1021_v35 = vsub.f32 1.0, %v1020_v29  ;;  %v4324_v8 = vadd.f32 1.0, %v3179_v40  ;;  %vm4330_vm2 = vcmp.eq.f32.partialorder %v1028_v20, 8.507059e+37 }
  0x7d   : > { %3182 = vpow2.f32 %v433_v25  ;;  %v290_v30 = vsub.f32 0.0, %v4314_v24  ;;  %v1031_v51 = vor.u32 1.1754944e-38, %v1030_v11  ;;  %v291_v49 = vsub.f32 0.0, %v4328_v26 }
  0x7e   : > { %v1012_v44 = vsel %vm4319_vm1, %v3175_v1, %v1008_v34  ;;  %v1022_v13 = vmul.f32 %v3177_v12, %v1021_v35  ;;  %3184 = vrcp.f32 %v4324_v8  ;;  %v1043_v60 = vand.u32 2147483647, %v4324_v8 }
  0x7f   : > { %v1017_v39 = vsel %vm4263_vm12, %v1016_v10, %v1012_v44  ;;  %3186 = vpow2.f32 %v435_v32  ;;  %v439_v4 = vmul.f32 1.442695, %v289_v38  ;;  %v3181_v42 = vpop.eup %3180  ;;  %v441_v50 = vmul.f32 1.442695, %v290_v30  ;;  %v4373_v10 = vld [vmem:[%s3825_s24 + $0xd8] sm:$0xff] }
  0x80   : > { %v2714_v3 = vmul.f32 %v1017_v39, %v4063_v37  ;;  %v1023_v53 = vadd.f32 %v3177_v12, %v1022_v13  ;;  %3188 = vpow2.f32 %v437_v36  ;;  %v292_v45 = vsub.f32 0.0, %v4339_v54 }
  0x81   : > { %v1045_v61 = vand.u32 2147483648, %v4324_v8  ;;  %v4358_v5 = vadd.f32 1.0, %v3181_v42  ;;  %3190 = vpow2.f32 %v439_v4  ;;  %vm1039_vm3 = vweird.f32 %v4324_v8 }
  0x82   : > { %2842 = vst [vmem:[%s3999_s17 + $0x78] sm:$0xff] %v2714_v3  ;;  %v1027_v22 = vsel %vm4346_vm4, %v3177_v12, %v1023_v53  ;;  %3192 = vpow2.f32 %v441_v50  ;;  %vm4367_vm5 = vcmp.eq.f32.partialorder %v1043_v60, 8.507059e+37  ;;  %v443_v31 = vmul.f32 1.442695, %v291_v49 }
  0x83   : > { %v3183_v37 = vpop.eup %3182  ;;  %v1032_v48 = vsel %vm4330_vm2, %v1031_v51, %v1027_v22  ;;  %3194 = vrcp.f32 %v4358_v5  ;;  %v1058_v59 = vand.u32 2147483647, %v4358_v5  ;;  %v293_v0 = vsub.f32 0.0, %v4361_v58 }
  0x84   : > { %v3185_v43 = vpop.eup %3184  ;;  %v2715_v1 = vmul.f32 %v1032_v48, %v4079_v57  ;;  %v4377_v21 = vadd.f32 1.0, %v3183_v37  ;;  %v1046_v57 = vor.u32 1.1754944e-38, %v1045_v61  ;;  %v1060_v11 = vand.u32 2147483648, %v4358_v5  ;;  %v4541_v61 = vld [vmem:[%s3825_s24 + $0xf8] sm:$0xff] }
  0x85   : > { %v3187_v16 = vpop.eup %3186  ;;  %v1035_v19 = vmul.f32 %v3185_v43, %v4324_v8  ;;  %v4384_v14 = vmul.f32 1.442695, %v292_v45  ;;  %vm1040_vm6 = vweird.f32 %v3185_v43  ;;  %v294_v17 = vsub.f32 0.0, %v4373_v10 }
  0x86   : > { %v3189_v20 = vpop.eup %3188  ;;  %2843 = vst [vmem:[%s3999_s17 + $0x80] sm:$0xff] %v2715_v1  ;;  %v4382_v33 = vadd.f32 1.0, %v3187_v16  ;;  %3196 = vrcp.f32 %v4377_v21  ;;  %vm1054_vm7 = vweird.f32 %v4358_v5  ;;  %v1073_v47 = vand.u32 2147483647, %v4377_v21  ;;  %vm4403_vm9 = vmor %vm1039_vm3, %vm1040_vm6 }
  0x87   : > { %v1036_v15 = vsub.f32 1.0, %v1035_v19  ;;  %v3191_v12 = vpop.eup %3190  ;;  %v1075_v23 = vand.u32 2147483648, %v4377_v21  ;;  %vm4392_vm8 = vcmp.eq.f32.partialorder %v1058_v59, 8.507059e+37  ;;  %v4396_v18 = vadd.f32 1.0, %v3189_v20 }
  0x88   : > { %3198 = vrcp.f32 %v4382_v33  ;;  %v3193_v27 = vpop.eup %3192  ;;  %v4398_v29 = vmul.f32 1.442695, %v293_v0  ;;  %v1061_v25 = vor.u32 1.1754944e-38, %v1060_v11  ;;  %vm1069_vm10 = vweird.f32 %v4377_v21 }
  0x89   : > { %v1037_v6 = vmul.f32 %v3185_v43, %v1036_v15  ;;  %3200 = vpow2.f32 %v443_v31  ;;  %v3195_v40 = vpop.eup %3194  ;;  %v1088_v32 = vand.u32 2147483647, %v4382_v33  ;;  %v4409_v36 = vadd.f32 1.0, %v3191_v12 }
  0x8a   : > { %v1050_v35 = vmul.f32 %v3195_v40, %v4358_v5  ;;  %vm1084_vm11 = vweird.f32 %v4382_v33  ;;  %v1090_v38 = vand.u32 2147483648, %v4382_v33  ;;  %vm1055_vm12 = vweird.f32 %v3195_v40 }
  0x8b   : > { %v1038_v34 = vadd.f32 %v3185_v43, %v1037_v6  ;;  %vm4414_vm13 = vcmp.eq.f32.partialorder %v1073_v47, 8.507059e+37  ;;  %v1076_v52 = vor.u32 1.1754944e-38, %v1075_v23  ;;  %3202 = vrcp.f32 %v4396_v18  ;;  %vm4438_vm15 = vmor %vm1054_vm7, %vm1055_vm12 }
  0x8c   : > { %v4419_v30 = vadd.f32 1.0, %v3193_v27  ;;  %v3197_v44 = vpop.eup %3196  ;;  %v1051_v51 = vsub.f32 1.0, %v1050_v35  ;;  %v1103_v39 = vand.u32 2147483647, %v4396_v18  ;;  %3204 = vrcp.f32 %v4409_v36 }
  0x8d   : > { %v1042_v13 = vsel %vm4403_vm9, %v3185_v43, %v1038_v34  ;;  %v1065_v49 = vmul.f32 %v3197_v44, %v4377_v21  ;;  %vm4428_vm14 = vcmp.eq.f32.partialorder %v1088_v32, 8.507059e+37  ;;  %v1105_v53 = vand.u32 2147483648, %v4396_v18 }
  0x8e   : > { %v3199_v55 = vpop.eup %3198  ;;  %v1047_v60 = vsel %vm4367_vm5, %v1046_v57, %v1042_v13  ;;  %v1052_v50 = vmul.f32 %v3195_v40, %v1051_v51  ;;  %v1091_v22 = vor.u32 1.1754944e-38, %v1090_v38  ;;  %vm1070_vm0 = vweird.f32 %v3197_v44 }
  0x8f   : > { %v3201_v4 = vpop.eup %3200  ;;  %v2716_v42 = vmul.f32 %v1047_v60, %v4115_v2  ;;  %v1080_v45 = vmul.f32 %v3199_v55, %v4382_v33  ;;  %v1066_v37 = vsub.f32 1.0, %v1065_v49  ;;  %vm1099_vm1 = vweird.f32 %v4396_v18  ;;  %vm4457_vm5 = vmor %vm1069_vm10, %vm1070_vm0 }
  0x90   : > { %v1118_v48 = vand.u32 2147483647, %v4409_v36  ;;  %v1053_v43 = vadd.f32 %v3195_v40, %v1052_v50  ;;  %vm1085_vm2 = vweird.f32 %v3199_v55  ;;  %vm4445_vm4 = vcmp.eq.f32.partialorder %v1103_v39, 8.507059e+37 }
  0x91   : > { %2844 = vst [vmem:[%s3999_s17 + $0x88] sm:$0xff] %v2716_v42  ;;  %v1081_v2 = vsub.f32 1.0, %v1080_v45  ;;  %3206 = vrcp.f32 %v4419_v30  ;;  %v3203_v5 = vpop.eup %3202  ;;  %v1067_v46 = vmul.f32 %v3197_v44, %v1066_v37  ;;  %v1106_v31 = vor.u32 1.1754944e-38, %v1105_v53  ;;  %vm4471_vm7 = vmor %vm1084_vm11, %vm1085_vm2  ;;  %v4525_v42 = vld [vmem:[%s3825_s24 + $0xf0] sm:$0xff] }
  0x92   : > { %vm1114_vm3 = vweird.f32 %v4409_v36  ;;  %v1120_v16 = vand.u32 2147483648, %v4409_v36  ;;  %v3205_v19 = vpop.eup %3204  ;;  %v1057_v59 = vsel %vm4438_vm15, %v3195_v40, %v1053_v43  ;;  %v1095_v57 = vmul.f32 %v3203_v5, %v4396_v18 }
  0x93   : > { %v1082_v20 = vmul.f32 %v3199_v55, %v1081_v2  ;;  %vm4462_vm6 = vcmp.eq.f32.partialorder %v1118_v48, 8.507059e+37  ;;  %v1062_v15 = vsel %vm4392_vm8, %v1061_v25, %v1057_v59  ;;  %v1068_v12 = vadd.f32 %v3197_v44, %v1067_v46 }
  0x94   : > { %v1110_v47 = vmul.f32 %v3205_v19, %v4409_v36  ;;  %vm1129_vm9 = vweird.f32 %v4419_v30  ;;  %v2717_v23 = vmul.f32 %v1062_v15, %v4124_v56  ;;  %v1096_v6 = vsub.f32 1.0, %v1095_v57  ;;  %v4514_v36 = vld [vmem:[%s3825_s24 + $0xe0] sm:$0xff] }
  0x95   : > { %v1083_v27 = vadd.f32 %v3199_v55, %v1082_v20  ;;  %vm1100_vm10 = vweird.f32 %v3203_v5  ;;  %v1072_v28 = vsel %vm4457_vm5, %v3197_v44, %v1068_v12  ;;  %vm1115_vm8 = vweird.f32 %v3205_v19 }
  0x96   : > { %v1111_v40 = vsub.f32 1.0, %v1110_v47  ;;  %v1133_v33 = vand.u32 2147483647, %v4419_v30  ;;  %2845 = vst [vmem:[%s3999_s17 + $0x90] sm:$0xff] %v2717_v23  ;;  %v1077_v25 = vsel %vm4414_vm13, %v1076_v52, %v1072_v28  ;;  %v1097_v56 = vmul.f32 %v3203_v5, %v1096_v6  ;;  %vm4493_vm11 = vmor %vm1099_vm1, %vm1100_vm10  ;;  %v4568_v23 = vld [vmem:[%s3825_s24 + $0x100] sm:$0xff]  ;;  %v4574_v28 = vld [vmem:[%s3825_s24 + $0x108] sm:$0xff] }
  0x97   : > { %v3207_v41 = vpop.eup %3206  ;;  %v1087_v32 = vsel %vm4471_vm7, %v3199_v55, %v1083_v27  ;;  %v4486_v34 = vadd.f32 1.0, %v3201_v4  ;;  %v2718_v35 = vmul.f32 %v1077_v25, %v4284_v62  ;;  %vm4502_vm12 = vmor %vm1114_vm3, %vm1115_vm8  ;;  %v1121_v18 = vor.u32 1.1754944e-38, %v1120_v16  ;;  %v4522_v4 = vld [vmem:[%s3825_s24 + $0xe8] sm:$0xff] }
  0x98   : > { %v1092_v38 = vsel %vm4428_vm14, %v1091_v22, %v1087_v32  ;;  %v1112_v8 = vmul.f32 %v3205_v19, %v1111_v40  ;;  %v1125_v52 = vmul.f32 %v3207_v41, %v4419_v30  ;;  %v1098_v51 = vadd.f32 %v3203_v5, %v1097_v56 }
  0x99   : > { %v2719_v13 = vmul.f32 %v1092_v38, %v4287_v9  ;;  %v1135_v39 = vand.u32 2147483648, %v4419_v30  ;;  %2846 = vst [vmem:[%s3999_s17 + $0x98] sm:$0xff] %v2718_v35  ;;  %vm1130_vm13 = vweird.f32 %v3207_v41  ;;  %3208 = vrcp.f32 %v4486_v34 }
  0x9a   : > { %v1113_v55 = vadd.f32 %v3205_v19, %v1112_v8  ;;  %v1126_v60 = vsub.f32 1.0, %v1125_v52  ;;  %v1102_v9 = vsel %vm4493_vm11, %v3203_v5, %v1098_v51  ;;  %3210 = vpow2.f32 %v4384_v14  ;;  %vm4532_vm14 = vmor %vm1129_vm9, %vm1130_vm13 }
  0x9b   : > { %2847 = vst [vmem:[%s3999_s17 + $0xa0] sm:$0xff] %v2719_v13  ;;  %v1107_v49 = vsel %vm4445_vm4, %v1106_v31, %v1102_v9  ;;  %3212 = vpow2.f32 %v4398_v29  ;;  %vm4536_vm15 = vcmp.eq.f32.partialorder %v1133_v33, 8.507059e+37  ;;  %v1136_v29 = vor.u32 1.1754944e-38, %v1135_v39  ;;  %v4603_v39 = vld [vmem:[%s3825_s24 + $0x110] sm:$0xff] }
  0x9c   : > { %v1117_v3 = vsel %vm4502_vm12, %v3205_v19, %v1113_v55  ;;  %v1127_v53 = vmul.f32 %v3207_v41, %v1126_v60  ;;  %v2720_v50 = vmul.f32 %v1107_v49, %v4290_v63  ;;  %v449_v48 = vmul.f32 1.442695, %v294_v17 }
  0x9d   : > { %v1122_v14 = vsel %vm4462_vm6, %v1121_v18, %v1117_v3  ;;  %v295_v43 = vsub.f32 0.0, %v4514_v36  ;;  %vm1144_vm0 = vweird.f32 %v4486_v34  ;;  %v1148_v30 = vand.u32 2147483647, %v4486_v34 }
  0x9e   : > { %v2721_v37 = vmul.f32 %v1122_v14, %v4308_v7  ;;  %v1128_v63 = vadd.f32 %v3207_v41, %v1127_v53  ;;  %2848 = vst [vmem:[%s3999_s17 + $0xa8] sm:$0xff] %v2720_v50  ;;  %v296_v2 = vsub.f32 0.0, %v4522_v4  ;;  %v297_v1 = vsub.f32 0.0, %v4525_v42 }
  0x9f   : > { %v3209_v5 = vpop.eup %3208  ;;  %3214 = vpow2.f32 %v449_v48  ;;  %v451_v46 = vmul.f32 1.442695, %v295_v43  ;;  %v298_v17 = vsub.f32 0.0, %v4541_v61  ;;  %v1150_v59 = vand.u32 2147483648, %v4486_v34 }
  0xa0   : > { %2849 = vst [vmem:[%s3999_s17 + $0xb0] sm:$0xff] %v2721_v37  ;;  %v1132_v7 = vsel %vm4532_vm14, %v3207_v41, %v1128_v63  ;;  %v3211_v31 = vpop.eup %3210  ;;  %v1140_v19 = vmul.f32 %v3209_v5, %v4486_v34  ;;  %v453_v0 = vmul.f32 1.442695, %v296_v2  ;;  %vm1145_vm1 = vweird.f32 %v3209_v5 }
  0xa1   : > { %v1137_v16 = vsel %vm4536_vm15, %v1136_v29, %v1132_v7  ;;  %v3213_v20 = vpop.eup %3212  ;;  %v4561_v11 = vadd.f32 1.0, %v3211_v31  ;;  %3216 = vpow2.f32 %v451_v46  ;;  %v455_v21 = vmul.f32 1.442695, %v297_v1  ;;  %vm4579_vm2 = vmor %vm1144_vm0, %vm1145_vm1 }
  0xa2   : > { %v2722_v57 = vmul.f32 %v1137_v16, %v4314_v24  ;;  %v1141_v15 = vsub.f32 1.0, %v1140_v19  ;;  %v4563_v12 = vadd.f32 1.0, %v3213_v20  ;;  %3218 = vpow2.f32 %v453_v0 }
  0xa3   : > { %3220 = vrcp.f32 %v4561_v11  ;;  %v457_v47 = vmul.f32 1.442695, %v298_v17  ;;  %v1163_v6 = vand.u32 2147483647, %v4561_v11  ;;  %v1165_v24 = vand.u32 2147483648, %v4561_v11 }
  0xa4   : > { %2850 = vst [vmem:[%s3999_s17 + $0xb8] sm:$0xff] %v2722_v57  ;;  %v1142_v27 = vmul.f32 %v3209_v5, %v1141_v15  ;;  %3222 = vrcp.f32 %v4563_v12  ;;  %vm4583_vm4 = vcmp.eq.f32.partialorder %v1148_v30, 8.507059e+37  ;;  %v1151_v25 = vor.u32 1.1754944e-38, %v1150_v59 }
  0xa5   : > { %v3215_v40 = vpop.eup %3214  ;;  %v1178_v32 = vand.u32 2147483647, %v4563_v12  ;;  %v1180_v56 = vand.u32 2147483648, %v4563_v12  ;;  %3224 = vpow2.f32 %v455_v21  ;;  %v299_v34 = vsub.f32 0.0, %v4568_v23 }
  0xa6   : > { %v1143_v35 = vadd.f32 %v3209_v5, %v1142_v27  ;;  %v4589_v38 = vadd.f32 1.0, %v3215_v40  ;;  %vm1159_vm3 = vweird.f32 %v4561_v11  ;;  %vm1174_vm5 = vweird.f32 %v4563_v12 }
  0xa7   : > { %v3217_v44 = vpop.eup %3216  ;;  %3226 = vpow2.f32 %v457_v47  ;;  %v300_v8 = vsub.f32 0.0, %v4574_v28  ;;  %vm4597_vm6 = vcmp.eq.f32.partialorder %v1163_v6, 8.507059e+37  ;;  %v1166_v62 = vor.u32 1.1754944e-38, %v1165_v24 }
  0xa8   : > { %v3219_v52 = vpop.eup %3218  ;;  %v1147_v13 = vsel %vm4579_vm2, %v3209_v5, %v1143_v35  ;;  %v1181_v18 = vor.u32 1.1754944e-38, %v1180_v56  ;;  %3228 = vrcp.f32 %v4589_v38  ;;  %vm4607_vm7 = vcmp.eq.f32.partialorder %v1178_v32, 8.507059e+37 }
  0xa9   : > { %v3221_v55 = vpop.eup %3220  ;;  %v1152_v60 = vsel %vm4583_vm4, %v1151_v25, %v1147_v13  ;;  %v1193_v49 = vand.u32 2147483647, %v4589_v38  ;;  %v4612_v3 = vadd.f32 1.0, %v3217_v44  ;;  %v4614_v53 = vadd.f32 1.0, %v3219_v52 }
  0xaa   : > { %v3223_v50 = vpop.eup %3222  ;;  %v2723_v14 = vmul.f32 %v1152_v60, %v4328_v26  ;;  %v1155_v45 = vmul.f32 %v3221_v55, %v4561_v11  ;;  %v1195_v22 = vand.u32 2147483648, %v4589_v38  ;;  %v459_v29 = vmul.f32 1.442695, %v299_v34 }
  0xab   : > { %v1170_v37 = vmul.f32 %v3223_v50, %v4563_v12  ;;  %3230 = vrcp.f32 %v4612_v3  ;;  %v4621_v63 = vmul.f32 1.442695, %v300_v8  ;;  %v301_v48 = vsub.f32 0.0, %v4603_v39  ;;  %v3225_v43 = vpop.eup %3224 }
  0xac   : > { %2851 = vst [vmem:[%s3999_s17 + $0xc0] sm:$0xff] %v2723_v14  ;;  %v1156_v30 = vsub.f32 1.0, %v1155_v45  ;;  %vm1160_vm9 = vweird.f32 %v3221_v55  ;;  %vm1189_vm10 = vweird.f32 %v4589_v38  ;;  %v1208_v26 = vand.u32 2147483647, %v4612_v3 }
  0xad   : > { %v3227_v2 = vpop.eup %3226  ;;  %v1171_v1 = vsub.f32 1.0, %v1170_v37  ;;  %vm1175_vm8 = vweird.f32 %v3223_v50  ;;  %vm4627_vm11 = vcmp.eq.f32.partialorder %v1193_v49, 8.507059e+37  ;;  %3232 = vrcp.f32 %v4614_v53  ;;  %vm4636_vm13 = vmor %vm1159_vm3, %vm1160_vm9 }
  0xae   : > { %v3229_v7 = vpop.eup %3228  ;;  %v1157_v46 = vmul.f32 %v3221_v55, %v1156_v30  ;;  %v1196_v17 = vor.u32 1.1754944e-38, %v1195_v22  ;;  %vm1204_vm12 = vweird.f32 %v4612_v3  ;;  %v1210_v31 = vand.u32 2147483648, %v4612_v3  ;;  %vm4645_vm15 = vmor %vm1174_vm5, %vm1175_vm8 }
  0xaf   : > { %v1172_v19 = vmul.f32 %v3223_v50, %v1171_v1  ;;  %v1185_v59 = vmul.f32 %v3229_v7, %v4589_v38  ;;  %vm1219_vm14 = vweird.f32 %v4614_v53  ;;  %v1223_v0 = vand.u32 2147483647, %v4614_v53 }
  0xb0   : > { %v1158_v20 = vadd.f32 %v3221_v55, %v1157_v46  ;;  %vm4649_vm0 = vcmp.eq.f32.partialorder %v1208_v26, 8.507059e+37  ;;  %v1225_v15 = vand.u32 2147483648, %v4614_v53  ;;  %v4654_v21 = vadd.f32 1.0, %v3225_v43 }
  0xb1   : > { %v3231_v47 = vpop.eup %3230  ;;  %v1173_v27 = vadd.f32 %v3223_v50, %v1172_v19  ;;  %v1186_v6 = vsub.f32 1.0, %v1185_v59  ;;  %vm1190_vm1 = vweird.f32 %v3229_v7  ;;  %3234 = vpow2.f32 %v459_v29  ;;  %v4698_v29 = vld [vmem:[%s3825_s24 + $0x118] sm:$0xff] }
  0xb2   : > { %v1162_v12 = vsel %vm4636_vm13, %v3221_v55, %v1158_v20  ;;  %v1200_v24 = vmul.f32 %v3231_v47, %v4612_v3  ;;  %3236 = vrcp.f32 %v4654_v21  ;;  %v4660_v40 = vadd.f32 1.0, %v3227_v2  ;;  %vm4671_vm4 = vmor %vm1189_vm10, %vm1190_vm1 }
  0xb3   : > { %v3233_v33 = vpop.eup %3232  ;;  %v1167_v41 = vsel %vm4597_vm6, %v1166_v62, %v1162_v12  ;;  %v1177_v25 = vsel %vm4645_vm15, %v3223_v50, %v1173_v27  ;;  %v1187_v32 = vmul.f32 %v3229_v7, %v1186_v6  ;;  %vm1205_vm2 = vweird.f32 %v3231_v47  ;;  %v4749_v6 = vld [vmem:[%s3825_s24 + $0x130] sm:$0xff] }
  0xb4   : > { %v2724_v56 = vmul.f32 %v1167_v41, %v4339_v54  ;;  %v1182_v35 = vsel %vm4607_vm7, %v1181_v18, %v1177_v25  ;;  %v1201_v44 = vsub.f32 1.0, %v1200_v24  ;;  %v1215_v8 = vmul.f32 %v3233_v33, %v4614_v53  ;;  %vm4689_vm6 = vmor %vm1204_vm12, %vm1205_vm2 }
  0xb5   : > { %v2725_v52 = vmul.f32 %v1182_v35, %v4361_v58  ;;  %v1188_v13 = vadd.f32 %v3229_v7, %v1187_v32  ;;  %v1211_v51 = vor.u32 1.1754944e-38, %v1210_v31  ;;  %vm4677_vm3 = vcmp.eq.f32.partialorder %v1223_v0, 8.507059e+37  ;;  %v4736_v0 = vld [vmem:[%s3825_s24 + $0x128] sm:$0xff] }
  0xb6   : > { %2852 = vst [vmem:[%s3999_s17 + $0xc8] sm:$0xff] %v2724_v56  ;;  %v1202_v54 = vmul.f32 %v3231_v47, %v1201_v44  ;;  %v1216_v18 = vsub.f32 1.0, %v1215_v8  ;;  %vm1220_vm5 = vweird.f32 %v3233_v33  ;;  %3238 = vrcp.f32 %v4660_v40 }
  0xb7   : > { %v3235_v38 = vpop.eup %3234  ;;  %2853 = vst [vmem:[%s3999_s17 + $0xd0] sm:$0xff] %v2725_v52  ;;  %v1192_v55 = vsel %vm4671_vm4, %v3229_v7, %v1188_v13  ;;  %v1226_v60 = vor.u32 1.1754944e-38, %v1225_v15  ;;  %vm1234_vm7 = vweird.f32 %v4654_v21  ;;  %v463_v9 = vmul.f32 1.442695, %v301_v48  ;;  %vm4704_vm9 = vmor %vm1219_vm14, %vm1220_vm5 }
  0xb8   : > { %v3237_v49 = vpop.eup %3236  ;;  %v1197_v50 = vsel %vm4627_vm11, %v1196_v17, %v1192_v55  ;;  %v1203_v14 = vadd.f32 %v3231_v47, %v1202_v54  ;;  %v1217_v45 = vmul.f32 %v3233_v33, %v1216_v18  ;;  %v1238_v22 = vand.u32 2147483647, %v4654_v21  ;;  %v4779_v18 = vld [vmem:[%s3825_s24 + $0x138] sm:$0xff] }
  0xb9   : > { %v2726_v3 = vmul.f32 %v1197_v50, %v4373_v10  ;;  %v1230_v48 = vmul.f32 %v3237_v49, %v4654_v21  ;;  %v1240_v43 = vand.u32 2147483648, %v4654_v21  ;;  %v1253_v30 = vand.u32 2147483647, %v4660_v40 }
  0xba   : > { %v1207_v26 = vsel %vm4689_vm6, %v3231_v47, %v1203_v14  ;;  %v1218_v2 = vadd.f32 %v3233_v33, %v1217_v45  ;;  %vm1235_vm10 = vweird.f32 %v3237_v49  ;;  %v4713_v10 = vadd.f32 1.0, %v3235_v38 }
  0xbb   : > { %2854 = vst [vmem:[%s3999_s17 + $0xd8] sm:$0xff] %v2726_v3  ;;  %v1212_v53 = vsel %vm4649_vm0, %v1211_v51, %v1207_v26  ;;  %v1231_v1 = vsub.f32 1.0, %v1230_v48  ;;  %3240 = vpow2.f32 %v4621_v63  ;;  %v302_v5 = vsub.f32 0.0, %v4698_v29  ;;  %vm4743_vm11 = vmor %vm1234_vm7, %vm1235_vm10 }
  0xbc   : > { %v3239_v7 = vpop.eup %3238  ;;  %v2727_v46 = vmul.f32 %v1212_v53, %v4514_v36  ;;  %v1222_v17 = vsel %vm4704_vm9, %v3233_v33, %v1218_v2  ;;  %v1255_v31 = vand.u32 2147483648, %v4660_v40  ;;  %3242 = vrcp.f32 %v4713_v10  ;;  %v4733_v36 = vld [vmem:[%s3825_s24 + $0x120] sm:$0xff] }
  0xbd   : > { %v1227_v16 = vsel %vm4677_vm3, %v1226_v60, %v1222_v17  ;;  %v1232_v19 = vmul.f32 %v3237_v49, %v1231_v1  ;;  %vm4727_vm8 = vcmp.eq.f32.partialorder %v1238_v22, 8.507059e+37  ;;  %v1245_v59 = vmul.f32 %v3239_v7, %v4660_v40 }
  0xbe   : > { %2855 = vst [vmem:[%s3999_s17 + $0xe0] sm:$0xff] %v2727_v46  ;;  %v2728_v20 = vmul.f32 %v1227_v16, %v4522_v4  ;;  %v1241_v11 = vor.u32 1.1754944e-38, %v1240_v43  ;;  %vm1249_vm12 = vweird.f32 %v4660_v40  ;;  %vm1250_vm13 = vweird.f32 %v3239_v7  ;;  %v4823_v16 = vld [vmem:[%s3825_s24 + $0x148] sm:$0xff] }
  0xbf   : > { %v1233_v15 = vadd.f32 %v3237_v49, %v1232_v19  ;;  %v1246_v47 = vsub.f32 1.0, %v1245_v59  ;;  %3244 = vpow2.f32 %v463_v9  ;;  %v465_v27 = vmul.f32 1.442695, %v302_v5  ;;  %vm4766_vm0 = vmor %vm1249_vm12, %vm1250_vm13 }
  0xc0   : > { %2856 = vst [vmem:[%s3999_s17 + $0xe8] sm:$0xff] %v2728_v20  ;;  %vm4752_vm14 = vcmp.eq.f32.partialorder %v1253_v30, 8.507059e+37  ;;  %v1256_v21 = vor.u32 1.1754944e-38, %v1255_v31  ;;  %v303_v12 = vsub.f32 0.0, %v4733_v36  ;;  %v304_v24 = vsub.f32 0.0, %v4736_v0  ;;  %v4806_v30 = vld [vmem:[%s3825_s24 + $0x140] sm:$0xff] }
  0xc1   : > { %v3241_v33 = vpop.eup %3240  ;;  %v1237_v41 = vsel %vm4743_vm11, %v3237_v49, %v1233_v15  ;;  %v1247_v25 = vmul.f32 %v3239_v7, %v1246_v47  ;;  %vm1264_vm15 = vweird.f32 %v4713_v10  ;;  %3246 = vpow2.f32 %v465_v27 }
  0xc2   : > { %v3243_v32 = vpop.eup %3242  ;;  %v1242_v56 = vsel %vm4727_vm8, %v1241_v11, %v1237_v41  ;;  %v4770_v34 = vadd.f32 1.0, %v3241_v33  ;;  %v467_v44 = vmul.f32 1.442695, %v303_v12  ;;  %v305_v8 = vsub.f32 0.0, %v4749_v6 }
  0xc3   : > { %v2729_v52 = vmul.f32 %v1242_v56, %v4525_v42  ;;  %v1248_v13 = vadd.f32 %v3239_v7, %v1247_v25  ;;  %v1260_v51 = vmul.f32 %v3243_v32, %v4713_v10  ;;  %v469_v62 = vmul.f32 1.442695, %v304_v24 }
  0xc4   : > { %vm1265_vm1 = vweird.f32 %v3243_v32  ;;  %v1268_v54 = vand.u32 2147483647, %v4713_v10  ;;  %v1270_v40 = vand.u32 2147483648, %v4713_v10  ;;  %3248 = vrcp.f32 %v4770_v34 }
  0xc5   : > { %v3245_v38 = vpop.eup %3244  ;;  %2857 = vst [vmem:[%s3999_s17 + $0xf0] sm:$0xff] %v2729_v52  ;;  %v1252_v55 = vsel %vm4766_vm0, %v3239_v7, %v1248_v13  ;;  %v1261_v58 = vsub.f32 1.0, %v1260_v51  ;;  %v1283_v42 = vand.u32 2147483647, %v4770_v34  ;;  %3250 = vpow2.f32 %v467_v44  ;;  %vm4795_vm2 = vmor %vm1264_vm15, %vm1265_vm1 }
  0xc6   : > { %v1257_v60 = vsel %vm4752_vm14, %v1256_v21, %v1252_v55  ;;  %v1285_v9 = vand.u32 2147483648, %v4770_v34  ;;  %v4788_v49 = vadd.f32 1.0, %v3245_v38  ;;  %v471_v50 = vmul.f32 1.442695, %v305_v8 }
  0xc7   : > { %v3247_v14 = vpop.eup %3246  ;;  %v2730_v45 = vmul.f32 %v1257_v60, %v4541_v61  ;;  %v1262_v22 = vmul.f32 %v3243_v32, %v1261_v58  ;;  %3252 = vpow2.f32 %v469_v62  ;;  %v306_v3 = vsub.f32 0.0, %v4779_v18 }
  0xc8   : > { %vm4799_vm4 = vcmp.eq.f32.partialorder %v1268_v54, 8.507059e+37  ;;  %v1271_v43 = vor.u32 1.1754944e-38, %v1270_v40  ;;  %3254 = vrcp.f32 %v4788_v49  ;;  %v1300_v61 = vand.u32 2147483648, %v4788_v49 }
  0xc9   : > { %2858 = vst [vmem:[%s3999_s17 + $0xf8] sm:$0xff] %v2730_v45  ;;  %v1263_v26 = vadd.f32 %v3243_v32, %v1262_v22  ;;  %v1298_v2 = vand.u32 2147483647, %v4788_v49  ;;  %v4810_v10 = vadd.f32 1.0, %v3247_v14  ;;  %v473_v53 = vmul.f32 1.442695, %v306_v3 }
  0xca   : > { %v3249_v1 = vpop.eup %3248  ;;  %vm1279_vm3 = vweird.f32 %v4770_v34  ;;  %vm4813_vm5 = vcmp.eq.f32.partialorder %v1283_v42, 8.507059e+37  ;;  %v1286_v7 = vor.u32 1.1754944e-38, %v1285_v9  ;;  %3256 = vpow2.f32 %v471_v50 }
  0xcb   : > { %v3251_v46 = vpop.eup %3250  ;;  %v1267_v17 = vsel %vm4795_vm2, %v3243_v32, %v1263_v26  ;;  %v1275_v31 = vmul.f32 %v3249_v1, %v4770_v34  ;;  %vm1294_vm6 = vweird.f32 %v4788_v49  ;;  %3258 = vrcp.f32 %v4810_v10 }
  0xcc   : > { %v1272_v19 = vsel %vm4799_vm4, %v1271_v43, %v1267_v17  ;;  %vm1280_vm7 = vweird.f32 %v3249_v1  ;;  %v1301_v63 = vor.u32 1.1754944e-38, %v1300_v61  ;;  %v307_v59 = vsub.f32 0.0, %v4806_v30 }
  0xcd   : > { %v3253_v20 = vpop.eup %3252  ;;  %v2731_v57 = vmul.f32 %v1272_v19, %v4568_v23  ;;  %v1276_v11 = vsub.f32 1.0, %v1275_v31  ;;  %vm4829_vm9 = vcmp.eq.f32.partialorder %v1298_v2, 8.507059e+37  ;;  %v4833_v47 = vadd.f32 1.0, %v3251_v46  ;;  %vm4847_vm8 = vmor %vm1279_vm3, %vm1280_vm7 }
  0xce   : > { %3260 = vpow2.f32 %v473_v53  ;;  %v3255_v27 = vpop.eup %3254  ;;  %v1313_v4 = vand.u32 2147483647, %v4810_v10  ;;  %v1315_v21 = vand.u32 2147483648, %v4810_v10  ;;  %v4837_v12 = vadd.f32 1.0, %v3253_v20 }
  0xcf   : > { %v308_v24 = vsub.f32 0.0, %v4823_v16  ;;  %2859 = vst [vmem:[%s3999_s17 + $0x100] sm:$0xff] %v2731_v57  ;;  %v1277_v33 = vmul.f32 %v3249_v1, %v1276_v11  ;;  %v1290_v23 = vmul.f32 %v3255_v27, %v4788_v49  ;;  %vm1309_vm10 = vweird.f32 %v4810_v10  ;;  %v5018_v11 = vld [vmem:[%s3825_s24 + $0x188] sm:$0xff] }
  0xd0   : > { %3262 = vrcp.f32 %v4833_v47  ;;  %v3257_v41 = vpop.eup %3256  ;;  %v1328_v32 = vand.u32 2147483647, %v4833_v47  ;;  %v1330_v56 = vand.u32 2147483648, %v4833_v47  ;;  %v475_v35 = vmul.f32 1.442695, %v307_v59 }
  0xd1   : > { %3264 = vrcp.f32 %v4837_v12  ;;  %v3259_v44 = vpop.eup %3258  ;;  %v1278_v8 = vadd.f32 %v3249_v1, %v1277_v33  ;;  %v1291_v52 = vsub.f32 1.0, %v1290_v23  ;;  %vm1295_vm11 = vweird.f32 %v3255_v27 }
  0xd2   : > { %v1343_v13 = vand.u32 2147483647, %v4837_v12  ;;  %v1305_v51 = vmul.f32 %v3259_v44, %v4810_v10  ;;  %vm4856_vm12 = vcmp.eq.f32.partialorder %v1313_v4, 8.507059e+37  ;;  %v1316_v62 = vor.u32 1.1754944e-38, %v1315_v21  ;;  %vm4868_vm0 = vmor %vm1294_vm6, %vm1295_vm11 }
  0xd3   : > { %vm1324_vm13 = vweird.f32 %v4833_v47  ;;  %v1282_v40 = vsel %vm4847_vm8, %v3249_v1, %v1278_v8  ;;  %v1292_v38 = vmul.f32 %v3255_v27, %v1291_v52  ;;  %vm1310_vm14 = vweird.f32 %v3259_v44 }
  0xd4   : > { %v3261_v54 = vpop.eup %3260  ;;  %vm1339_vm15 = vweird.f32 %v4837_v12  ;;  %v1287_v55 = vsel %vm4813_vm5, %v1286_v7, %v1282_v40  ;;  %v1306_v42 = vsub.f32 1.0, %v1305_v51  ;;  %vm4872_vm1 = vcmp.eq.f32.partialorder %v1328_v32, 8.507059e+37  ;;  %vm4894_vm4 = vmor %vm1309_vm10, %vm1310_vm14  ;;  %v4952_v51 = vld [vmem:[%s3825_s24 + $0x158] sm:$0xff]  ;;  %v4960_v40 = vld [vmem:[%s3825_s24 + $0x160] sm:$0xff] }
  0xd5   : > { %v1331_v9 = vor.u32 1.1754944e-38, %v1330_v56  ;;  %v4876_v50 = vadd.f32 1.0, %v3257_v41  ;;  %v2732_v45 = vmul.f32 %v1287_v55, %v4574_v28  ;;  %v1293_v22 = vadd.f32 %v3255_v27, %v1292_v38  ;;  %v4963_v38 = vld [vmem:[%s3825_s24 + $0x168] sm:$0xff] }
  0xd6   : > { %v3263_v14 = vpop.eup %3262  ;;  %vm4879_vm2 = vcmp.eq.f32.partialorder %v1343_v13, 8.507059e+37  ;;  %v4883_v49 = vadd.f32 1.0, %v3261_v54  ;;  %3266 = vpow2.f32 %v475_v35  ;;  %v1307_v48 = vmul.f32 %v3259_v44, %v1306_v42  ;;  %v4949_v13 = vld [vmem:[%s3825_s24 + $0x150] sm:$0xff] }
  0xd7   : > { %v3265_v37 = vpop.eup %3264  ;;  %v1320_v43 = vmul.f32 %v3263_v14, %v4833_v47  ;;  %v1345_v61 = vand.u32 2147483648, %v4837_v12  ;;  %3268 = vrcp.f32 %v4876_v50  ;;  %2860 = vst [vmem:[%s3999_s17 + $0x108] sm:$0xff] %v2732_v45  ;;  %v1297_v28 = vsel %vm4868_vm0, %v3255_v27, %v1293_v22 }
  0xd8   : > { %vm1325_vm3 = vweird.f32 %v3263_v14  ;;  %v1335_v2 = vmul.f32 %v3265_v37, %v4837_v12  ;;  %vm1340_vm5 = vweird.f32 %v3265_v37  ;;  %v1302_v53 = vsel %vm4829_vm9, %v1301_v63, %v1297_v28  ;;  %v5036_v12 = vld [vmem:[%s3825_s24 + $0x190] sm:$0xff] }
  0xd9   : > { %v1308_v1 = vadd.f32 %v3259_v44, %v1307_v48  ;;  %v1321_v5 = vsub.f32 1.0, %v1320_v43  ;;  %v1358_v7 = vand.u32 2147483647, %v4876_v50  ;;  %v2733_v46 = vmul.f32 %v1302_v53, %v4603_v39  ;;  %vm4914_vm7 = vmor %vm1324_vm13, %vm1325_vm3 }
  0xda   : > { %v1336_v17 = vsub.f32 1.0, %v1335_v2  ;;  %v1360_v10 = vand.u32 2147483648, %v4876_v50  ;;  %3270 = vrcp.f32 %v4883_v49  ;;  %v1346_v59 = vor.u32 1.1754944e-38, %v1345_v61  ;;  %vm4927_vm10 = vmor %vm1339_vm15, %vm1340_vm5 }
  0xdb   : > { %v1312_v31 = vsel %vm4894_vm4, %v3259_v44, %v1308_v1  ;;  %v1322_v19 = vmul.f32 %v3263_v14, %v1321_v5  ;;  %vm1354_vm6 = vweird.f32 %v4876_v50  ;;  %2861 = vst [vmem:[%s3999_s17 + $0x110] sm:$0xff] %v2733_v46  ;;  %vm4918_vm9 = vcmp.eq.f32.partialorder %v1358_v7, 8.507059e+37  ;;  %v4997_v1 = vld [vmem:[%s3825_s24 + $0x178] sm:$0xff]  ;;  %v5000_v5 = vld [vmem:[%s3825_s24 + $0x180] sm:$0xff] }
  0xdc   : > { %v3267_v20 = vpop.eup %3266  ;;  %v1317_v63 = vsel %vm4856_vm12, %v1316_v62, %v1312_v31  ;;  %v1337_v57 = vmul.f32 %v3265_v37, %v1336_v17  ;;  %v1373_v15 = vand.u32 2147483647, %v4883_v49  ;;  %v1375_v33 = vand.u32 2147483648, %v4883_v49 }
  0xdd   : > { %v3269_v27 = vpop.eup %3268  ;;  %v2734_v4 = vmul.f32 %v1317_v63, %v4698_v29  ;;  %v1323_v21 = vadd.f32 %v3263_v14, %v1322_v19  ;;  %v4932_v23 = vadd.f32 1.0, %v3267_v20  ;;  %v1361_v32 = vor.u32 1.1754944e-38, %v1360_v10 }
  0xde   : > { %v1338_v41 = vadd.f32 %v3265_v37, %v1337_v57  ;;  %v1350_v25 = vmul.f32 %v3269_v27, %v4876_v50  ;;  %vm1369_vm8 = vweird.f32 %v4883_v49  ;;  %vm1355_vm11 = vweird.f32 %v3269_v27 }
  0xdf   : > { %2862 = vst [vmem:[%s3999_s17 + $0x118] sm:$0xff] %v2734_v4  ;;  %v1327_v29 = vsel %vm4914_vm7, %v3263_v14, %v1323_v21  ;;  %vm4939_vm12 = vcmp.eq.f32.partialorder %v1373_v15, 8.507059e+37  ;;  %3272 = vrcp.f32 %v4932_v23  ;;  %v1376_v52 = vor.u32 1.1754944e-38, %v1375_v33  ;;  %vm4971_vm15 = vmor %vm1354_vm6, %vm1355_vm11 }
  0xe0   : > { %v3271_v56 = vpop.eup %3270  ;;  %v1332_v35 = vsel %vm4872_vm1, %v1331_v9, %v1327_v29  ;;  %v1342_v44 = vsel %vm4927_vm10, %v3265_v37, %v1338_v41  ;;  %v1351_v8 = vsub.f32 1.0, %v1350_v25  ;;  %vm1384_vm13 = vweird.f32 %v4932_v23 }
  0xe1   : > { %v2735_v34 = vmul.f32 %v1332_v35, %v4733_v36  ;;  %v1347_v62 = vsel %vm4879_vm2, %v1346_v59, %v1342_v44  ;;  %v1365_v54 = vmul.f32 %v3271_v56, %v4883_v49  ;;  %vm1370_vm14 = vweird.f32 %v3271_v56 }
  0xe2   : > { %v2736_v55 = vmul.f32 %v1347_v62, %v4736_v0  ;;  %v1352_v58 = vmul.f32 %v3269_v27, %v1351_v8  ;;  %v1388_v42 = vand.u32 2147483647, %v4932_v23  ;;  %v477_v9 = vmul.f32 1.442695, %v308_v24  ;;  %v4984_v24 = vld [vmem:[%s3825_s24 + $0x170] sm:$0xff]  ;;  %vm4991_vm0 = vmor %vm1369_vm8, %vm1370_vm14 }
  0xe3   : > { %2863 = vst [vmem:[%s3999_s17 + $0x120] sm:$0xff] %v2735_v34  ;;  %v1366_v60 = vsub.f32 1.0, %v1365_v54  ;;  %v309_v14 = vsub.f32 0.0, %v4949_v13  ;;  %v310_v0 = vsub.f32 0.0, %v4952_v51  ;;  %v1390_v22 = vand.u32 2147483648, %v4932_v23 }
  0xe4   : > { %2864 = vst [vmem:[%s3999_s17 + $0x128] sm:$0xff] %v2736_v55  ;;  %v1353_v45 = vadd.f32 %v3269_v27, %v1352_v58  ;;  %v311_v50 = vsub.f32 0.0, %v4960_v40  ;;  %v312_v3 = vsub.f32 0.0, %v4963_v38  ;;  %3274 = vpow2.f32 %v477_v9 }
  0xe5   : > { %v3273_v37 = vpop.eup %3272  ;;  %v1367_v48 = vmul.f32 %v3271_v56, %v1366_v60  ;;  %v479_v43 = vmul.f32 1.442695, %v309_v14  ;;  %v481_v61 = vmul.f32 1.442695, %v310_v0  ;;  %v313_v31 = vsub.f32 0.0, %v4984_v24 }
  0xe6   : > { %v1357_v28 = vsel %vm4971_vm15, %v3269_v27, %v1353_v45  ;;  %v1380_v2 = vmul.f32 %v3273_v37, %v4932_v23  ;;  %vm1385_vm1 = vweird.f32 %v3273_v37  ;;  %v483_v53 = vmul.f32 1.442695, %v311_v50 }
  0xe7   : > { %v1362_v7 = vsel %vm4918_vm9, %v1361_v32, %v1357_v28  ;;  %v1368_v46 = vadd.f32 %v3271_v56, %v1367_v48  ;;  %3276 = vpow2.f32 %v479_v43  ;;  %v485_v49 = vmul.f32 1.442695, %v312_v3  ;;  %vm5024_vm4 = vmor %vm1384_vm13, %vm1385_vm1 }
  0xe8   : > { %v2737_v17 = vmul.f32 %v1362_v7, %v4749_v6  ;;  %v1381_v10 = vsub.f32 1.0, %v1380_v2  ;;  %3278 = vpow2.f32 %v481_v61  ;;  %v314_v59 = vsub.f32 0.0, %v4997_v1 }
  0xe9   : > { %v1372_v19 = vsel %vm4991_vm0, %v3271_v56, %v1368_v46  ;;  %3280 = vpow2.f32 %v483_v53  ;;  %v315_v20 = vsub.f32 0.0, %v5000_v5  ;;  %vm5013_vm2 = vcmp.eq.f32.partialorder %v1388_v42, 8.507059e+37  ;;  %v5039_v56 = vld [vmem:[%s3825_s24 + $0x198] sm:$0xff] }
  0xea   : > { %2865 = vst [vmem:[%s3999_s17 + $0x130] sm:$0xff] %v2737_v17  ;;  %v1377_v63 = vsel %vm4939_vm12, %v1376_v52, %v1372_v19  ;;  %v1382_v39 = vmul.f32 %v3273_v37, %v1381_v10  ;;  %v487_v57 = vmul.f32 1.442695, %v313_v31  ;;  %v3275_v15 = vpop.eup %3274  ;;  %v1391_v21 = vor.u32 1.1754944e-38, %v1390_v22 }
  0xeb   : > { %v2738_v27 = vmul.f32 %v1377_v63, %v4779_v18  ;;  %3282 = vpow2.f32 %v485_v49  ;;  %v489_v47 = vmul.f32 1.442695, %v314_v59  ;;  %v5028_v41 = vadd.f32 1.0, %v3275_v15 }
  0xec   : > { %v1383_v33 = vadd.f32 %v3273_v37, %v1382_v39  ;;  %3284 = vpow2.f32 %v487_v57  ;;  %v491_v25 = vmul.f32 1.442695, %v315_v20  ;;  %v316_v18 = vsub.f32 0.0, %v5018_v11 }
  0xed   : > { %v3277_v32 = vpop.eup %3276  ;;  %2866 = vst [vmem:[%s3999_s17 + $0x138] sm:$0xff] %v2738_v27  ;;  %3286 = vpow2.f32 %v489_v47  ;;  %v1403_v8 = vand.u32 2147483647, %v5028_v41  ;;  %v1405_v54 = vand.u32 2147483648, %v5028_v41  ;;  %v317_v36 = vsub.f32 0.0, %v5036_v12 }
  0xee   : > { %v3279_v23 = vpop.eup %3278  ;;  %v1387_v29 = vsel %vm5024_vm4, %v3273_v37, %v1383_v33  ;;  %3288 = vrcp.f32 %v5028_v41  ;;  %v5044_v52 = vadd.f32 1.0, %v3277_v32  ;;  %v5053_v42 = vmul.f32 1.442695, %v316_v18 }
  0xef   : > { %v3281_v35 = vpop.eup %3280  ;;  %v1392_v44 = vsel %vm5013_vm2, %v1391_v21, %v1387_v29  ;;  %v5046_v34 = vadd.f32 1.0, %v3279_v23  ;;  %3290 = vpow2.f32 %v491_v25  ;;  %v318_v60 = vsub.f32 0.0, %v5039_v56 }
  0xf0   : > { %v2739_v62 = vmul.f32 %v1392_v44, %v4806_v30  ;;  %v5050_v55 = vadd.f32 1.0, %v3281_v35  ;;  %3292 = vrcp.f32 %v5044_v52  ;;  %vm1399_vm3 = vweird.f32 %v5028_v41 }
  0xf1   : > { %v3283_v58 = vpop.eup %3282  ;;  %v1418_v30 = vand.u32 2147483647, %v5044_v52  ;;  %v1420_v14 = vand.u32 2147483648, %v5044_v52  ;;  %3294 = vrcp.f32 %v5046_v34  ;;  %vm5062_vm5 = vcmp.eq.f32.partialorder %v1403_v8, 8.507059e+37 }
  0xf2   : > { %v3285_v9 = vpop.eup %3284  ;;  %2867 = vst [vmem:[%s3999_s17 + $0x140] sm:$0xff] %v2739_v62  ;;  %v1433_v22 = vand.u32 2147483647, %v5046_v34  ;;  %v1435_v50 = vand.u32 2147483648, %v5046_v34  ;;  %3296 = vrcp.f32 %v5050_v55  ;;  %v1406_v37 = vor.u32 1.1754944e-38, %v1405_v54 }
  0xf3   : > { %v3287_v0 = vpop.eup %3286  ;;  %vm1414_vm6 = vweird.f32 %v5044_v52  ;;  %v1448_v48 = vand.u32 2147483647, %v5050_v55  ;;  %v1450_v43 = vand.u32 2147483648, %v5050_v55  ;;  %vm1429_vm7 = vweird.f32 %v5046_v34 }
  0xf4   : > { %v3289_v3 = vpop.eup %3288  ;;  %vm1444_vm9 = vweird.f32 %v5050_v55  ;;  %v5075_v28 = vadd.f32 1.0, %v3283_v58  ;;  %vm5079_vm8 = vcmp.eq.f32.partialorder %v1418_v30, 8.507059e+37  ;;  %v1421_v53 = vor.u32 1.1754944e-38, %v1420_v14  ;;  %v5240_v58 = vld [vmem:[%s3825_s24 + $0x1c0] sm:$0xff] }
  0xf5   : > { %v1395_v61 = vmul.f32 %v3289_v3, %v5028_v41  ;;  %v5077_v26 = vpop.eup %3290  ;;  %vm1400_vm10 = vweird.f32 %v3289_v3  ;;  %v5083_v7 = vor.u32 1.1754944e-38, %v1435_v50  ;;  %v5085_v46 = vadd.f32 1.0, %v3285_v9 }
  0xf6   : > { %v3293_v49 = vpop.eup %3292  ;;  %vm5087_vm11 = vcmp.eq.f32.partialorder %v1433_v22, 8.507059e+37  ;;  %v1451_v31 = vor.u32 1.1754944e-38, %v1450_v43  ;;  %3298 = vrcp.f32 %v5075_v28  ;;  %v5092_v19 = vadd.f32 1.0, %v3287_v0  ;;  %vm5107_vm0 = vmor %vm1399_vm3, %vm1400_vm10 }
  0xf7   : > { %v1396_v17 = vsub.f32 1.0, %v1395_v61  ;;  %v3295_v59 = vpop.eup %3294  ;;  %v1410_v20 = vmul.f32 %v3293_v49, %v5044_v52  ;;  %vm5095_vm12 = vcmp.eq.f32.partialorder %v1448_v48, 8.507059e+37  ;;  %vm1459_vm13 = vweird.f32 %v5075_v28 }
  0xf8   : > { %v1463_v39 = vand.u32 2147483647, %v5075_v28  ;;  %v1465_v6 = vand.u32 2147483648, %v5075_v28  ;;  %3300 = vrcp.f32 %v5085_v46  ;;  %v3297_v57 = vpop.eup %3296  ;;  %vm1415_vm14 = vweird.f32 %v3293_v49 }
  0xf9   : > { %v1397_v15 = vmul.f32 %v3289_v3, %v1396_v17  ;;  %v1425_v27 = vmul.f32 %v3295_v59, %v5046_v34  ;;  %vm1430_vm15 = vweird.f32 %v3295_v59  ;;  %v1411_v21 = vsub.f32 1.0, %v1410_v20  ;;  %vm5127_vm3 = vmor %vm1414_vm6, %vm1415_vm14 }
  0xfa   : > { %v1440_v47 = vmul.f32 %v3297_v57, %v5050_v55  ;;  %vm1445_vm1 = vweird.f32 %v3297_v57  ;;  %v5112_v33 = vor.u32 1.1754944e-38, %v1465_v6  ;;  %v1478_v18 = vand.u32 2147483647, %v5085_v46  ;;  %vm5141_vm6 = vmor %vm1429_vm7, %vm1430_vm15 }
  0xfb   : > { %v1398_v25 = vadd.f32 %v3289_v3, %v1397_v15  ;;  %v1426_v32 = vsub.f32 1.0, %v1425_v27  ;;  %v1412_v23 = vmul.f32 %v3293_v49, %v1411_v21  ;;  %vm5116_vm4 = vcmp.eq.f32.partialorder %v1463_v39, 8.507059e+37  ;;  %vm5150_vm14 = vmor %vm1444_vm9, %vm1445_vm1 }
  0xfc   : > { %v1441_v29 = vsub.f32 1.0, %v1440_v47  ;;  %v1480_v35 = vand.u32 2147483648, %v5085_v46  ;;  %3302 = vrcp.f32 %v5092_v19  ;;  %v3299_v44 = vpop.eup %3298  ;;  %vm5131_vm10 = vcmp.eq.f32.partialorder %v1478_v18, 8.507059e+37  ;;  %v5210_v18 = vld [vmem:[%s3825_s24 + $0x1a8] sm:$0xff] }
  0xfd   : > { %v1402_v8 = vsel %vm5107_vm0, %v3289_v3, %v1398_v25  ;;  %v1427_v54 = vmul.f32 %v3295_v59, %v1426_v32  ;;  %vm1489_vm2 = vweird.f32 %v5092_v19  ;;  %v1413_v14 = vadd.f32 %v3293_v49, %v1412_v23 }
  0xfe   : > { %v3301_v9 = vpop.eup %3300  ;;  %v1407_v30 = vsel %vm5062_vm5, %v1406_v37, %v1402_v8  ;;  %v1442_v0 = vmul.f32 %v3297_v57, %v1441_v29  ;;  %v1455_v22 = vmul.f32 %v3299_v44, %v5075_v28  ;;  %vm1460_vm5 = vweird.f32 %v3299_v44  ;;  %v5224_v29 = vld [vmem:[%s3825_s24 + $0x1b0] sm:$0xff] }
  0xff   : > { %v2740_v50 = vmul.f32 %v1407_v30, %v4823_v16  ;;  %v1428_v3 = vadd.f32 %v3295_v59, %v1427_v54  ;;  %v1470_v34 = vmul.f32 %v3301_v9, %v5085_v46  ;;  %v1417_v37 = vsel %vm5127_vm3, %v3293_v49, %v1413_v14  ;;  %vm5174_vm9 = vmor %vm1459_vm13, %vm1460_vm5 }
 0x100   : > { %v1443_v48 = vadd.f32 %v3297_v57, %v1442_v0  ;;  %v1456_v43 = vsub.f32 1.0, %v1455_v22  ;;  %vm1475_vm7 = vweird.f32 %v3301_v9  ;;  %v1422_v16 = vsel %vm5079_vm8, %v1421_v53, %v1417_v37 }
 0x101   : > { %2868 = vst [vmem:[%s3999_s17 + $0x148] sm:$0xff] %v2740_v50  ;;  %v1432_v55 = vsel %vm5141_vm6, %v3295_v59, %v1428_v3  ;;  %v1471_v61 = vsub.f32 1.0, %v1470_v34  ;;  %v1481_v17 = vor.u32 1.1754944e-38, %v1480_v35  ;;  %v2741_v39 = vmul.f32 %v1422_v16, %v4949_v13  ;;  %v5180_v59 = vld [vmem:[%s3825_s24 + $0x1a0] sm:$0xff]  ;;  %v5228_v35 = vld [vmem:[%s3825_s24 + $0x1b8] sm:$0xff] }
 0x102   : > { %v3303_v20 = vpop.eup %3302  ;;  %v1437_v49 = vsel %vm5087_vm11, %v5083_v7, %v1432_v55  ;;  %v1447_v6 = vsel %vm5150_vm14, %v3297_v57, %v1443_v48  ;;  %v1457_v15 = vmul.f32 %v3299_v44, %v1456_v43  ;;  %vm7576_vm8 = vweird.f32 %v5085_v46 }
 0x103   : > { %v2742_v2 = vmul.f32 %v1437_v49, %v4952_v51  ;;  %v1452_v53 = vsel %vm5095_vm12, %v1451_v31, %v1447_v6  ;;  %v1472_v10 = vmul.f32 %v3301_v9, %v1471_v61  ;;  %v1485_v7 = vmul.f32 %v3303_v20, %v5092_v19  ;;  %2869 = vst [vmem:[%s3999_s17 + $0x150] sm:$0xff] %v2741_v39  ;;  %vm5187_vm11 = vmor %vm7576_vm8, %vm1475_vm7 }
 0x104   : > { %v2743_v57 = vmul.f32 %v1452_v53, %v4960_v40  ;;  %v1458_v51 = vadd.f32 %v3299_v44, %v1457_v15  ;;  %vm1490_vm12 = vweird.f32 %v3303_v20  ;;  %v1493_v28 = vand.u32 2147483647, %v5092_v19  ;;  %v5265_v15 = vld [vmem:[%s3825_s24 + $0x1d0] sm:$0xff] }
 0x105   : > { %2870 = vst [vmem:[%s3999_s17 + $0x158] sm:$0xff] %v2742_v2  ;;  %v1473_v63 = vadd.f32 %v3301_v9, %v1472_v10  ;;  %v1486_v27 = vsub.f32 1.0, %v1485_v7  ;;  %v1495_v4 = vand.u32 2147483648, %v5092_v19  ;;  %v5195_v40 = vadd.f32 1.0, %v5077_v26  ;;  %vm5218_vm13 = vmor %vm1489_vm2, %vm1490_vm12 }
 0x106   : > { %2871 = vst [vmem:[%s3999_s17 + $0x160] sm:$0xff] %v2743_v57  ;;  %v1462_v46 = vsel %vm5174_vm9, %v3299_v44, %v1458_v51  ;;  %3304 = vpow2.f32 %v5053_v42  ;;  %v495_v21 = vmul.f32 1.442695, %v317_v36  ;;  %v319_v47 = vsub.f32 0.0, %v5180_v59 }
 0x107   : > { %v1467_v25 = vsel %vm5116_vm4, %v5112_v33, %v1462_v46  ;;  %v1477_v26 = vsel %vm5187_vm11, %v3301_v9, %v1473_v63  ;;  %v1487_v32 = vmul.f32 %v3303_v20, %v1486_v27  ;;  %v1496_v33 = vor.u32 1.1754944e-38, %v1495_v4  ;;  %v5243_v9 = vld [vmem:[%s3825_s24 + $0x1c8] sm:$0xff] }
 0x108   : > { %v2744_v42 = vmul.f32 %v1467_v25, %v4963_v38  ;;  %v1482_v23 = vsel %vm5131_vm10, %v1481_v17, %v1477_v26  ;;  %3306 = vrcp.f32 %v5195_v40  ;;  %vm1494_vm15 = vcmp.eq.f32.partialorder %v1493_v28, 8.507059e+37 }
 0x109   : > { %v2745_v41 = vmul.f32 %v1482_v23, %v4984_v24  ;;  %v1488_v38 = vadd.f32 %v3303_v20, %v1487_v32  ;;  %3308 = vpow2.f32 %v495_v21  ;;  %v497_v19 = vmul.f32 1.442695, %v318_v60 }
 0x10a   : > { %2872 = vst [vmem:[%s3999_s17 + $0x168] sm:$0xff] %v2744_v42  ;;  %v499_v44 = vmul.f32 1.442695, %v319_v47  ;;  %v320_v8 = vsub.f32 0.0, %v5210_v18  ;;  %v1508_v54 = vand.u32 2147483647, %v5195_v40  ;;  %vm1504_vm0 = vweird.f32 %v5195_v40 }
 0x10b   : > { %2873 = vst [vmem:[%s3999_s17 + $0x170] sm:$0xff] %v2745_v41  ;;  %v1492_v62 = vsel %vm5218_vm13, %v3303_v20, %v1488_v38  ;;  %v321_v24 = vsub.f32 0.0, %v5224_v29  ;;  %3310 = vpow2.f32 %v497_v19  ;;  %v322_v52 = vsub.f32 0.0, %v5228_v35 }
 0x10c   : > { %v3305_v30 = vpop.eup %3304  ;;  %v1497_v14 = vsel %vm1494_vm15, %v1496_v33, %v1492_v62  ;;  %v501_v60 = vmul.f32 1.442695, %v320_v8  ;;  %3312 = vpow2.f32 %v499_v44  ;;  %v323_v34 = vsub.f32 0.0, %v5240_v58 }
 0x10d   : > { %v2746_v0 = vmul.f32 %v1497_v14, %v4997_v1  ;;  %v5247_v22 = vadd.f32 1.0, %v3305_v30  ;;  %v503_v50 = vmul.f32 1.442695, %v321_v24  ;;  %v505_v45 = vmul.f32 1.442695, %v322_v52 }
 0x10e   : > { %v3307_v3 = vpop.eup %3306  ;;  %3314 = vpow2.f32 %v501_v60  ;;  %v324_v37 = vsub.f32 0.0, %v5243_v9  ;;  %v1510_v43 = vand.u32 2147483648, %v5195_v40  ;;  %v507_v55 = vmul.f32 1.442695, %v323_v34 }
 0x10f   : > { %2874 = vst [vmem:[%s3999_s17 + $0x178] sm:$0xff] %v2746_v0  ;;  %v1500_v48 = vmul.f32 %v3307_v3, %v5195_v40  ;;  %3316 = vrcp.f32 %v5247_v22  ;;  %v3309_v1 = vpop.eup %3308  ;;  %vm1505_vm1 = vweird.f32 %v3307_v3  ;;  %v1523_v16 = vand.u32 2147483647, %v5247_v22 }
 0x110   : > { %v5257_v17 = vadd.f32 1.0, %v3309_v1  ;;  %3318 = vpow2.f32 %v503_v50  ;;  %v509_v20 = vmul.f32 1.442695, %v324_v37  ;;  %vm5259_vm2 = vcmp.eq.f32.partialorder %v1508_v54, 8.507059e+37  ;;  %vm5272_vm3 = vmor %vm1504_vm0, %vm1505_vm1 }
 0x111   : > { %v1501_v61 = vsub.f32 1.0, %v1500_v48  ;;  %v3311_v39 = vpop.eup %3310  ;;  %v1525_v6 = vand.u32 2147483648, %v5247_v22  ;;  %3320 = vpow2.f32 %v505_v45  ;;  %v1511_v13 = vor.u32 1.1754944e-38, %v1510_v43 }
 0x112   : > { %v3313_v2 = vpop.eup %3312  ;;  %vm1519_vm4 = vweird.f32 %v5247_v22  ;;  %3322 = vrcp.f32 %v5257_v17  ;;  %vm5276_vm10 = vcmp.eq.f32.partialorder %v1523_v16, 8.507059e+37  ;;  %v1538_v51 = vand.u32 2147483647, %v5257_v17 }
 0x113   : > { %v1502_v53 = vmul.f32 %v3307_v3, %v1501_v61  ;;  %v5281_v31 = vadd.f32 1.0, %v3311_v39  ;;  %v5283_v28 = vadd.f32 1.0, %v3313_v2  ;;  %3324 = vpow2.f32 %v507_v55 }
 0x114   : > { %v3315_v10 = vpop.eup %3314  ;;  %v1540_v4 = vand.u32 2147483648, %v5257_v17  ;;  %3326 = vpow2.f32 %v509_v20  ;;  %v325_v40 = vsub.f32 0.0, %v5265_v15  ;;  %v1526_v21 = vor.u32 1.1754944e-38, %v1525_v6 }
 0x115   : > { %v3317_v63 = vpop.eup %3316  ;;  %v1503_v27 = vadd.f32 %v3307_v3, %v1502_v53  ;;  %vm1534_vm6 = vweird.f32 %v5257_v17  ;;  %3328 = vrcp.f32 %v5281_v31  ;;  %v1553_v26 = vand.u32 2147483647, %v5281_v31 }
 0x116   : > { %v1515_v46 = vmul.f32 %v3317_v63, %v5247_v22  ;;  %v3319_v47 = vpop.eup %3318  ;;  %v1555_v32 = vand.u32 2147483648, %v5281_v31  ;;  %v5294_v42 = vadd.f32 1.0, %v3315_v10  ;;  %vm1520_vm14 = vweird.f32 %v3317_v63 }
 0x117   : > { %v1507_v25 = vsel %vm5272_vm3, %v3307_v3, %v1503_v27  ;;  %v3321_v23 = vpop.eup %3320  ;;  %vm5298_vm5 = vcmp.eq.f32.partialorder %v1538_v51, 8.507059e+37  ;;  %3330 = vrcp.f32 %v5283_v28  ;;  %v1541_v44 = vor.u32 1.1754944e-38, %v1540_v4  ;;  %vm5318_vm9 = vmor %vm1519_vm4, %vm1520_vm14 }
 0x118   : > { %v1512_v36 = vsel %vm5259_vm2, %v1511_v13, %v1507_v25  ;;  %v1516_v33 = vsub.f32 1.0, %v1515_v46  ;;  %v3323_v38 = vpop.eup %3322  ;;  %v1568_v8 = vand.u32 2147483647, %v5283_v28  ;;  %v5305_v62 = vmul.f32 1.442695, %v325_v40 }
 0x119   : > { %v2747_v19 = vmul.f32 %v1512_v36, %v5000_v5  ;;  %v5307_v54 = vpop.eup %3324  ;;  %v1530_v30 = vmul.f32 %v3323_v38, %v5257_v17  ;;  %vm1549_vm7 = vweird.f32 %v5281_v31  ;;  %v1570_v14 = vand.u32 2147483648, %v5283_v28  ;;  %v5483_v36 = vld [vmem:[%s3825_s24 + $0x208] sm:$0xff] }
 0x11a   : > { %v1517_v24 = vmul.f32 %v3317_v63, %v1516_v33  ;;  %v5312_v60 = vpop.eup %3326  ;;  %vm5322_vm8 = vcmp.eq.f32.partialorder %v1553_v26, 8.507059e+37  ;;  %v1556_v0 = vor.u32 1.1754944e-38, %v1555_v32  ;;  %vm1564_vm11 = vweird.f32 %v5283_v28 }
 0x11b   : > { %2875 = vst [vmem:[%s3999_s17 + $0x180] sm:$0xff] %v2747_v19  ;;  %3332 = vrcp.f32 %v5294_v42  ;;  %v3329_v50 = vpop.eup %3328  ;;  %v1531_v45 = vsub.f32 1.0, %v1530_v30  ;;  %vm1535_vm12 = vweird.f32 %v3323_v38  ;;  %vm1579_vm13 = vweird.f32 %v5294_v42 }
 0x11c   : > { %v1518_v3 = vadd.f32 %v3317_v63, %v1517_v24  ;;  %v1545_v22 = vmul.f32 %v3329_v50, %v5281_v31  ;;  %vm5330_vm15 = vcmp.eq.f32.partialorder %v1568_v8, 8.507059e+37  ;;  %v1571_v37 = vor.u32 1.1754944e-38, %v1570_v14  ;;  %vm5346_vm0 = vmor %vm1534_vm6, %vm1535_vm12 }
 0x11d   : > { %v1583_v48 = vand.u32 2147483647, %v5294_v42  ;;  %v5335_v43 = vadd.f32 1.0, %v3319_v47  ;;  %v3331_v1 = vpop.eup %3330  ;;  %v1532_v55 = vmul.f32 %v3323_v38, %v1531_v45  ;;  %v1585_v61 = vand.u32 2147483648, %v5294_v42 }
 0x11e   : > { %v1522_v16 = vsel %vm5318_vm9, %v3317_v63, %v1518_v3  ;;  %v5340_v20 = vadd.f32 1.0, %v3321_v23  ;;  %v1546_v6 = vsub.f32 1.0, %v1545_v22  ;;  %vm1550_vm1 = vweird.f32 %v3329_v50 }
 0x11f   : > { %v1527_v39 = vsel %vm5276_vm10, %v1526_v21, %v1522_v16  ;;  %v1560_v2 = vmul.f32 %v3331_v1, %v5283_v28  ;;  %v1533_v13 = vadd.f32 %v3323_v38, %v1532_v55  ;;  %vm1565_vm2 = vweird.f32 %v3331_v1  ;;  %vm5360_vm4 = vmor %vm1549_vm7, %vm1550_vm1 }
 0x120   : > { %v2748_v53 = vmul.f32 %v1527_v39, %v5018_v11  ;;  %3334 = vrcp.f32 %v5335_v43  ;;  %v1547_v7 = vmul.f32 %v3329_v50, %v1546_v6  ;;  %v1598_v51 = vand.u32 2147483647, %v5335_v43  ;;  %vm5376_vm10 = vmor %vm1564_vm11, %vm1565_vm2 }
 0x121   : > { %v3333_v10 = vpop.eup %3332  ;;  %v1561_v57 = vsub.f32 1.0, %v1560_v2  ;;  %v1600_v17 = vand.u32 2147483648, %v5335_v43  ;;  %v1537_v63 = vsel %vm5346_vm0, %v3323_v38, %v1533_v13  ;;  %vm5365_vm3 = vcmp.eq.f32.partialorder %v1583_v48, 8.507059e+37  ;;  %v5429_v48 = vld [vmem:[%s3825_s24 + $0x1e0] sm:$0xff] }
 0x122   : > { %2876 = vst [vmem:[%s3999_s17 + $0x188] sm:$0xff] %v2748_v53  ;;  %v1575_v11 = vmul.f32 %v3333_v10, %v5294_v42  ;;  %3336 = vrcp.f32 %v5340_v20  ;;  %v1542_v40 = vsel %vm5298_vm5, %v1541_v44, %v1537_v63  ;;  %v1548_v46 = vadd.f32 %v3329_v50, %v1547_v7 }
 0x123   : > { %v1562_v21 = vmul.f32 %v3331_v1, %v1561_v57  ;;  %v1586_v47 = vor.u32 1.1754944e-38, %v1585_v61  ;;  %v2749_v31 = vmul.f32 %v1542_v40, %v5036_v12  ;;  %vm1580_vm6 = vweird.f32 %v3333_v10  ;;  %v5441_v61 = vld [vmem:[%s3825_s24 + $0x1e8] sm:$0xff]  ;;  %v5461_v57 = vld [vmem:[%s3825_s24 + $0x1f0] sm:$0xff] }
 0x124   : > { %v1576_v26 = vsub.f32 1.0, %v1575_v11  ;;  %vm1594_vm14 = vweird.f32 %v5335_v43  ;;  %v1552_v32 = vsel %vm5360_vm4, %v3329_v50, %v1548_v46  ;;  %vm5383_vm5 = vcmp.eq.f32.partialorder %v1598_v51, 8.507059e+37  ;;  %vm5399_vm7 = vmor %vm1579_vm13, %vm1580_vm6  ;;  %v5471_v46 = vld [vmem:[%s3825_s24 + $0x1f8] sm:$0xff] }
 0x125   : > { %v1563_v23 = vadd.f32 %v3331_v1, %v1562_v21  ;;  %v1601_v12 = vor.u32 1.1754944e-38, %v1600_v17  ;;  %2877 = vst [vmem:[%s3999_s17 + $0x190] sm:$0xff] %v2749_v31  ;;  %v1557_v28 = vsel %vm5322_vm8, %v1556_v0, %v1552_v32  ;;  %v1613_v38 = vand.u32 2147483647, %v5340_v20  ;;  %v5474_v21 = vld [vmem:[%s3825_s24 + $0x200] sm:$0xff] }
 0x126   : > { %v3335_v33 = vpop.eup %3334  ;;  %v1577_v41 = vmul.f32 %v3333_v10, %v1576_v26  ;;  %v5392_v19 = vadd.f32 1.0, %v5307_v54  ;;  %v2750_v44 = vmul.f32 %v1557_v28, %v5039_v56  ;;  %vm1609_vm9 = vweird.f32 %v5340_v20 }
 0x127   : > { %v1567_v8 = vsel %vm5376_vm10, %v3331_v1, %v1563_v23  ;;  %v1590_v30 = vmul.f32 %v3335_v33, %v5335_v43  ;;  %v1615_v56 = vand.u32 2147483648, %v5340_v20  ;;  %v5409_v52 = vadd.f32 1.0, %v5312_v60 }
 0x128   : > { %v3337_v14 = vpop.eup %3336  ;;  %v1572_v54 = vsel %vm5330_vm15, %v1571_v37, %v1567_v8  ;;  %v1578_v5 = vadd.f32 %v3333_v10, %v1577_v41  ;;  %2878 = vst [vmem:[%s3999_s17 + $0x198] sm:$0xff] %v2750_v44  ;;  %vm1595_vm8 = vweird.f32 %v3335_v33  ;;  %vm5416_vm12 = vcmp.eq.f32.partialorder %v1613_v38, 8.507059e+37  ;;  %v5426_v37 = vld [vmem:[%s3825_s24 + $0x1d8] sm:$0xff] }
 0x129   : > { %v2751_v42 = vmul.f32 %v1572_v54, %v5180_v59  ;;  %v1591_v0 = vsub.f32 1.0, %v1590_v30  ;;  %v1605_v50 = vmul.f32 %v3337_v14, %v5340_v20  ;;  %vm1610_vm11 = vweird.f32 %v3337_v14  ;;  %vm5434_vm13 = vmor %vm1594_vm14, %vm1595_vm8 }
 0x12a   : > { %v1582_v3 = vsel %vm5399_vm7, %v3333_v10, %v1578_v5  ;;  %3338 = vrcp.f32 %v5392_v19  ;;  %v1630_v34 = vand.u32 2147483648, %v5392_v19  ;;  %v1616_v55 = vor.u32 1.1754944e-38, %v1615_v56  ;;  %vm5449_vm1 = vmor %vm1609_vm9, %vm1610_vm11 }
 0x12b   : > { %2879 = vst [vmem:[%s3999_s17 + $0x1a0] sm:$0xff] %v2751_v42  ;;  %v1587_v60 = vsel %vm5365_vm3, %v1586_v47, %v1582_v3  ;;  %v1592_v59 = vmul.f32 %v3335_v33, %v1591_v0  ;;  %v1606_v22 = vsub.f32 1.0, %v1605_v50  ;;  %vm1624_vm15 = vweird.f32 %v5392_v19 }
 0x12c   : > { %v2752_v1 = vmul.f32 %v1587_v60, %v5210_v18  ;;  %3340 = vrcp.f32 %v5409_v52  ;;  %v1628_v6 = vand.u32 2147483647, %v5392_v19  ;;  %vm1639_vm0 = vweird.f32 %v5409_v52  ;;  %v5526_v18 = vld [vmem:[%s3825_s24 + $0x210] sm:$0xff] }
 0x12d   : > { %v1593_v39 = vadd.f32 %v3335_v33, %v1592_v59  ;;  %v1607_v49 = vmul.f32 %v3337_v14, %v1606_v22  ;;  %v1631_v43 = vor.u32 1.1754944e-38, %v1630_v34  ;;  %3342 = vpow2.f32 %v5305_v62 }
 0x12e   : > { %2880 = vst [vmem:[%s3999_s17 + $0x1a8] sm:$0xff] %v2752_v1  ;;  %v326_v2 = vsub.f32 0.0, %v5426_v37  ;;  %v327_v53 = vsub.f32 0.0, %v5429_v48  ;;  %v1643_v7 = vand.u32 2147483647, %v5409_v52  ;;  %v328_v20 = vsub.f32 0.0, %v5441_v61 }
 0x12f   : > { %v1597_v13 = vsel %vm5434_vm13, %v3335_v33, %v1593_v39  ;;  %v1608_v10 = vadd.f32 %v3337_v14, %v1607_v49  ;;  %v1645_v17 = vand.u32 2147483648, %v5409_v52  ;;  %v330_v28 = vsub.f32 0.0, %v5471_v46 }
 0x130   : > { %v3339_v51 = vpop.eup %3338  ;;  %v1602_v62 = vsel %vm5383_vm5, %v1601_v12, %v1597_v13  ;;  %v513_v63 = vmul.f32 1.442695, %v326_v2  ;;  %v515_v27 = vmul.f32 1.442695, %v327_v53  ;;  %v517_v25 = vmul.f32 1.442695, %v328_v20 }
 0x131   : > { %v2753_v11 = vmul.f32 %v1602_v62, %v5224_v29  ;;  %v1612_v4 = vsel %vm5449_vm1, %v3337_v14, %v1608_v10  ;;  %v1620_v40 = vmul.f32 %v3339_v51, %v5392_v19  ;;  %vm1625_vm2 = vweird.f32 %v3339_v51 }
 0x132   : > { %v3341_v47 = vpop.eup %3340  ;;  %v1617_v31 = vsel %vm5416_vm12, %v1616_v55, %v1612_v4  ;;  %3344 = vpow2.f32 %v513_v63  ;;  %v329_v29 = vsub.f32 0.0, %v5461_v57  ;;  %v331_v41 = vsub.f32 0.0, %v5474_v21  ;;  %vm5493_vm3 = vmor %vm1624_vm15, %vm1625_vm2 }
 0x133   : > { %2881 = vst [vmem:[%s3999_s17 + $0x1b0] sm:$0xff] %v2753_v11  ;;  %v2754_v26 = vmul.f32 %v1617_v31, %v5228_v35  ;;  %v1621_v32 = vsub.f32 1.0, %v1620_v40  ;;  %v1635_v23 = vmul.f32 %v3341_v47, %v5409_v52  ;;  %vm1640_vm4 = vweird.f32 %v3341_v47  ;;  %v3343_v12 = vpop.eup %3342 }
 0x134   : > { %3346 = vpow2.f32 %v515_v27  ;;  %v519_v33 = vmul.f32 1.442695, %v329_v29  ;;  %v5488_v8 = vadd.f32 1.0, %v3343_v12  ;;  %v521_v24 = vmul.f32 1.442695, %v330_v28  ;;  %vm5502_vm6 = vmor %vm1639_vm0, %vm1640_vm4 }
 0x135   : > { %2882 = vst [vmem:[%s3999_s17 + $0x1b8] sm:$0xff] %v2754_v26  ;;  %v1622_v38 = vmul.f32 %v3339_v51, %v1621_v32  ;;  %v1636_v44 = vsub.f32 1.0, %v1635_v23  ;;  %3348 = vpow2.f32 %v517_v25  ;;  %v523_v30 = vmul.f32 1.442695, %v331_v41  ;;  %v5653_v23 = vld [vmem:[%s3825_s24 + $0x218] sm:$0xff] }
 0x136   : > { %3350 = vpow2.f32 %v519_v33  ;;  %v332_v14 = vsub.f32 0.0, %v5483_v36  ;;  %vm1629_vm10 = vcmp.eq.f32.partialorder %v1628_v6, 8.507059e+37  ;;  %vm5506_vm14 = vcmp.eq.f32.partialorder %v1643_v7, 8.507059e+37 }
 0x137   : > { %v1623_v54 = vadd.f32 %v3339_v51, %v1622_v38  ;;  %v1637_v5 = vmul.f32 %v3341_v47, %v1636_v44  ;;  %3352 = vrcp.f32 %v5488_v8  ;;  %v1646_v0 = vor.u32 1.1754944e-38, %v1645_v17 }
 0x138   : > { %v3345_v56 = vpop.eup %3344  ;;  %v525_v50 = vmul.f32 1.442695, %v332_v14  ;;  %3354 = vpow2.f32 %v521_v24  ;;  %v1658_v22 = vand.u32 2147483647, %v5488_v8  ;;  %v1660_v34 = vand.u32 2147483648, %v5488_v8 }
 0x139   : > { %v1627_v3 = vsel %vm5493_vm3, %v3339_v51, %v1623_v54  ;;  %v1638_v45 = vadd.f32 %v3341_v47, %v1637_v5  ;;  %v5512_v60 = vadd.f32 1.0, %v3345_v56  ;;  %3356 = vpow2.f32 %v523_v30 }
 0x13a   : > { %v3347_v59 = vpop.eup %3346  ;;  %v1632_v52 = vsel %vm1629_vm10, %v1631_v43, %v1627_v3  ;;  %vm1654_vm5 = vweird.f32 %v5488_v8  ;;  %vm5536_vm7 = vcmp.eq.f32.partialorder %v1658_v22, 8.507059e+37  ;;  %v1661_v20 = vor.u32 1.1754944e-38, %v1660_v34 }
 0x13b   : > { %v3349_v1 = vpop.eup %3348  ;;  %v2755_v16 = vmul.f32 %v1632_v52, %v5240_v58  ;;  %v1642_v55 = vsel %vm5502_vm6, %v3341_v47, %v1638_v45  ;;  %3358 = vrcp.f32 %v5512_v60  ;;  %v5523_v6 = vadd.f32 1.0, %v3347_v59 }
 0x13c   : > { %v3351_v39 = vpop.eup %3350  ;;  %v1647_v49 = vsel %vm5506_vm14, %v1646_v0, %v1642_v55  ;;  %3360 = vpow2.f32 %v525_v50  ;;  %v1673_v2 = vand.u32 2147483647, %v5512_v60  ;;  %v5531_v53 = vadd.f32 1.0, %v3349_v1 }
 0x13d   : > { %v3353_v43 = vpop.eup %3352  ;;  %2883 = vst [vmem:[%s3999_s17 + $0x1c0] sm:$0xff] %v2755_v16  ;;  %v2756_v58 = vmul.f32 %v1647_v49, %v5243_v9  ;;  %v5533_v13 = vadd.f32 1.0, %v3351_v39  ;;  %v1675_v51 = vand.u32 2147483648, %v5512_v60  ;;  %vm1669_vm9 = vweird.f32 %v5512_v60 }
 0x13e   : > { %v1650_v10 = vmul.f32 %v3353_v43, %v5488_v8  ;;  %v3355_v62 = vpop.eup %3354  ;;  %3362 = vrcp.f32 %v5523_v6  ;;  %v1690_v9 = vand.u32 2147483648, %v5523_v6  ;;  %v333_v17 = vsub.f32 0.0, %v5526_v18 }
 0x13f   : > { %2884 = vst [vmem:[%s3999_s17 + $0x1c8] sm:$0xff] %v2756_v58  ;;  %v3357_v63 = vpop.eup %3356  ;;  %vm1655_vm8 = vweird.f32 %v3353_v43  ;;  %v1688_v11 = vand.u32 2147483647, %v5523_v6  ;;  %3364 = vrcp.f32 %v5531_v53  ;;  %vm5548_vm11 = vcmp.eq.f32.partialorder %v1673_v2, 8.507059e+37 }
 0x140   : > { %v1651_v27 = vsub.f32 1.0, %v1650_v10  ;;  %v1703_v47 = vand.u32 2147483647, %v5531_v53  ;;  %v1705_v31 = vand.u32 2147483648, %v5531_v53  ;;  %3366 = vrcp.f32 %v5533_v13  ;;  %vm5559_vm13 = vmor %vm1654_vm5, %vm1655_vm8 }
 0x141   : > { %v3359_v4 = vpop.eup %3358  ;;  %v1676_v32 = vor.u32 1.1754944e-38, %v1675_v51  ;;  %vm1684_vm12 = vweird.f32 %v5523_v6  ;;  %v1691_v12 = vor.u32 1.1754944e-38, %v1690_v9  ;;  %vm1699_vm15 = vweird.f32 %v5531_v53 }
 0x142   : > { %v3361_v25 = vpop.eup %3360  ;;  %v1652_v29 = vmul.f32 %v3353_v43, %v1651_v27  ;;  %v1665_v26 = vmul.f32 %v3359_v4, %v5512_v60  ;;  %v1718_v33 = vand.u32 2147483647, %v5533_v13  ;;  %v1720_v28 = vand.u32 2147483648, %v5533_v13 }
 0x143   : > { %vm1670_vm0 = vweird.f32 %v3359_v4  ;;  %vm5566_vm1 = vcmp.eq.f32.partialorder %v1688_v11, 8.507059e+37  ;;  %v5570_v35 = vadd.f32 1.0, %v3355_v62  ;;  %vm5572_vm2 = vcmp.eq.f32.partialorder %v1703_v47, 8.507059e+37 }
 0x144   : > { %v1653_v41 = vadd.f32 %v3353_v43, %v1652_v29  ;;  %v1666_v38 = vsub.f32 1.0, %v1665_v26  ;;  %v3363_v8 = vpop.eup %3362  ;;  %v1706_v30 = vor.u32 1.1754944e-38, %v1705_v31  ;;  %vm1714_vm4 = vweird.f32 %v5533_v13  ;;  %vm5593_vm10 = vmor %vm1669_vm9, %vm1670_vm0 }
 0x145   : > { %v1721_v14 = vor.u32 1.1754944e-38, %v1720_v28  ;;  %v5577_v54 = vadd.f32 1.0, %v3357_v63  ;;  %v3365_v5 = vpop.eup %3364  ;;  %v1680_v42 = vmul.f32 %v3363_v8, %v5523_v6  ;;  %vm5582_vm3 = vcmp.eq.f32.partialorder %v1718_v33, 8.507059e+37 }
 0x146   : > { %v1657_v56 = vsel %vm5559_vm13, %v3353_v43, %v1653_v41  ;;  %v1667_v19 = vmul.f32 %v3359_v4, %v1666_v38  ;;  %v5586_v50 = vadd.f32 1.0, %v3361_v25  ;;  %v3367_v3 = vpop.eup %3366  ;;  %vm1685_vm6 = vweird.f32 %v3363_v8  ;;  %v5667_v38 = vld [vmem:[%s3825_s24 + $0x228] sm:$0xff] }
 0x147   : > { %v1662_v45 = vsel %vm5536_vm7, %v1661_v20, %v1657_v56  ;;  %v1695_v52 = vmul.f32 %v3365_v5, %v5531_v53  ;;  %3368 = vrcp.f32 %v5570_v35  ;;  %v1681_v1 = vsub.f32 1.0, %v1680_v42  ;;  %vm5611_vm7 = vmor %vm1684_vm12, %vm1685_vm6 }
 0x148   : > { %v2757_v22 = vmul.f32 %v1662_v45, %v5265_v15  ;;  %v1668_v34 = vadd.f32 %v3359_v4, %v1667_v19  ;;  %v1710_v16 = vmul.f32 %v3367_v3, %v5533_v13  ;;  %vm1700_vm14 = vweird.f32 %v3365_v5 }
 0x149   : > { %v1696_v55 = vsub.f32 1.0, %v1695_v52  ;;  %vm1715_vm5 = vweird.f32 %v3367_v3  ;;  %v1733_v60 = vand.u32 2147483647, %v5570_v35  ;;  %v1682_v49 = vmul.f32 %v3363_v8, %v1681_v1  ;;  %vm5620_vm9 = vmor %vm1699_vm15, %vm1700_vm14 }
 0x14a   : > { %2885 = vst [vmem:[%s3999_s17 + $0x1d0] sm:$0xff] %v2757_v22  ;;  %v1672_v39 = vsel %vm5593_vm10, %v3359_v4, %v1668_v34  ;;  %v1711_v43 = vsub.f32 1.0, %v1710_v16  ;;  %v1735_v58 = vand.u32 2147483648, %v5570_v35  ;;  %3370 = vrcp.f32 %v5577_v54  ;;  %v5697_v16 = vld [vmem:[%s3825_s24 + $0x240] sm:$0xff] }
 0x14b   : > { %v1677_v15 = vsel %vm5548_vm11, %v1676_v32, %v1672_v39  ;;  %v1697_v10 = vmul.f32 %v3365_v5, %v1696_v55  ;;  %v527_v7 = vmul.f32 1.442695, %v333_v17  ;;  %v1683_v51 = vadd.f32 %v3363_v8, %v1682_v49  ;;  %vm5628_vm11 = vmor %vm1714_vm4, %vm1715_vm5  ;;  %v5700_v55 = vld [vmem:[%s3825_s24 + $0x248] sm:$0xff] }
 0x14c   : > { %v2758_v20 = vmul.f32 %v1677_v15, %v5426_v37  ;;  %v1712_v6 = vmul.f32 %v3367_v3, %v1711_v43  ;;  %vm1729_vm8 = vweird.f32 %v5570_v35  ;;  %vm5632_vm12 = vcmp.eq.f32.partialorder %v1733_v60, 8.507059e+37 }
 0x14d   : > { %v3369_v9 = vpop.eup %3368  ;;  %v1698_v63 = vadd.f32 %v3365_v5, %v1697_v10  ;;  %v1736_v53 = vor.u32 1.1754944e-38, %v1735_v58  ;;  %v1748_v27 = vand.u32 2147483647, %v5577_v54  ;;  %v1687_v11 = vsel %vm5611_vm7, %v3363_v8, %v1683_v51 }
 0x14e   : > { %2886 = vst [vmem:[%s3999_s17 + $0x1d8] sm:$0xff] %v2758_v20  ;;  %v1713_v4 = vadd.f32 %v3367_v3, %v1712_v6  ;;  %v1725_v40 = vmul.f32 %v3369_v9, %v5570_v35  ;;  %v1750_v13 = vand.u32 2147483648, %v5577_v54  ;;  %v1692_v47 = vsel %vm5566_vm1, %v1691_v12, %v1687_v11  ;;  %v5689_v35 = vld [vmem:[%s3825_s24 + $0x238] sm:$0xff] }
 0x14f   : > { %v1702_v31 = vsel %vm5620_vm9, %v3365_v5, %v1698_v63  ;;  %vm1730_vm13 = vweird.f32 %v3369_v9  ;;  %vm1744_vm15 = vweird.f32 %v5577_v54  ;;  %v2759_v25 = vmul.f32 %v1692_v47, %v5429_v48  ;;  %v5664_v48 = vld [vmem:[%s3825_s24 + $0x220] sm:$0xff] }
 0x150   : > { %v1707_v29 = vsel %vm5572_vm2, %v1706_v30, %v1702_v31  ;;  %v1717_v26 = vsel %vm5628_vm11, %v3367_v3, %v1713_v4  ;;  %v1726_v32 = vsub.f32 1.0, %v1725_v40  ;;  %v3371_v12 = vpop.eup %3370  ;;  %vm5658_vm0 = vcmp.eq.f32.partialorder %v1748_v27, 8.507059e+37  ;;  %v5673_v30 = vld [vmem:[%s3825_s24 + $0x230] sm:$0xff]  ;;  %vm5679_vm1 = vmor %vm1729_vm8, %vm1730_vm13 }
 0x151   : > { %v2760_v33 = vmul.f32 %v1707_v29, %v5441_v61  ;;  %v1722_v28 = vsel %vm5582_vm3, %v1721_v14, %v1717_v26  ;;  %3372 = vrcp.f32 %v5586_v50  ;;  %2887 = vst [vmem:[%s3999_s17 + $0x1e0] sm:$0xff] %v2759_v25  ;;  %v1740_v61 = vmul.f32 %v3371_v12, %v5577_v54 }
 0x152   : > { %v2761_v44 = vmul.f32 %v1722_v28, %v5461_v57  ;;  %v1727_v8 = vmul.f32 %v3369_v9, %v1726_v32  ;;  %v1751_v24 = vor.u32 1.1754944e-38, %v1750_v13  ;;  %vm1745_vm2 = vweird.f32 %v3371_v12 }
 0x153   : > { %2888 = vst [vmem:[%s3999_s17 + $0x1e8] sm:$0xff] %v2760_v33  ;;  %vm1759_vm4 = vweird.f32 %v5586_v50  ;;  %3374 = vpow2.f32 %v527_v7  ;;  %v334_v57 = vsub.f32 0.0, %v5653_v23  ;;  %v1741_v56 = vsub.f32 1.0, %v1740_v61  ;;  %vm5707_vm3 = vmor %vm1744_vm15, %vm1745_vm2 }
 0x154   : > { %2889 = vst [vmem:[%s3999_s17 + $0x1f0] sm:$0xff] %v2761_v44  ;;  %v1728_v5 = vadd.f32 %v3369_v9, %v1727_v8  ;;  %v335_v19 = vsub.f32 0.0, %v5664_v48  ;;  %v336_v42 = vsub.f32 0.0, %v5667_v38  ;;  %v1763_v0 = vand.u32 2147483647, %v5586_v50 }
 0x155   : > { %v1765_v3 = vand.u32 2147483648, %v5586_v50  ;;  %v529_v45 = vmul.f32 1.442695, %v334_v57  ;;  %v337_v59 = vsub.f32 0.0, %v5673_v30  ;;  %v1742_v22 = vmul.f32 %v3371_v12, %v1741_v56 }
 0x156   : > { %v1732_v52 = vsel %vm5679_vm1, %v3369_v9, %v1728_v5  ;;  %v531_v34 = vmul.f32 1.442695, %v335_v19  ;;  %v533_v1 = vmul.f32 1.442695, %v336_v42  ;;  %v338_v58 = vsub.f32 0.0, %v5689_v35 }
 0x157   : > { %v3373_v60 = vpop.eup %3372  ;;  %v1737_v39 = vsel %vm5632_vm12, %v1736_v53, %v1732_v52  ;;  %3376 = vpow2.f32 %v529_v45  ;;  %v535_v43 = vmul.f32 1.442695, %v337_v59  ;;  %v1743_v2 = vadd.f32 %v3371_v12, %v1742_v22 }
 0x158   : > { %v2762_v15 = vmul.f32 %v1737_v39, %v5471_v46  ;;  %v1755_v10 = vmul.f32 %v3373_v60, %v5586_v50  ;;  %vm1760_vm10 = vweird.f32 %v3373_v60  ;;  %3378 = vpow2.f32 %v531_v34  ;;  %v5722_v46 = vld [vmem:[%s3825_s24 + $0x250] sm:$0xff] }
 0x159   : > { %v3375_v7 = vpop.eup %3374  ;;  %v537_v20 = vmul.f32 1.442695, %v338_v58  ;;  %v339_v54 = vsub.f32 0.0, %v5697_v16  ;;  %v340_v51 = vsub.f32 0.0, %v5700_v55  ;;  %v1747_v62 = vsel %vm5707_vm3, %v3371_v12, %v1743_v2  ;;  %vm5731_vm6 = vmor %vm1759_vm4, %vm1760_vm10  ;;  %v5746_v12 = vld [vmem:[%s3825_s24 + $0x258] sm:$0xff] }
 0x15a   : > { %2890 = vst [vmem:[%s3999_s17 + $0x1f8] sm:$0xff] %v2762_v15  ;;  %v1756_v6 = vsub.f32 1.0, %v1755_v10  ;;  %v5719_v9 = vadd.f32 1.0, %v3375_v7  ;;  %3380 = vpow2.f32 %v533_v1  ;;  %v1752_v63 = vsel %vm5658_vm0, %v1751_v24, %v1747_v62 }
 0x15b   : > { %3382 = vpow2.f32 %v535_v43  ;;  %v539_v17 = vmul.f32 1.442695, %v339_v54  ;;  %v541_v37 = vmul.f32 1.442695, %v340_v51  ;;  %v2763_v53 = vmul.f32 %v1752_v63, %v5474_v21 }
 0x15c   : > { %v1757_v27 = vmul.f32 %v3373_v60, %v1756_v6  ;;  %3384 = vrcp.f32 %v5719_v9  ;;  %v1766_v40 = vor.u32 1.1754944e-38, %v1765_v3  ;;  %v341_v13 = vsub.f32 0.0, %v5722_v46 }
 0x15d   : > { %v3377_v11 = vpop.eup %3376  ;;  %3386 = vpow2.f32 %v537_v20  ;;  %2891 = vst [vmem:[%s3999_s17 + $0x200] sm:$0xff] %v2763_v53  ;;  %vm1764_vm14 = vcmp.eq.f32.partialorder %v1763_v0, 8.507059e+37  ;;  %v1778_v25 = vand.u32 2147483647, %v5719_v9  ;;  %vm1774_vm5 = vweird.f32 %v5719_v9 }
 0x15e   : > { %v1758_v47 = vadd.f32 %v3373_v60, %v1757_v27  ;;  %v5737_v21 = vadd.f32 1.0, %v3377_v11  ;;  %3388 = vpow2.f32 %v539_v17  ;;  %v3379_v31 = vpop.eup %3378  ;;  %v543_v50 = vmul.f32 1.442695, %v341_v13 }
 0x15f   : > { %3390 = vpow2.f32 %v541_v37  ;;  %v1780_v32 = vand.u32 2147483648, %v5719_v9  ;;  %v5749_v44 = vadd.f32 1.0, %v3379_v31  ;;  %vm5758_vm7 = vcmp.eq.f32.partialorder %v1778_v25, 8.507059e+37 }
 0x160   : > { %v3381_v29 = vpop.eup %3380  ;;  %v1762_v26 = vsel %vm5731_vm6, %v3373_v60, %v1758_v47  ;;  %3392 = vrcp.f32 %v5737_v21  ;;  %v1793_v41 = vand.u32 2147483647, %v5737_v21  ;;  %v1795_v14 = vand.u32 2147483648, %v5737_v21 }
 0x161   : > { %v3383_v33 = vpop.eup %3382  ;;  %v1767_v28 = vsel %vm1764_vm14, %v1766_v40, %v1762_v26  ;;  %v5751_v8 = vadd.f32 1.0, %v3381_v29  ;;  %3394 = vpow2.f32 %v543_v50  ;;  %v342_v42 = vsub.f32 0.0, %v5746_v12 }
 0x162   : > { %v3385_v61 = vpop.eup %3384  ;;  %v2764_v24 = vmul.f32 %v1767_v28, %v5483_v36  ;;  %v5755_v57 = vadd.f32 1.0, %v3383_v33  ;;  %3396 = vrcp.f32 %v5749_v44  ;;  %v1781_v3 = vor.u32 1.1754944e-38, %v1780_v32 }
 0x163   : > { %v3387_v5 = vpop.eup %3386  ;;  %v1770_v56 = vmul.f32 %v3385_v61, %v5719_v9  ;;  %v1808_v36 = vand.u32 2147483647, %v5749_v44  ;;  %v1810_v45 = vand.u32 2147483648, %v5749_v44  ;;  %3398 = vrcp.f32 %v5751_v8 }
 0x164   : > { %v3389_v0 = vpop.eup %3388  ;;  %2892 = vst [vmem:[%s3999_s17 + $0x208] sm:$0xff] %v2764_v24  ;;  %vm1775_vm9 = vweird.f32 %v3385_v61  ;;  %v1823_v22 = vand.u32 2147483647, %v5751_v8  ;;  %v1825_v34 = vand.u32 2147483648, %v5751_v8  ;;  %vm1789_vm8 = vweird.f32 %v5737_v21 }
 0x165   : > { %v3391_v59 = vpop.eup %3390  ;;  %v1771_v52 = vsub.f32 1.0, %v1770_v56  ;;  %vm5771_vm11 = vcmp.eq.f32.partialorder %v1793_v41, 8.507059e+37  ;;  %v1796_v39 = vor.u32 1.1754944e-38, %v1795_v14  ;;  %3400 = vrcp.f32 %v5755_v57  ;;  %vm5783_vm15 = vmor %vm1774_vm5, %vm1775_vm9 }
 0x166   : > { %v3393_v1 = vpop.eup %3392  ;;  %vm1804_vm12 = vweird.f32 %v5749_v44  ;;  %vm1819_vm13 = vweird.f32 %v5751_v8  ;;  %vm5787_vm1 = vcmp.eq.f32.partialorder %v1808_v36, 8.507059e+37  ;;  %v1811_v10 = vor.u32 1.1754944e-38, %v1810_v45 }
 0x167   : > { %v1772_v49 = vmul.f32 %v3385_v61, %v1771_v52  ;;  %v1785_v43 = vmul.f32 %v3393_v1, %v5737_v21  ;;  %v5779_v58 = vpop.eup %3394  ;;  %vm1790_vm0 = vweird.f32 %v3393_v1  ;;  %vm1834_vm2 = vweird.f32 %v5755_v57 }
 0x168   : > { %v5792_v7 = vadd.f32 1.0, %v3387_v5  ;;  %v3397_v20 = vpop.eup %3396  ;;  %vm5794_vm4 = vcmp.eq.f32.partialorder %v1823_v22, 8.507059e+37  ;;  %v1826_v6 = vor.u32 1.1754944e-38, %v1825_v34  ;;  %v1838_v9 = vand.u32 2147483647, %v5755_v57  ;;  %vm5813_vm10 = vmor %vm1789_vm8, %vm1790_vm0 }
 0x169   : > { %v1773_v54 = vadd.f32 %v3385_v61, %v1772_v49  ;;  %v1786_v51 = vsub.f32 1.0, %v1785_v43  ;;  %v3399_v63 = vpop.eup %3398  ;;  %v1800_v17 = vmul.f32 %v3397_v20, %v5749_v44  ;;  %v1840_v37 = vand.u32 2147483648, %v5755_v57  ;;  %v5950_v44 = vld [vmem:[%s3825_s24 + $0x288] sm:$0xff] }
 0x16a   : > { %v5801_v53 = vadd.f32 1.0, %v3389_v0  ;;  %v5803_v27 = vadd.f32 1.0, %v3391_v59  ;;  %vm1805_vm3 = vweird.f32 %v3397_v20  ;;  %v1815_v40 = vmul.f32 %v3399_v63, %v5751_v8 }
 0x16b   : > { %v1777_v11 = vsel %vm5783_vm15, %v3385_v61, %v1773_v54  ;;  %v1787_v4 = vmul.f32 %v3393_v1, %v1786_v51  ;;  %v3401_v13 = vpop.eup %3400  ;;  %v1801_v25 = vsub.f32 1.0, %v1800_v17  ;;  %vm1820_vm6 = vweird.f32 %v3399_v63  ;;  %vm5828_vm5 = vmor %vm1804_vm12, %vm1805_vm3  ;;  %v5877_v54 = vld [vmem:[%s3825_s24 + $0x260] sm:$0xff] }
 0x16c   : > { %v1782_v47 = vsel %vm5758_vm7, %v1781_v3, %v1777_v11  ;;  %3402 = vrcp.f32 %v5792_v7  ;;  %v1816_v26 = vsub.f32 1.0, %v1815_v40  ;;  %v1830_v32 = vmul.f32 %v3401_v13, %v5755_v57  ;;  %vm5838_vm7 = vmor %vm1819_vm13, %vm1820_vm6 }
 0x16d   : > { %v2765_v50 = vmul.f32 %v1782_v47, %v5526_v18  ;;  %v1788_v29 = vadd.f32 %v3393_v1, %v1787_v4  ;;  %v1802_v33 = vmul.f32 %v3397_v20, %v1801_v25  ;;  %vm1835_vm14 = vweird.f32 %v3401_v13 }
 0x16e   : > { %v1853_v28 = vand.u32 2147483647, %v5792_v7  ;;  %v1855_v21 = vand.u32 2147483648, %v5792_v7  ;;  %v1817_v18 = vmul.f32 %v3399_v63, %v1816_v26  ;;  %v1831_v24 = vsub.f32 1.0, %v1830_v32  ;;  %v5922_v26 = vld [vmem:[%s3825_s24 + $0x268] sm:$0xff]  ;;  %v5925_v32 = vld [vmem:[%s3825_s24 + $0x270] sm:$0xff] }
 0x16f   : > { %2893 = vst [vmem:[%s3999_s17 + $0x210] sm:$0xff] %v2765_v50  ;;  %v1792_v41 = vsel %vm5813_vm10, %v3393_v1, %v1788_v29  ;;  %3404 = vrcp.f32 %v5801_v53  ;;  %v1803_v5 = vadd.f32 %v3397_v20, %v1802_v33  ;;  %vm5842_vm9 = vcmp.eq.f32.partialorder %v1838_v9, 8.507059e+37 }
 0x170   : > { %v1797_v14 = vsel %vm5771_vm11, %v1796_v39, %v1792_v41  ;;  %v1841_v19 = vor.u32 1.1754944e-38, %v1840_v37  ;;  %v1818_v3 = vadd.f32 %v3399_v63, %v1817_v18  ;;  %v1832_v36 = vmul.f32 %v3401_v13, %v1831_v24  ;;  %vm5853_vm11 = vmor %vm1834_vm2, %vm1835_vm14  ;;  %v5933_v41 = vld [vmem:[%s3825_s24 + $0x280] sm:$0xff] }
 0x171   : > { %v2766_v0 = vmul.f32 %v1797_v14, %v5653_v23  ;;  %vm1849_vm8 = vweird.f32 %v5792_v7  ;;  %v1807_v59 = vsel %vm5828_vm5, %v3397_v20, %v1803_v5  ;;  %vm5857_vm12 = vcmp.eq.f32.partialorder %v1853_v28, 8.507059e+37 }
 0x172   : > { %v3403_v45 = vpop.eup %3402  ;;  %v1856_v23 = vor.u32 1.1754944e-38, %v1855_v21  ;;  %3406 = vrcp.f32 %v5803_v27  ;;  %v1812_v22 = vsel %vm5787_vm1, %v1811_v10, %v1807_v59  ;;  %v1822_v57 = vsel %vm5838_vm7, %v3399_v63, %v1818_v3  ;;  %v5930_v21 = vld [vmem:[%s3825_s24 + $0x278] sm:$0xff] }
 0x173   : > { %2894 = vst [vmem:[%s3999_s17 + $0x218] sm:$0xff] %v2766_v0  ;;  %v1833_v34 = vadd.f32 %v3401_v13, %v1832_v36  ;;  %v1845_v1 = vmul.f32 %v3403_v45, %v5792_v7  ;;  %v2767_v60 = vmul.f32 %v1812_v22, %v5664_v48  ;;  %v1827_v39 = vsel %vm5794_vm4, %v1826_v6, %v1822_v57 }
 0x174   : > { %v1868_v49 = vand.u32 2147483647, %v5801_v53  ;;  %v1870_v43 = vand.u32 2147483648, %v5801_v53  ;;  %v2768_v2 = vmul.f32 %v1827_v39, %v5667_v38  ;;  %vm1850_vm13 = vweird.f32 %v3403_v45 }
 0x175   : > { %v3405_v15 = vpop.eup %3404  ;;  %v1837_v10 = vsel %vm5853_vm11, %v3401_v13, %v1833_v34  ;;  %v1846_v20 = vsub.f32 1.0, %v1845_v1  ;;  %2895 = vst [vmem:[%s3999_s17 + $0x220] sm:$0xff] %v2767_v60  ;;  %vm1864_vm15 = vweird.f32 %v5801_v53  ;;  %v1883_v6 = vand.u32 2147483647, %v5803_v27  ;;  %vm5890_vm1 = vmor %vm1849_vm8, %vm1850_vm13  ;;  %v5964_v1 = vld [vmem:[%s3825_s24 + $0x290] sm:$0xff]  ;;  %v5967_v60 = vld [vmem:[%s3825_s24 + $0x298] sm:$0xff] }
 0x176   : > { %v1842_v48 = vsel %vm5842_vm9, %v1841_v19, %v1837_v10  ;;  %v1860_v51 = vmul.f32 %v3405_v15, %v5801_v53  ;;  %vm1865_vm0 = vweird.f32 %v3405_v15  ;;  %2896 = vst [vmem:[%s3999_s17 + $0x228] sm:$0xff] %v2768_v2  ;;  %v1885_v9 = vand.u32 2147483648, %v5803_v27 }
 0x177   : > { %v2769_v38 = vmul.f32 %v1842_v48, %v5673_v30  ;;  %v1847_v62 = vmul.f32 %v3403_v45, %v1846_v20  ;;  %v5895_v11 = vadd.f32 1.0, %v5779_v58  ;;  %v545_v4 = vmul.f32 1.442695, %v342_v42  ;;  %vm5913_vm10 = vmor %vm1864_vm15, %vm1865_vm0 }
 0x178   : > { %v3407_v63 = vpop.eup %3406  ;;  %v1861_v37 = vsub.f32 1.0, %v1860_v51  ;;  %v343_v30 = vsub.f32 0.0, %v5877_v54  ;;  %vm5901_vm2 = vcmp.eq.f32.partialorder %v1868_v49, 8.507059e+37  ;;  %v1871_v7 = vor.u32 1.1754944e-38, %v1870_v43 }
 0x179   : > { %2897 = vst [vmem:[%s3999_s17 + $0x230] sm:$0xff] %v2769_v38  ;;  %v1848_v40 = vadd.f32 %v3403_v45, %v1847_v62  ;;  %v1875_v47 = vmul.f32 %v3407_v63, %v5803_v27  ;;  %vm1879_vm4 = vweird.f32 %v5803_v27  ;;  %vm1880_vm3 = vweird.f32 %v3407_v63  ;;  %v5980_v62 = vld [vmem:[%s3825_s24 + $0x2a0] sm:$0xff] }
 0x17a   : > { %v1862_v31 = vmul.f32 %v3405_v15, %v1861_v37  ;;  %3408 = vrcp.f32 %v5895_v11  ;;  %vm5917_vm6 = vcmp.eq.f32.partialorder %v1883_v6, 8.507059e+37  ;;  %v1886_v29 = vor.u32 1.1754944e-38, %v1885_v9  ;;  %vm5943_vm5 = vmor %vm1879_vm4, %vm1880_vm3 }
 0x17b   : > { %v1852_v42 = vsel %vm5890_vm1, %v3403_v45, %v1848_v40  ;;  %v1876_v25 = vsub.f32 1.0, %v1875_v47  ;;  %3410 = vpow2.f32 %v545_v4  ;;  %v547_v28 = vmul.f32 1.442695, %v343_v30 }
 0x17c   : > { %v1857_v33 = vsel %vm5857_vm12, %v1856_v23, %v1852_v42  ;;  %v1863_v53 = vadd.f32 %v3405_v15, %v1862_v31  ;;  %vm1894_vm14 = vweird.f32 %v5895_v11  ;;  %v1898_v24 = vand.u32 2147483647, %v5895_v11 }
 0x17d   : > { %v2770_v61 = vmul.f32 %v1857_v33, %v5689_v35  ;;  %v1877_v18 = vmul.f32 %v3407_v63, %v1876_v25  ;;  %3412 = vpow2.f32 %v547_v28  ;;  %v344_v56 = vsub.f32 0.0, %v5922_v26 }
 0x17e   : > { %v1867_v14 = vsel %vm5913_vm10, %v3405_v15, %v1863_v53  ;;  %v345_v35 = vsub.f32 0.0, %v5925_v32  ;;  %v346_v27 = vsub.f32 0.0, %v5930_v21  ;;  %v347_v3 = vsub.f32 0.0, %v5933_v41 }
 0x17f   : > { %2898 = vst [vmem:[%s3999_s17 + $0x238] sm:$0xff] %v2770_v61  ;;  %v1872_v19 = vsel %vm5901_vm2, %v1871_v7, %v1867_v14  ;;  %v1878_v0 = vadd.f32 %v3407_v63, %v1877_v18  ;;  %v1900_v59 = vand.u32 2147483648, %v5895_v11  ;;  %v549_v8 = vmul.f32 1.442695, %v344_v56 }
 0x180   : > { %v3409_v36 = vpop.eup %3408  ;;  %v2771_v45 = vmul.f32 %v1872_v19, %v5697_v16  ;;  %v551_v52 = vmul.f32 1.442695, %v345_v35  ;;  %v553_v57 = vmul.f32 1.442695, %v346_v27  ;;  %v348_v34 = vsub.f32 0.0, %v5950_v44 }
 0x181   : > { %v1882_v23 = vsel %vm5943_vm5, %v3407_v63, %v1878_v0  ;;  %v1890_v22 = vmul.f32 %v3409_v36, %v5895_v11  ;;  %v3411_v39 = vpop.eup %3410  ;;  %vm1895_vm7 = vweird.f32 %v3409_v36  ;;  %3414 = vpow2.f32 %v549_v8 }
 0x182   : > { %2899 = vst [vmem:[%s3999_s17 + $0x240] sm:$0xff] %v2771_v45  ;;  %v1887_v16 = vsel %vm5917_vm6, %v1886_v29, %v1882_v23  ;;  %v555_v49 = vmul.f32 1.442695, %v347_v3  ;;  %v5973_v2 = vadd.f32 1.0, %v3411_v39  ;;  %3416 = vpow2.f32 %v551_v52  ;;  %vm5985_vm9 = vmor %vm1894_vm14, %vm1895_vm7 }
 0x183   : > { %v2772_v43 = vmul.f32 %v1887_v16, %v5700_v55  ;;  %v1891_v15 = vsub.f32 1.0, %v1890_v22  ;;  %v3413_v10 = vpop.eup %3412  ;;  %3418 = vpow2.f32 %v553_v57  ;;  %v349_v20 = vsub.f32 0.0, %v5964_v1  ;;  %v6151_v55 = vld [vmem:[%s3825_s24 + $0x2b0] sm:$0xff] }
 0x184   : > { %v350_v48 = vsub.f32 0.0, %v5967_v60  ;;  %3420 = vrcp.f32 %v5973_v2  ;;  %v557_v38 = vmul.f32 1.442695, %v348_v34  ;;  %v1901_v6 = vor.u32 1.1754944e-38, %v1900_v59 }
 0x185   : > { %2900 = vst [vmem:[%s3999_s17 + $0x248] sm:$0xff] %v2772_v43  ;;  %v1892_v51 = vmul.f32 %v3409_v36, %v1891_v15  ;;  %v1913_v9 = vand.u32 2147483647, %v5973_v2  ;;  %v5990_v63 = vadd.f32 1.0, %v3413_v10  ;;  %v559_v17 = vmul.f32 1.442695, %v349_v20 }
 0x186   : > { %vm1899_vm8 = vcmp.eq.f32.partialorder %v1898_v24, 8.507059e+37  ;;  %v1915_v4 = vand.u32 2147483648, %v5973_v2  ;;  %3422 = vpow2.f32 %v555_v49  ;;  %vm1909_vm11 = vweird.f32 %v5973_v2 }
 0x187   : > { %v1893_v37 = vadd.f32 %v3409_v36, %v1892_v51  ;;  %v3415_v30 = vpop.eup %3414  ;;  %3424 = vrcp.f32 %v5990_v63  ;;  %v561_v11 = vmul.f32 1.442695, %v350_v48  ;;  %v351_v40 = vsub.f32 0.0, %v5980_v62 }
 0x188   : > { %v3417_v13 = vpop.eup %3416  ;;  %v1928_v47 = vand.u32 2147483647, %v5990_v63  ;;  %v5999_v31 = vadd.f32 1.0, %v3415_v30  ;;  %3426 = vpow2.f32 %v557_v38  ;;  %vm6001_vm12 = vcmp.eq.f32.partialorder %v1913_v9, 8.507059e+37 }
 0x189   : > { %v1897_v7 = vsel %vm5985_vm9, %v3409_v36, %v1893_v37  ;;  %v3419_v42 = vpop.eup %3418  ;;  %v6005_v50 = vadd.f32 1.0, %v3417_v13  ;;  %3428 = vpow2.f32 %v559_v17  ;;  %v1916_v53 = vor.u32 1.1754944e-38, %v1915_v4 }
 0x18a   : > { %v1902_v58 = vsel %vm1899_vm8, %v1901_v6, %v1897_v7  ;;  %v3421_v29 = vpop.eup %3420  ;;  %v1930_v28 = vand.u32 2147483648, %v5990_v63  ;;  %3430 = vrcp.f32 %v5999_v31  ;;  %v1943_v18 = vand.u32 2147483647, %v5999_v31 }
 0x18b   : > { %v2773_v33 = vmul.f32 %v1902_v58, %v5722_v46  ;;  %v1905_v61 = vmul.f32 %v3421_v29, %v5973_v2  ;;  %v1945_v24 = vand.u32 2147483648, %v5999_v31  ;;  %3432 = vpow2.f32 %v561_v11 }
 0x18c   : > { %v3423_v14 = vpop.eup %3422  ;;  %vm1924_vm13 = vweird.f32 %v5990_v63  ;;  %vm6015_vm15 = vcmp.eq.f32.partialorder %v1928_v47, 8.507059e+37  ;;  %3434 = vrcp.f32 %v6005_v50  ;;  %v1960_v46 = vand.u32 2147483648, %v6005_v50  ;;  %v6183_v47 = vld [vmem:[%s3825_s24 + $0x2c8] sm:$0xff] }
 0x18d   : > { %2901 = vst [vmem:[%s3999_s17 + $0x250] sm:$0xff] %v2773_v33  ;;  %v3425_v56 = vpop.eup %3424  ;;  %v1906_v35 = vsub.f32 1.0, %v1905_v61  ;;  %vm1910_vm0 = vweird.f32 %v3421_v29  ;;  %v1958_v19 = vand.u32 2147483647, %v6005_v50  ;;  %v6022_v0 = vadd.f32 1.0, %v3419_v42 }
 0x18e   : > { %v3427_v27 = vpop.eup %3426  ;;  %v1920_v3 = vmul.f32 %v3425_v56, %v5990_v63  ;;  %v1931_v36 = vor.u32 1.1754944e-38, %v1930_v28  ;;  %vm1939_vm1 = vweird.f32 %v5999_v31  ;;  %vm1954_vm2 = vweird.f32 %v6005_v50  ;;  %vm6036_vm3 = vmor %vm1909_vm11, %vm1910_vm0 }
 0x18f   : > { %v6027_v45 = vpop.eup %3428  ;;  %v1907_v59 = vmul.f32 %v3421_v29, %v1906_v35  ;;  %vm6029_vm4 = vcmp.eq.f32.partialorder %v1943_v18, 8.507059e+37  ;;  %v1946_v52 = vor.u32 1.1754944e-38, %v1945_v24  ;;  %3436 = vrcp.f32 %v6022_v0 }
 0x190   : > { %v3431_v23 = vpop.eup %3430  ;;  %v1921_v57 = vsub.f32 1.0, %v1920_v3  ;;  %vm1925_vm10 = vweird.f32 %v3425_v56  ;;  %v1961_v34 = vor.u32 1.1754944e-38, %v1960_v46  ;;  %v6040_v39 = vadd.f32 1.0, %v3423_v14 }
 0x191   : > { %v6042_v16 = vpop.eup %3432  ;;  %v1908_v49 = vadd.f32 %v3421_v29, %v1907_v59  ;;  %v1935_v43 = vmul.f32 %v3431_v23, %v5999_v31  ;;  %vm6045_vm6 = vcmp.eq.f32.partialorder %v1958_v19, 8.507059e+37  ;;  %vm1969_vm14 = vweird.f32 %v6022_v0  ;;  %vm6060_vm5 = vmor %vm1924_vm13, %vm1925_vm10 }
 0x192   : > { %v6050_v2 = vadd.f32 1.0, %v3427_v27  ;;  %v3435_v10 = vpop.eup %3434  ;;  %v1922_v20 = vmul.f32 %v3425_v56, %v1921_v57  ;;  %v1973_v48 = vand.u32 2147483647, %v6022_v0  ;;  %v1975_v51 = vand.u32 2147483648, %v6022_v0 }
 0x193   : > { %3438 = vrcp.f32 %v6040_v39  ;;  %v1912_v38 = vsel %vm6036_vm3, %v3421_v29, %v1908_v49  ;;  %v1936_v6 = vsub.f32 1.0, %v1935_v43  ;;  %vm1940_vm7 = vweird.f32 %v3431_v23 }
 0x194   : > { %v1950_v9 = vmul.f32 %v3435_v10, %v6005_v50  ;;  %v1917_v17 = vsel %vm6001_vm12, %v1916_v53, %v1912_v38  ;;  %v1923_v37 = vadd.f32 %v3425_v56, %v1922_v20  ;;  %vm1955_vm9 = vweird.f32 %v3435_v10  ;;  %vm6074_vm8 = vmor %vm1939_vm1, %vm1940_vm7  ;;  %v6148_v38 = vld [vmem:[%s3825_s24 + $0x2a8] sm:$0xff] }
 0x195   : > { %v1988_v4 = vand.u32 2147483647, %v6040_v39  ;;  %v3437_v30 = vpop.eup %3436  ;;  %v2774_v11 = vmul.f32 %v1917_v17, %v5746_v12  ;;  %v1937_v63 = vmul.f32 %v3431_v23, %v1936_v6  ;;  %3440 = vrcp.f32 %v6050_v2  ;;  %vm6091_vm12 = vmor %vm1954_vm2, %vm1955_vm9 }
 0x196   : > { %v1951_v13 = vsub.f32 1.0, %v1950_v9  ;;  %v1927_v7 = vsel %vm6060_vm5, %v3425_v56, %v1923_v37  ;;  %v1965_v42 = vmul.f32 %v3437_v30, %v6022_v0  ;;  %vm6079_vm11 = vcmp.eq.f32.partialorder %v1973_v48, 8.507059e+37 }
 0x197   : > { %v1990_v12 = vand.u32 2147483648, %v6040_v39  ;;  %2902 = vst [vmem:[%s3999_s17 + $0x258] sm:$0xff] %v2774_v11  ;;  %v1932_v25 = vsel %vm6015_vm15, %v1931_v36, %v1927_v7  ;;  %v1938_v29 = vadd.f32 %v3431_v23, %v1937_v63  ;;  %v1976_v31 = vor.u32 1.1754944e-38, %v1975_v51  ;;  %v6173_v11 = vld [vmem:[%s3825_s24 + $0x2c0] sm:$0xff] }
 0x198   : > { %v1952_v33 = vmul.f32 %v3435_v10, %v1951_v13  ;;  %v2775_v28 = vmul.f32 %v1932_v25, %v5877_v54  ;;  %v1966_v18 = vsub.f32 1.0, %v1965_v42  ;;  %vm1970_vm13 = vweird.f32 %v3437_v30 }
 0x199   : > { %v3439_v53 = vpop.eup %3438  ;;  %vm1984_vm0 = vweird.f32 %v6040_v39  ;;  %v1942_v24 = vsel %vm6074_vm8, %v3431_v23, %v1938_v29  ;;  %vm6099_vm15 = vcmp.eq.f32.partialorder %v1988_v4, 8.507059e+37  ;;  %v1991_v56 = vor.u32 1.1754944e-38, %v1990_v12  ;;  %vm6111_vm2 = vmor %vm1969_vm14, %vm1970_vm13 }
 0x19a   : > { %v1953_v14 = vadd.f32 %v3435_v10, %v1952_v33  ;;  %v1980_v5 = vmul.f32 %v3439_v53, %v6040_v39  ;;  %2903 = vst [vmem:[%s3999_s17 + $0x260] sm:$0xff] %v2775_v28  ;;  %v1947_v54 = vsel %vm6029_vm4, %v1946_v52, %v1942_v24  ;;  %v1967_v50 = vmul.f32 %v3437_v30, %v1966_v18  ;;  %v6193_v28 = vld [vmem:[%s3825_s24 + $0x2d8] sm:$0xff] }
 0x19b   : > { %vm1985_vm1 = vweird.f32 %v3439_v53  ;;  %v3441_v35 = vpop.eup %3440  ;;  %v2776_v19 = vmul.f32 %v1947_v54, %v5922_v26  ;;  %v6116_v59 = vadd.f32 1.0, %v6027_v45  ;;  %vm1999_vm4 = vweird.f32 %v6050_v2 }
 0x19c   : > { %v1957_v27 = vsel %vm6091_vm12, %v3435_v10, %v1953_v14  ;;  %v1981_v36 = vsub.f32 1.0, %v1980_v5  ;;  %v1968_v52 = vadd.f32 %v3437_v30, %v1967_v50  ;;  %v1995_v26 = vmul.f32 %v3441_v35, %v6050_v2  ;;  %vm6131_vm3 = vmor %vm1984_vm0, %vm1985_vm1 }
 0x19d   : > { %v1962_v8 = vsel %vm6045_vm6, %v1961_v34, %v1957_v27  ;;  %2904 = vst [vmem:[%s3999_s17 + $0x268] sm:$0xff] %v2776_v19  ;;  %v2005_v22 = vand.u32 2147483648, %v6050_v2  ;;  %3442 = vrcp.f32 %v6116_v59  ;;  %vm2000_vm10 = vweird.f32 %v3441_v35 }
 0x19e   : > { %v2777_v0 = vmul.f32 %v1962_v8, %v5925_v32  ;;  %v1982_v23 = vmul.f32 %v3439_v53, %v1981_v36  ;;  %v1972_v45 = vsel %vm6111_vm2, %v3437_v30, %v1968_v52  ;;  %v1996_v34 = vsub.f32 1.0, %v1995_v26  ;;  %vm6157_vm6 = vmor %vm1999_vm4, %vm2000_vm10  ;;  %v6170_v30 = vld [vmem:[%s3825_s24 + $0x2b8] sm:$0xff] }
 0x19f   : > { %v2003_v32 = vand.u32 2147483647, %v6050_v2  ;;  %v1977_v49 = vsel %vm6079_vm11, %v1976_v31, %v1972_v45  ;;  %v2018_v15 = vand.u32 2147483647, %v6116_v59  ;;  %v6141_v10 = vadd.f32 1.0, %v6042_v16 }
 0x1a0   : > { %2905 = vst [vmem:[%s3999_s17 + $0x270] sm:$0xff] %v2777_v0  ;;  %v1983_v43 = vadd.f32 %v3439_v53, %v1982_v23  ;;  %v2778_v39 = vmul.f32 %v1977_v49, %v5930_v21  ;;  %v1997_v20 = vmul.f32 %v3441_v35, %v1996_v34  ;;  %v2020_v48 = vand.u32 2147483648, %v6116_v59  ;;  %v6220_v0 = vld [vmem:[%s3825_s24 + $0x2e0] sm:$0xff] }
 0x1a1   : > { %v563_v51 = vmul.f32 1.442695, %v351_v40  ;;  %v2006_v21 = vor.u32 1.1754944e-38, %v2005_v22  ;;  %3444 = vrcp.f32 %v6141_v10  ;;  %vm2004_vm14 = vcmp.eq.f32.partialorder %v2003_v32, 8.507059e+37  ;;  %v6231_v32 = vld [vmem:[%s3825_s24 + $0x2e8] sm:$0xff] }
 0x1a2   : > { %v1987_v6 = vsel %vm6131_vm3, %v3439_v53, %v1983_v43  ;;  %2906 = vst [vmem:[%s3999_s17 + $0x278] sm:$0xff] %v2778_v39  ;;  %v1998_v9 = vadd.f32 %v3441_v35, %v1997_v20  ;;  %vm2014_vm5 = vweird.f32 %v6116_v59  ;;  %v352_v37 = vsub.f32 0.0, %v6148_v38  ;;  %v6190_v53 = vld [vmem:[%s3825_s24 + $0x2d0] sm:$0xff] }
 0x1a3   : > { %v1992_v40 = vsel %vm6099_vm15, %v1991_v56, %v1987_v6  ;;  %v3443_v17 = vpop.eup %3442  ;;  %3446 = vpow2.f32 %v563_v51  ;;  %v353_v4 = vsub.f32 0.0, %v6151_v55  ;;  %vm6178_vm7 = vcmp.eq.f32.partialorder %v2018_v15, 8.507059e+37 }
 0x1a4   : > { %v2779_v2 = vmul.f32 %v1992_v40, %v5933_v41  ;;  %v2002_v63 = vsel %vm6157_vm6, %v3441_v35, %v1998_v9  ;;  %v2010_v13 = vmul.f32 %v3443_v17, %v6116_v59  ;;  %v2021_v41 = vor.u32 1.1754944e-38, %v2020_v48 }
 0x1a5   : > { %v2007_v42 = vsel %vm2004_vm14, %v2006_v21, %v2002_v63  ;;  %vm2015_vm9 = vweird.f32 %v3443_v17  ;;  %v565_v58 = vmul.f32 1.442695, %v352_v37  ;;  %v567_v12 = vmul.f32 1.442695, %v353_v4 }
 0x1a6   : > { %2907 = vst [vmem:[%s3999_s17 + $0x280] sm:$0xff] %v2779_v2  ;;  %v2780_v25 = vmul.f32 %v2007_v42, %v5950_v44  ;;  %v2011_v29 = vsub.f32 1.0, %v2010_v13  ;;  %v354_v33 = vsub.f32 0.0, %v6170_v30  ;;  %v355_v31 = vsub.f32 0.0, %v6173_v11  ;;  %vm6204_vm11 = vmor %vm2014_vm5, %vm2015_vm9 }
 0x1a7   : > { %v3445_v61 = vpop.eup %3444  ;;  %vm2029_vm8 = vweird.f32 %v6141_v10  ;;  %v2033_v18 = vand.u32 2147483647, %v6141_v10  ;;  %3448 = vpow2.f32 %v565_v58  ;;  %v356_v24 = vsub.f32 0.0, %v6183_v47 }
 0x1a8   : > { %2908 = vst [vmem:[%s3999_s17 + $0x288] sm:$0xff] %v2780_v25  ;;  %v2012_v14 = vmul.f32 %v3443_v17, %v2011_v29  ;;  %v2025_v44 = vmul.f32 %v3445_v61, %v6141_v10  ;;  %v2035_v5 = vand.u32 2147483648, %v6141_v10  ;;  %3450 = vpow2.f32 %v567_v12 }
 0x1a9   : > { %v3447_v46 = vpop.eup %3446  ;;  %v569_v50 = vmul.f32 1.442695, %v354_v33  ;;  %v571_v56 = vmul.f32 1.442695, %v355_v31  ;;  %v357_v35 = vsub.f32 0.0, %v6190_v53  ;;  %v358_v19 = vsub.f32 0.0, %v6193_v28 }
 0x1aa   : > { %v2013_v27 = vadd.f32 %v3443_v17, %v2012_v14  ;;  %v2026_v3 = vsub.f32 1.0, %v2025_v44  ;;  %vm2030_vm12 = vweird.f32 %v3445_v61  ;;  %v6210_v36 = vadd.f32 1.0, %v3447_v46 }
 0x1ab   : > { %3452 = vpow2.f32 %v569_v50  ;;  %v573_v8 = vmul.f32 1.442695, %v356_v24  ;;  %vm6214_vm13 = vcmp.eq.f32.partialorder %v2033_v18, 8.507059e+37  ;;  %vm6226_vm0 = vmor %vm2029_vm8, %vm2030_vm12  ;;  %v2036_v57 = vor.u32 1.1754944e-38, %v2035_v5 }
 0x1ac   : > { %v2017_v59 = vsel %vm6204_vm11, %v3443_v17, %v2013_v27  ;;  %v2027_v52 = vmul.f32 %v3445_v61, %v2026_v3  ;;  %3454 = vrcp.f32 %v6210_v36  ;;  %v575_v34 = vmul.f32 1.442695, %v357_v35 }
 0x1ad   : > { %v3449_v23 = vpop.eup %3448  ;;  %v2022_v22 = vsel %vm6178_vm7, %v2021_v41, %v2017_v59  ;;  %3456 = vpow2.f32 %v571_v56  ;;  %v577_v20 = vmul.f32 1.442695, %v358_v19  ;;  %v2048_v48 = vand.u32 2147483647, %v6210_v36 }
 0x1ae   : > { %v3451_v49 = vpop.eup %3450  ;;  %v2781_v43 = vmul.f32 %v2022_v22, %v5964_v1  ;;  %v2028_v15 = vadd.f32 %v3445_v61, %v2027_v52  ;;  %v6234_v39 = vadd.f32 1.0, %v3449_v23  ;;  %3458 = vpow2.f32 %v573_v8 }
 0x1af   : > { %v6237_v51 = vadd.f32 1.0, %v3451_v49  ;;  %v359_v10 = vsub.f32 0.0, %v6220_v0  ;;  %v2050_v16 = vand.u32 2147483648, %v6210_v36  ;;  %v360_v1 = vsub.f32 0.0, %v6231_v32 }
 0x1b0   : > { %2909 = vst [vmem:[%s3999_s17 + $0x290] sm:$0xff] %v2781_v43  ;;  %v2032_v6 = vsel %vm6226_vm0, %v3445_v61, %v2028_v15  ;;  %3460 = vrcp.f32 %v6234_v39  ;;  %v2063_v9 = vand.u32 2147483647, %v6234_v39  ;;  %v2065_v17 = vand.u32 2147483648, %v6234_v39  ;;  %v6405_v15 = vld [vmem:[%s3825_s24 + $0x308] sm:$0xff] }
 0x1b1   : > { %v3453_v21 = vpop.eup %3452  ;;  %v2037_v40 = vsel %vm6214_vm13, %v2036_v57, %v2032_v6  ;;  %3462 = vrcp.f32 %v6237_v51  ;;  %vm2044_vm15 = vweird.f32 %v6210_v36  ;;  %v2078_v4 = vand.u32 2147483647, %v6237_v51 }
 0x1b2   : > { %v3455_v2 = vpop.eup %3454  ;;  %v2782_v37 = vmul.f32 %v2037_v40, %v5967_v60  ;;  %3464 = vpow2.f32 %v575_v34  ;;  %vm6255_vm1 = vcmp.eq.f32.partialorder %v2048_v48, 8.507059e+37  ;;  %v2080_v41 = vand.u32 2147483648, %v6237_v51 }
 0x1b3   : > { %v3457_v63 = vpop.eup %3456  ;;  %v2040_v13 = vmul.f32 %v3455_v2, %v6210_v36  ;;  %v6260_v42 = vadd.f32 1.0, %v3453_v21  ;;  %v2051_v58 = vor.u32 1.1754944e-38, %v2050_v16  ;;  %vm2059_vm2 = vweird.f32 %v6234_v39 }
 0x1b4   : > { %2910 = vst [vmem:[%s3999_s17 + $0x298] sm:$0xff] %v2782_v37  ;;  %vm2074_vm4 = vweird.f32 %v6237_v51  ;;  %v6265_v60 = vadd.f32 1.0, %v3457_v63  ;;  %v3459_v12 = vpop.eup %3458  ;;  %vm2045_vm3 = vweird.f32 %v3455_v2  ;;  %vm6267_vm10 = vcmp.eq.f32.partialorder %v2063_v9, 8.507059e+37 }
 0x1b5   : > { %v2041_v25 = vsub.f32 1.0, %v2040_v13  ;;  %v2066_v33 = vor.u32 1.1754944e-38, %v2065_v17  ;;  %3466 = vrcp.f32 %v6260_v42  ;;  %vm6272_vm6 = vcmp.eq.f32.partialorder %v2078_v4, 8.507059e+37  ;;  %vm6283_vm14 = vmor %vm2044_vm15, %vm2045_vm3 }
 0x1b6   : > { %v3461_v31 = vpop.eup %3460  ;;  %v2093_v18 = vand.u32 2147483647, %v6260_v42  ;;  %v2095_v24 = vand.u32 2147483648, %v6260_v42  ;;  %3468 = vrcp.f32 %v6265_v60  ;;  %v2081_v46 = vor.u32 1.1754944e-38, %v2080_v41 }
 0x1b7   : > { %v3463_v14 = vpop.eup %3462  ;;  %v2042_v44 = vmul.f32 %v3455_v2, %v2041_v25  ;;  %v2055_v5 = vmul.f32 %v3461_v31, %v6234_v39  ;;  %3470 = vpow2.f32 %v577_v20  ;;  %vm2089_vm5 = vweird.f32 %v6260_v42 }
 0x1b8   : > { %v3465_v54 = vpop.eup %3464  ;;  %v2070_v56 = vmul.f32 %v3463_v14, %v6237_v51  ;;  %vm2104_vm7 = vweird.f32 %v6265_v60  ;;  %v2108_v35 = vand.u32 2147483647, %v6265_v60  ;;  %vm2060_vm9 = vweird.f32 %v3461_v31 }
 0x1b9   : > { %v2043_v19 = vadd.f32 %v3455_v2, %v2042_v44  ;;  %v2056_v27 = vsub.f32 1.0, %v2055_v5  ;;  %v6291_v3 = vadd.f32 1.0, %v3459_v12  ;;  %vm2075_vm8 = vweird.f32 %v3463_v14  ;;  %vm6306_vm12 = vmor %vm2059_vm2, %vm2060_vm9 }
 0x1ba   : > { %v2071_v8 = vsub.f32 1.0, %v2070_v56  ;;  %vm6293_vm11 = vcmp.eq.f32.partialorder %v2093_v18, 8.507059e+37  ;;  %v2096_v59 = vor.u32 1.1754944e-38, %v2095_v24  ;;  %v6300_v22 = vadd.f32 1.0, %v3465_v54  ;;  %vm6319_vm0 = vmor %vm2074_vm4, %vm2075_vm8 }
 0x1bb   : > { %v3467_v52 = vpop.eup %3466  ;;  %v2047_v26 = vsel %vm6283_vm14, %v3455_v2, %v2043_v19  ;;  %v2057_v23 = vmul.f32 %v3461_v31, %v2056_v27  ;;  %3472 = vrcp.f32 %v6291_v3  ;;  %vm6311_vm13 = vcmp.eq.f32.partialorder %v2108_v35, 8.507059e+37  ;;  %v6377_v35 = vld [vmem:[%s3825_s24 + $0x2f0] sm:$0xff]  ;;  %v6380_v19 = vld [vmem:[%s3825_s24 + $0x2f8] sm:$0xff]  ;;  %v6383_v27 = vld [vmem:[%s3825_s24 + $0x300] sm:$0xff] }
 0x1bc   : > { %v3469_v45 = vpop.eup %3468  ;;  %v2052_v57 = vsel %vm6255_vm1, %v2051_v58, %v2047_v26  ;;  %v2072_v49 = vmul.f32 %v3463_v14, %v2071_v8  ;;  %v2085_v43 = vmul.f32 %v3467_v52, %v6260_v42  ;;  %v2110_v21 = vand.u32 2147483648, %v6265_v60 }
 0x1bd   : > { %v3471_v20 = vpop.eup %3470  ;;  %v2783_v48 = vmul.f32 %v2052_v57, %v5980_v62  ;;  %v2058_v6 = vadd.f32 %v3461_v31, %v2057_v23  ;;  %v2100_v16 = vmul.f32 %v3469_v45, %v6265_v60  ;;  %vm2090_vm15 = vweird.f32 %v3467_v52 }
 0x1be   : > { %v2073_v40 = vadd.f32 %v3463_v14, %v2072_v49  ;;  %v2086_v9 = vsub.f32 1.0, %v2085_v43  ;;  %v579_v17 = vmul.f32 1.442695, %v359_v10  ;;  %vm2105_vm1 = vweird.f32 %v3469_v45  ;;  %vm6342_vm2 = vmor %vm2089_vm5, %vm2090_vm15 }
 0x1bf   : > { %2911 = vst [vmem:[%s3999_s17 + $0x2a0] sm:$0xff] %v2783_v48  ;;  %v2062_v62 = vsel %vm6306_vm12, %v3461_v31, %v2058_v6  ;;  %v2101_v2 = vsub.f32 1.0, %v2100_v16  ;;  %3474 = vrcp.f32 %v6300_v22  ;;  %v581_v63 = vmul.f32 1.442695, %v360_v1  ;;  %vm6350_vm4 = vmor %vm2104_vm7, %vm2105_vm1 }
 0x1c0   : > { %v2067_v51 = vsel %vm6267_vm10, %v2066_v33, %v2062_v62  ;;  %v2077_v37 = vsel %vm6319_vm0, %v3463_v14, %v2073_v40  ;;  %v2087_v4 = vmul.f32 %v3467_v52, %v2086_v9  ;;  %v2123_v12 = vand.u32 2147483647, %v6291_v3 }
 0x1c1   : > { %v3473_v10 = vpop.eup %3472  ;;  %v2784_v13 = vmul.f32 %v2067_v51, %v6148_v38  ;;  %v2082_v7 = vsel %vm6272_vm6, %v2081_v46, %v2077_v37  ;;  %v2102_v58 = vmul.f32 %v3469_v45, %v2101_v2  ;;  %v2111_v38 = vor.u32 1.1754944e-38, %v2110_v21  ;;  %v6431_v37 = vld [vmem:[%s3825_s24 + $0x310] sm:$0xff] }
 0x1c2   : > { %v2785_v25 = vmul.f32 %v2082_v7, %v6151_v55  ;;  %v2088_v29 = vadd.f32 %v3467_v52, %v2087_v4  ;;  %v2115_v33 = vmul.f32 %v3473_v10, %v6291_v3  ;;  %vm2119_vm3 = vweird.f32 %v6291_v3  ;;  %v6434_v4 = vld [vmem:[%s3825_s24 + $0x318] sm:$0xff] }
 0x1c3   : > { %2912 = vst [vmem:[%s3999_s17 + $0x2a8] sm:$0xff] %v2784_v13  ;;  %v2103_v42 = vadd.f32 %v3469_v45, %v2102_v58  ;;  %vm2120_vm10 = vweird.f32 %v3473_v10  ;;  %v2125_v31 = vand.u32 2147483648, %v6291_v3  ;;  %v6361_v61 = vadd.f32 1.0, %v3471_v20 }
 0x1c4   : > { %2913 = vst [vmem:[%s3999_s17 + $0x2b0] sm:$0xff] %v2785_v25  ;;  %v2092_v55 = vsel %vm6342_vm2, %v3467_v52, %v2088_v29  ;;  %v2116_v60 = vsub.f32 1.0, %v2115_v33  ;;  %3476 = vpow2.f32 %v579_v17  ;;  %vm6367_vm6 = vcmp.eq.f32.partialorder %v2123_v12, 8.507059e+37  ;;  %vm6389_vm14 = vmor %vm2119_vm3, %vm2120_vm10  ;;  %v6442_v25 = vld [vmem:[%s3825_s24 + $0x320] sm:$0xff] }
 0x1c5   : > { %v3475_v18 = vpop.eup %3474  ;;  %v2097_v24 = vsel %vm6293_vm11, %v2096_v59, %v2092_v55  ;;  %v2107_v14 = vsel %vm6350_vm4, %v3469_v45, %v2103_v42  ;;  %v2140_v5 = vand.u32 2147483648, %v6300_v22  ;;  %v2126_v36 = vor.u32 1.1754944e-38, %v2125_v31 }
 0x1c6   : > { %v2786_v46 = vmul.f32 %v2097_v24, %v6170_v30  ;;  %v2112_v54 = vsel %vm6311_vm13, %v2111_v38, %v2107_v14  ;;  %v2117_v50 = vmul.f32 %v3473_v10, %v2116_v60  ;;  %v2130_v56 = vmul.f32 %v3475_v18, %v6300_v22 }
 0x1c7   : > { %v2787_v8 = vmul.f32 %v2112_v54, %v6173_v11  ;;  %vm2134_vm5 = vweird.f32 %v6300_v22  ;;  %3478 = vrcp.f32 %v6361_v61  ;;  %vm2135_vm7 = vweird.f32 %v3475_v18 }
 0x1c8   : > { %2914 = vst [vmem:[%s3999_s17 + $0x2b8] sm:$0xff] %v2786_v46  ;;  %v2118_v59 = vadd.f32 %v3473_v10, %v2117_v50  ;;  %v2131_v52 = vsub.f32 1.0, %v2130_v56  ;;  %v2138_v26 = vand.u32 2147483647, %v6300_v22  ;;  %3480 = vpow2.f32 %v581_v63  ;;  %vm6411_vm9 = vmor %vm2134_vm5, %vm2135_vm7 }
 0x1c9   : > { %2915 = vst [vmem:[%s3999_s17 + $0x2c0] sm:$0xff] %v2787_v8  ;;  %v361_v11 = vsub.f32 0.0, %v6377_v35  ;;  %v362_v3 = vsub.f32 0.0, %v6380_v19  ;;  %v363_v23 = vsub.f32 0.0, %v6383_v27  ;;  %v2141_v49 = vor.u32 1.1754944e-38, %v2140_v5 }
 0x1ca   : > { %v3477_v45 = vpop.eup %3476  ;;  %v2122_v57 = vsel %vm6389_vm14, %v3473_v10, %v2118_v59  ;;  %v2132_v34 = vmul.f32 %v3475_v18, %v2131_v52  ;;  %v2153_v43 = vand.u32 2147483647, %v6361_v61  ;;  %vm2139_vm8 = vcmp.eq.f32.partialorder %v2138_v26, 8.507059e+37 }
 0x1cb   : > { %v2127_v20 = vsel %vm6367_vm6, %v2126_v36, %v2122_v57  ;;  %v6415_v6 = vadd.f32 1.0, %v3477_v45  ;;  %v583_v39 = vmul.f32 1.442695, %v361_v11  ;;  %v585_v16 = vmul.f32 1.442695, %v362_v3 }
 0x1cc   : > { %v2788_v21 = vmul.f32 %v2127_v20, %v6183_v47  ;;  %v2133_v40 = vadd.f32 %v3475_v18, %v2132_v34  ;;  %vm2149_vm11 = vweird.f32 %v6361_v61  ;;  %v2155_v17 = vand.u32 2147483648, %v6361_v61 }
 0x1cd   : > { %v3479_v9 = vpop.eup %3478  ;;  %3482 = vrcp.f32 %v6415_v6  ;;  %v587_v22 = vmul.f32 1.442695, %v363_v23  ;;  %v364_v62 = vsub.f32 0.0, %v6405_v15  ;;  %vm6426_vm12 = vcmp.eq.f32.partialorder %v2153_v43, 8.507059e+37  ;;  %v6571_v43 = vld [vmem:[%s3825_s24 + $0x328] sm:$0xff] }
 0x1ce   : > { %2916 = vst [vmem:[%s3999_s17 + $0x2c8] sm:$0xff] %v2788_v21  ;;  %v2137_v2 = vsel %vm6411_vm9, %v3475_v18, %v2133_v40  ;;  %v2145_v51 = vmul.f32 %v3479_v9, %v6361_v61  ;;  %3484 = vpow2.f32 %v583_v39  ;;  %v3481_v63 = vpop.eup %3480  ;;  %v2168_v13 = vand.u32 2147483647, %v6415_v6 }
 0x1cf   : > { %v2142_v10 = vsel %vm2139_vm8, %v2141_v49, %v2137_v2  ;;  %v2170_v7 = vand.u32 2147483648, %v6415_v6  ;;  %3486 = vpow2.f32 %v585_v16  ;;  %vm2150_vm13 = vweird.f32 %v3479_v9 }
 0x1d0   : > { %v2789_v41 = vmul.f32 %v2142_v10, %v6190_v53  ;;  %v2146_v58 = vsub.f32 1.0, %v2145_v51  ;;  %v6439_v12 = vadd.f32 1.0, %v3481_v63  ;;  %3488 = vpow2.f32 %v587_v22  ;;  %vm6451_vm15 = vmor %vm2149_vm11, %vm2150_vm13 }
 0x1d1   : > { %v589_v29 = vmul.f32 1.442695, %v364_v62  ;;  %v365_v1 = vsub.f32 0.0, %v6431_v37  ;;  %v366_v38 = vsub.f32 0.0, %v6434_v4  ;;  %v2156_v42 = vor.u32 1.1754944e-38, %v2155_v17 }
 0x1d2   : > { %2917 = vst [vmem:[%s3999_s17 + $0x2d0] sm:$0xff] %v2789_v41  ;;  %v2147_v33 = vmul.f32 %v3479_v9, %v2146_v58  ;;  %vm2164_vm0 = vweird.f32 %v6415_v6  ;;  %3490 = vrcp.f32 %v6439_v12  ;;  %vm6455_vm1 = vcmp.eq.f32.partialorder %v2168_v13, 8.507059e+37  ;;  %v6607_v13 = vld [vmem:[%s3825_s24 + $0x330] sm:$0xff] }
 0x1d3   : > { %v3483_v53 = vpop.eup %3482  ;;  %3492 = vpow2.f32 %v589_v29  ;;  %v591_v60 = vmul.f32 1.442695, %v365_v1  ;;  %v367_v18 = vsub.f32 0.0, %v6442_v25  ;;  %v2171_v5 = vor.u32 1.1754944e-38, %v2170_v7 }
 0x1d4   : > { %v3485_v24 = vpop.eup %3484  ;;  %v2148_v14 = vadd.f32 %v3479_v9, %v2147_v33  ;;  %v2160_v44 = vmul.f32 %v3483_v53, %v6415_v6  ;;  %v2183_v46 = vand.u32 2147483647, %v6439_v12  ;;  %v2185_v54 = vand.u32 2147483648, %v6439_v12 }
 0x1d5   : > { %v3487_v61 = vpop.eup %3486  ;;  %v6463_v50 = vadd.f32 1.0, %v3485_v24  ;;  %3494 = vpow2.f32 %v591_v60  ;;  %v593_v56 = vmul.f32 1.442695, %v366_v38  ;;  %vm2165_vm2 = vweird.f32 %v3483_v53 }
 0x1d6   : > { %v2152_v8 = vsel %vm6451_vm15, %v3479_v9, %v2148_v14  ;;  %v2161_v30 = vsub.f32 1.0, %v2160_v44  ;;  %v6467_v36 = vadd.f32 1.0, %v3487_v61  ;;  %v3489_v59 = vpop.eup %3488  ;;  %vm2179_vm4 = vweird.f32 %v6439_v12  ;;  %vm6478_vm3 = vmor %vm2164_vm0, %vm2165_vm2 }
 0x1d7   : > { %v2157_v52 = vsel %vm6426_vm12, %v2156_v42, %v2152_v8  ;;  %3496 = vrcp.f32 %v6463_v50  ;;  %v595_v26 = vmul.f32 1.442695, %v367_v18  ;;  %v2198_v45 = vand.u32 2147483647, %v6463_v50 }
 0x1d8   : > { %v3491_v11 = vpop.eup %3490  ;;  %v2790_v3 = vmul.f32 %v2157_v52, %v6193_v28  ;;  %v2162_v23 = vmul.f32 %v3483_v53, %v2161_v30  ;;  %3498 = vrcp.f32 %v6467_v36  ;;  %vm6483_vm10 = vcmp.eq.f32.partialorder %v2183_v46, 8.507059e+37 }
 0x1d9   : > { %v3493_v57 = vpop.eup %3492  ;;  %v2175_v49 = vmul.f32 %v3491_v11, %v6439_v12  ;;  %v2186_v20 = vor.u32 1.1754944e-38, %v2185_v54  ;;  %v2200_v28 = vand.u32 2147483648, %v6463_v50  ;;  %vm2194_vm6 = vweird.f32 %v6463_v50  ;;  %v6647_v54 = vld [vmem:[%s3825_s24 + $0x350] sm:$0xff] }
 0x1da   : > { %2918 = vst [vmem:[%s3999_s17 + $0x2d8] sm:$0xff] %v2790_v3  ;;  %v2163_v48 = vadd.f32 %v3483_v53, %v2162_v23  ;;  %v2213_v39 = vand.u32 2147483647, %v6467_v36  ;;  %3500 = vpow2.f32 %v593_v56  ;;  %vm2180_vm14 = vweird.f32 %v3491_v11 }
 0x1db   : > { %v3495_v6 = vpop.eup %3494  ;;  %v2176_v16 = vsub.f32 1.0, %v2175_v49  ;;  %v2215_v21 = vand.u32 2147483648, %v6467_v36  ;;  %v6492_v40 = vadd.f32 1.0, %v3489_v59  ;;  %vm6496_vm5 = vcmp.eq.f32.partialorder %v2198_v45, 8.507059e+37  ;;  %vm6510_vm9 = vmor %vm2179_vm4, %vm2180_vm14 }
 0x1dc   : > { %v2167_v9 = vsel %vm6478_vm3, %v3483_v53, %v2163_v48  ;;  %vm2209_vm7 = vweird.f32 %v6467_v36  ;;  %v6501_v22 = vadd.f32 1.0, %v3493_v57  ;;  %3502 = vpow2.f32 %v595_v26 }
 0x1dd   : > { %v3497_v62 = vpop.eup %3496  ;;  %v2172_v2 = vsel %vm6455_vm1, %v2171_v5, %v2167_v9  ;;  %v2177_v51 = vmul.f32 %v3491_v11, %v2176_v16  ;;  %v2201_v47 = vor.u32 1.1754944e-38, %v2200_v28  ;;  %3504 = vrcp.f32 %v6492_v40 }
 0x1de   : > { %v3499_v63 = vpop.eup %3498  ;;  %v2791_v10 = vmul.f32 %v2172_v2, %v6220_v0  ;;  %v2190_v7 = vmul.f32 %v3497_v62, %v6463_v50  ;;  %vm6515_vm8 = vcmp.eq.f32.partialorder %v2213_v39, 8.507059e+37  ;;  %v6519_v58 = vadd.f32 1.0, %v3495_v6 }
 0x1df   : > { %v2178_v29 = vadd.f32 %v3491_v11, %v2177_v51  ;;  %v2205_v1 = vmul.f32 %v3499_v63, %v6467_v36  ;;  %v2216_v38 = vor.u32 1.1754944e-38, %v2215_v21  ;;  %v2228_v0 = vand.u32 2147483647, %v6492_v40 }
 0x1e0   : > { %v3501_v33 = vpop.eup %3500  ;;  %2919 = vst [vmem:[%s3999_s17 + $0x2e0] sm:$0xff] %v2791_v10  ;;  %v2191_v12 = vsub.f32 1.0, %v2190_v7  ;;  %vm2195_vm11 = vweird.f32 %v3497_v62  ;;  %v2230_v42 = vand.u32 2147483648, %v6492_v40  ;;  %3506 = vrcp.f32 %v6501_v22 }
 0x1e1   : > { %v2182_v53 = vsel %vm6510_vm9, %v3491_v11, %v2178_v29  ;;  %v2206_v31 = vsub.f32 1.0, %v2205_v1  ;;  %vm2210_vm12 = vweird.f32 %v3499_v63  ;;  %v2243_v55 = vand.u32 2147483647, %v6501_v22  ;;  %vm6536_vm13 = vmor %vm2194_vm6, %vm2195_vm11 }
 0x1e2   : > { %v3503_v60 = vpop.eup %3502  ;;  %v2187_v18 = vsel %vm6483_vm10, %v2186_v20, %v2182_v53  ;;  %v2192_v24 = vmul.f32 %v3497_v62, %v2191_v12  ;;  %v2245_v14 = vand.u32 2147483648, %v6501_v22  ;;  %3508 = vrcp.f32 %v6519_v58  ;;  %vm6547_vm1 = vmor %vm2209_vm7, %vm2210_vm12 }
 0x1e3   : > { %v3505_v44 = vpop.eup %3504  ;;  %v2792_v5 = vmul.f32 %v2187_v18, %v6231_v32  ;;  %v2207_v61 = vmul.f32 %v3499_v63, %v2206_v31  ;;  %vm2224_vm0 = vweird.f32 %v6492_v40  ;;  %vm6541_vm15 = vcmp.eq.f32.partialorder %v2228_v0, 8.507059e+37 }
 0x1e4   : > { %v2193_v56 = vadd.f32 %v3497_v62, %v2192_v24  ;;  %v2220_v32 = vmul.f32 %v3505_v44, %v6492_v40  ;;  %v2231_v50 = vor.u32 1.1754944e-38, %v2230_v42  ;;  %vm2239_vm2 = vweird.f32 %v6501_v22 }
 0x1e5   : > { %2920 = vst [vmem:[%s3999_s17 + $0x2e8] sm:$0xff] %v2792_v5  ;;  %v2208_v30 = vadd.f32 %v3499_v63, %v2207_v61  ;;  %vm2225_vm4 = vweird.f32 %v3505_v44  ;;  %vm6554_vm3 = vcmp.eq.f32.partialorder %v2243_v55, 8.507059e+37  ;;  %v2246_v52 = vor.u32 1.1754944e-38, %v2245_v14  ;;  %v6644_v61 = vld [vmem:[%s3825_s24 + $0x348] sm:$0xff] }
 0x1e6   : > { %vm2254_vm10 = vweird.f32 %v6519_v58  ;;  %v3507_v36 = vpop.eup %3506  ;;  %v2197_v26 = vsel %vm6536_vm13, %v3497_v62, %v2193_v56  ;;  %v2221_v11 = vsub.f32 1.0, %v2220_v32  ;;  %v2258_v3 = vand.u32 2147483647, %v6519_v58  ;;  %vm6582_vm6 = vmor %vm2224_vm0, %vm2225_vm4 }
 0x1e7   : > { %v6562_v23 = vadd.f32 1.0, %v3501_v33  ;;  %v2202_v45 = vsel %vm6496_vm5, %v2201_v47, %v2197_v26  ;;  %v2212_v57 = vsel %vm6547_vm1, %v3499_v63, %v2208_v30  ;;  %v2235_v34 = vmul.f32 %v3507_v36, %v6501_v22  ;;  %v6613_v22 = vld [vmem:[%s3825_s24 + $0x338] sm:$0xff] }
 0x1e8   : > { %v2260_v49 = vand.u32 2147483648, %v6519_v58  ;;  %v3509_v20 = vpop.eup %3508  ;;  %v2793_v28 = vmul.f32 %v2202_v45, %v6377_v35  ;;  %v2217_v48 = vsel %vm6515_vm8, %v2216_v38, %v2212_v57  ;;  %v2222_v39 = vmul.f32 %v3505_v44, %v2221_v11  ;;  %v6616_v38 = vld [vmem:[%s3825_s24 + $0x340] sm:$0xff] }
 0x1e9   : > { %v6576_v6 = vadd.f32 1.0, %v3503_v60  ;;  %v2794_v16 = vmul.f32 %v2217_v48, %v6380_v19  ;;  %v2236_v9 = vsub.f32 1.0, %v2235_v34  ;;  %vm2240_vm14 = vweird.f32 %v3507_v36 }
 0x1ea   : > { %v2250_v17 = vmul.f32 %v3509_v20, %v6519_v58  ;;  %2921 = vst [vmem:[%s3999_s17 + $0x2f0] sm:$0xff] %v2793_v28  ;;  %v2223_v35 = vadd.f32 %v3505_v44, %v2222_v39  ;;  %vm6588_vm5 = vcmp.eq.f32.partialorder %v2258_v3, 8.507059e+37  ;;  %3510 = vrcp.f32 %v6562_v23  ;;  %vm6600_vm9 = vmor %vm2239_vm2, %vm2240_vm14 }
 0x1eb   : > { %v368_v19 = vsub.f32 0.0, %v6571_v43  ;;  %2922 = vst [vmem:[%s3999_s17 + $0x2f8] sm:$0xff] %v2794_v16  ;;  %v2237_v40 = vmul.f32 %v3507_v36, %v2236_v9  ;;  %vm2255_vm7 = vweird.f32 %v3509_v20  ;;  %v2275_v51 = vand.u32 2147483648, %v6562_v23  ;;  %v6677_v9 = vld [vmem:[%s3825_s24 + $0x368] sm:$0xff] }
 0x1ec   : > { %v2251_v2 = vsub.f32 1.0, %v2250_v17  ;;  %v2227_v47 = vsel %vm6582_vm6, %v3505_v44, %v2223_v35  ;;  %v2261_v10 = vor.u32 1.1754944e-38, %v2260_v49  ;;  %vm2269_vm8 = vweird.f32 %v6562_v23  ;;  %vm6622_vm11 = vmor %vm2254_vm10, %vm2255_vm7 }
 0x1ed   : > { %3512 = vrcp.f32 %v6576_v6  ;;  %v2232_v7 = vsel %vm6541_vm15, %v2231_v50, %v2227_v47  ;;  %v2238_v41 = vadd.f32 %v3507_v36, %v2237_v40  ;;  %v2273_v1 = vand.u32 2147483647, %v6562_v23  ;;  %v6691_v40 = vld [vmem:[%s3825_s24 + $0x370] sm:$0xff] }
 0x1ee   : > { %v2252_v29 = vmul.f32 %v3509_v20, %v2251_v2  ;;  %v2795_v0 = vmul.f32 %v2232_v7, %v6383_v27  ;;  %v6626_v12 = vor.u32 1.1754944e-38, %v2275_v51  ;;  %vm2284_vm12 = vweird.f32 %v6576_v6 }
 0x1ef   : > { %v2288_v42 = vand.u32 2147483647, %v6576_v6  ;;  %v2242_v53 = vsel %vm6600_vm9, %v3507_v36, %v2238_v41  ;;  %v597_v27 = vmul.f32 1.442695, %v368_v19  ;;  %v369_v55 = vsub.f32 0.0, %v6607_v13  ;;  %v6658_v36 = vld [vmem:[%s3825_s24 + $0x360] sm:$0xff] }
 0x1f0   : > { %v2253_v31 = vadd.f32 %v3509_v20, %v2252_v29  ;;  %v3511_v58 = vpop.eup %3510  ;;  %2923 = vst [vmem:[%s3999_s17 + $0x300] sm:$0xff] %v2795_v0  ;;  %v2247_v60 = vsel %vm6554_vm3, %v2246_v52, %v2242_v53  ;;  %v2290_v18 = vand.u32 2147483648, %v6576_v6  ;;  %v370_v24 = vsub.f32 0.0, %v6613_v22  ;;  %v6707_v0 = vld [vmem:[%s3825_s24 + $0x378] sm:$0xff] }
 0x1f1   : > { %v371_v14 = vsub.f32 0.0, %v6616_v38  ;;  %v2796_v44 = vmul.f32 %v2247_v60, %v6405_v15  ;;  %v2265_v46 = vmul.f32 %v3511_v58, %v6562_v23  ;;  %vm2270_vm13 = vweird.f32 %v3511_v58  ;;  %v6652_v15 = vld [vmem:[%s3825_s24 + $0x358] sm:$0xff] }
 0x1f2   : > { %v2257_v5 = vsel %vm6622_vm11, %v3509_v20, %v2253_v31  ;;  %3514 = vpow2.f32 %v597_v27  ;;  %v599_v32 = vmul.f32 1.442695, %v369_v55  ;;  %v601_v50 = vmul.f32 1.442695, %v370_v24  ;;  %vm6667_vm15 = vmor %vm2269_vm8, %vm2270_vm13 }
 0x1f3   : > { %v3513_v56 = vpop.eup %3512  ;;  %v2262_v8 = vsel %vm6588_vm5, %v2261_v10, %v2257_v5  ;;  %2924 = vst [vmem:[%s3999_s17 + $0x308] sm:$0xff] %v2796_v44  ;;  %v2266_v59 = vsub.f32 1.0, %v2265_v46  ;;  %v603_v26 = vmul.f32 1.442695, %v371_v14  ;;  %v372_v11 = vsub.f32 0.0, %v6644_v61 }
 0x1f4   : > { %v2797_v30 = vmul.f32 %v2262_v8, %v6431_v37  ;;  %v2280_v52 = vmul.f32 %v3513_v56, %v6576_v6  ;;  %vm2285_vm0 = vweird.f32 %v3513_v56  ;;  %3516 = vpow2.f32 %v599_v32 }
 0x1f5   : > { %v373_v3 = vsub.f32 0.0, %v6647_v54  ;;  %v2267_v45 = vmul.f32 %v3511_v58, %v2266_v59  ;;  %3518 = vpow2.f32 %v601_v50  ;;  %v374_v34 = vsub.f32 0.0, %v6652_v15  ;;  %vm6682_vm2 = vmor %vm2284_vm12, %vm2285_vm0 }
 0x1f6   : > { %2925 = vst [vmem:[%s3999_s17 + $0x310] sm:$0xff] %v2797_v30  ;;  %v2281_v57 = vsub.f32 1.0, %v2280_v52  ;;  %3520 = vpow2.f32 %v603_v26  ;;  %v605_v49 = vmul.f32 1.442695, %v372_v11  ;;  %v375_v28 = vsub.f32 0.0, %v6658_v36 }
 0x1f7   : > { %v607_v20 = vmul.f32 1.442695, %v373_v3  ;;  %v2268_v48 = vadd.f32 %v3511_v58, %v2267_v45  ;;  %vm6672_vm1 = vcmp.eq.f32.partialorder %v2273_v1, 8.507059e+37  ;;  %v609_v21 = vmul.f32 1.442695, %v374_v34 }
 0x1f8   : > { %v2282_v16 = vmul.f32 %v3513_v56, %v2281_v57  ;;  %v3515_v23 = vpop.eup %3514  ;;  %vm6686_vm4 = vcmp.eq.f32.partialorder %v2288_v42, 8.507059e+37  ;;  %v2291_v62 = vor.u32 1.1754944e-38, %v2290_v18  ;;  %3522 = vpow2.f32 %v605_v49 }
 0x1f9   : > { %v611_v19 = vmul.f32 1.442695, %v375_v28  ;;  %v2272_v2 = vsel %vm6667_vm15, %v3511_v58, %v2268_v48  ;;  %v6695_v47 = vadd.f32 1.0, %v3515_v23  ;;  %3524 = vpow2.f32 %v607_v20 }
 0x1fa   : > { %v2283_v51 = vadd.f32 %v3513_v56, %v2282_v16  ;;  %v3517_v6 = vpop.eup %3516  ;;  %v2277_v63 = vsel %vm6672_vm1, %v6626_v12, %v2272_v2  ;;  %3526 = vpow2.f32 %v609_v21  ;;  %v376_v10 = vsub.f32 0.0, %v6677_v9 }
 0x1fb   : > { %v3519_v7 = vpop.eup %3518  ;;  %v2798_v41 = vmul.f32 %v2277_v63, %v6434_v4  ;;  %3528 = vrcp.f32 %v6695_v47  ;;  %v377_v1 = vsub.f32 0.0, %v6691_v40  ;;  %v2303_v42 = vand.u32 2147483647, %v6695_v47 }
 0x1fc   : > { %v2287_v29 = vsel %vm6682_vm2, %v3513_v56, %v2283_v51  ;;  %v3521_v33 = vpop.eup %3520  ;;  %v2305_v53 = vand.u32 2147483648, %v6695_v47  ;;  %v6713_v31 = vadd.f32 1.0, %v3517_v6  ;;  %v6717_v27 = vadd.f32 1.0, %v3519_v7 }
 0x1fd   : > { %v2292_v12 = vsel %vm6686_vm4, %v2291_v62, %v2287_v29  ;;  %2926 = vst [vmem:[%s3999_s17 + $0x318] sm:$0xff] %v2798_v41  ;;  %v6719_v55 = vadd.f32 1.0, %v3521_v33  ;;  %3530 = vpow2.f32 %v611_v19  ;;  %v613_v60 = vmul.f32 1.442695, %v376_v10 }
 0x1fe   : > { %v2799_v4 = vmul.f32 %v2292_v12, %v6442_v25  ;;  %v3523_v58 = vpop.eup %3522  ;;  %3532 = vrcp.f32 %v6713_v31  ;;  %v378_v18 = vsub.f32 0.0, %v6707_v0  ;;  %v2318_v14 = vand.u32 2147483647, %v6713_v31 }
 0x1ff   : > { %v3525_v24 = vpop.eup %3524  ;;  %v2320_v44 = vand.u32 2147483648, %v6713_v31  ;;  %3534 = vrcp.f32 %v6717_v27  ;;  %v6727_v25 = vmul.f32 1.442695, %v377_v1  ;;  %vm2299_vm3 = vweird.f32 %v6695_v47 }
 0x200   : > { %2927 = vst [vmem:[%s3999_s17 + $0x320] sm:$0xff] %v2799_v4  ;;  %v3527_v5 = vpop.eup %3526  ;;  %v2333_v46 = vand.u32 2147483647, %v6717_v27  ;;  %v2335_v56 = vand.u32 2147483648, %v6717_v27  ;;  %3536 = vrcp.f32 %v6719_v55  ;;  %vm6733_vm10 = vcmp.eq.f32.partialorder %v2303_v42, 8.507059e+37 }
 0x201   : > { %v3529_v8 = vpop.eup %3528  ;;  %v2306_v50 = vor.u32 1.1754944e-38, %v2305_v53  ;;  %v2348_v30 = vand.u32 2147483647, %v6719_v55  ;;  %v2350_v59 = vand.u32 2147483648, %v6719_v55  ;;  %vm2314_vm6 = vweird.f32 %v6713_v31 }
 0x202   : > { %v2295_v52 = vmul.f32 %v3529_v8, %v6695_v47  ;;  %vm2329_vm14 = vweird.f32 %v6717_v27  ;;  %vm2344_vm5 = vweird.f32 %v6719_v55  ;;  %vm2300_vm7 = vweird.f32 %v3529_v8 }
 0x203   : > { %v3531_v26 = vpop.eup %3530  ;;  %vm6743_vm9 = vcmp.eq.f32.partialorder %v2318_v14, 8.507059e+37  ;;  %v2321_v3 = vor.u32 1.1754944e-38, %v2320_v44  ;;  %v6747_v45 = vadd.f32 1.0, %v3523_v58  ;;  %vm6749_vm8 = vcmp.eq.f32.partialorder %v2333_v46, 8.507059e+37  ;;  %vm6770_vm12 = vmor %vm2299_vm3, %vm2300_vm7 }
 0x204   : > { %v3533_v57 = vpop.eup %3532  ;;  %v2296_v34 = vsub.f32 1.0, %v2295_v52  ;;  %v2336_v49 = vor.u32 1.1754944e-38, %v2335_v56  ;;  %v2351_v20 = vor.u32 1.1754944e-38, %v2350_v59  ;;  %v6753_v28 = vadd.f32 1.0, %v3525_v24 }
 0x205   : > { %v3535_v48 = vpop.eup %3534  ;;  %v2310_v39 = vmul.f32 %v3533_v57, %v6713_v31  ;;  %vm6756_vm11 = vcmp.eq.f32.partialorder %v2348_v30, 8.507059e+37  ;;  %3538 = vrcp.f32 %v6747_v45  ;;  %v6761_v21 = vadd.f32 1.0, %v3527_v5  ;;  %v6905_v5 = vld [vmem:[%s3825_s24 + $0x3a0] sm:$0xff] }
 0x206   : > { %v6763_v23 = vadd.f32 1.0, %v3531_v26  ;;  %v3537_v17 = vpop.eup %3536  ;;  %v2297_v35 = vmul.f32 %v3529_v8, %v2296_v34  ;;  %v2325_v62 = vmul.f32 %v3535_v48, %v6717_v27  ;;  %v2363_v19 = vand.u32 2147483647, %v6747_v45 }
 0x207   : > { %3540 = vpow2.f32 %v613_v60  ;;  %v2311_v51 = vsub.f32 1.0, %v2310_v39  ;;  %vm2315_vm13 = vweird.f32 %v3533_v57  ;;  %v2340_v6 = vmul.f32 %v3537_v17, %v6719_v55 }
 0x208   : > { %v2365_v63 = vand.u32 2147483648, %v6747_v45  ;;  %v2298_v10 = vadd.f32 %v3529_v8, %v2297_v35  ;;  %v2326_v7 = vsub.f32 1.0, %v2325_v62  ;;  %vm2330_vm0 = vweird.f32 %v3535_v48  ;;  %vm6782_vm2 = vmor %vm2314_vm6, %vm2315_vm13 }
 0x209   : > { %3542 = vrcp.f32 %v6753_v28  ;;  %v2312_v41 = vmul.f32 %v3533_v57, %v2311_v51  ;;  %v2341_v29 = vsub.f32 1.0, %v2340_v6  ;;  %vm2345_vm15 = vweird.f32 %v3537_v17  ;;  %vm6794_vm3 = vmor %vm2329_vm14, %vm2330_vm0 }
 0x20a   : > { %vm2359_vm1 = vweird.f32 %v6747_v45  ;;  %v2302_v47 = vsel %vm6770_vm12, %v3529_v8, %v2298_v10  ;;  %v2327_v33 = vmul.f32 %v3535_v48, %v2326_v7  ;;  %vm6786_vm4 = vcmp.eq.f32.partialorder %v2363_v19, 8.507059e+37  ;;  %vm6803_vm6 = vmor %vm2344_vm5, %vm2345_vm15 }
 0x20b   : > { %v2366_v42 = vor.u32 1.1754944e-38, %v2365_v63  ;;  %v3539_v53 = vpop.eup %3538  ;;  %v2307_v4 = vsel %vm6733_vm10, %v2306_v50, %v2302_v47  ;;  %v2313_v58 = vadd.f32 %v3533_v57, %v2312_v41  ;;  %v2342_v60 = vmul.f32 %v3537_v17, %v2341_v29 }
 0x20c   : > { %3544 = vrcp.f32 %v6761_v21  ;;  %v2800_v14 = vmul.f32 %v2307_v4, %v6571_v43  ;;  %v2328_v44 = vadd.f32 %v3535_v48, %v2327_v33  ;;  %v2355_v27 = vmul.f32 %v3539_v53, %v6747_v45  ;;  %v6893_v4 = vld [vmem:[%s3825_s24 + $0x390] sm:$0xff] }
 0x20d   : > { %v3541_v24 = vpop.eup %3540  ;;  %v2378_v46 = vand.u32 2147483647, %v6753_v28  ;;  %v2317_v56 = vsel %vm6782_vm2, %v3533_v57, %v2313_v58  ;;  %v2343_v8 = vadd.f32 %v3537_v17, %v2342_v60  ;;  %vm2374_vm10 = vweird.f32 %v6753_v28 }
 0x20e   : > { %v2380_v43 = vand.u32 2147483648, %v6753_v28  ;;  %2928 = vst [vmem:[%s3999_s17 + $0x328] sm:$0xff] %v2800_v14  ;;  %v2322_v55 = vsel %vm6743_vm9, %v2321_v3, %v2317_v56  ;;  %v2332_v50 = vsel %vm6794_vm3, %v3535_v48, %v2328_v44  ;;  %v2356_v30 = vsub.f32 1.0, %v2355_v27  ;;  %v6899_v14 = vld [vmem:[%s3825_s24 + $0x398] sm:$0xff] }
 0x20f   : > { %v3543_v32 = vpop.eup %3542  ;;  %vm2360_vm14 = vweird.f32 %v3539_v53  ;;  %v2801_v59 = vmul.f32 %v2322_v55, %v6607_v13  ;;  %v2337_v52 = vsel %vm6749_vm8, %v2336_v49, %v2332_v50  ;;  %v2347_v26 = vsel %vm6803_vm6, %v3537_v17, %v2343_v8 }
 0x210   : > { %v2370_v57 = vmul.f32 %v3543_v32, %v6753_v28  ;;  %v2802_v34 = vmul.f32 %v2337_v52, %v6613_v22  ;;  %v2352_v11 = vsel %vm6756_vm11, %v2351_v20, %v2347_v26  ;;  %v2357_v3 = vmul.f32 %v3539_v53, %v2356_v30  ;;  %vm6835_vm7 = vmor %vm2359_vm1, %vm2360_vm14 }
 0x211   : > { %vm6827_vm5 = vcmp.eq.f32.partialorder %v2378_v46, 8.507059e+37  ;;  %2929 = vst [vmem:[%s3999_s17 + $0x330] sm:$0xff] %v2801_v59  ;;  %v2803_v37 = vmul.f32 %v2352_v11, %v6616_v38  ;;  %vm2375_vm9 = vweird.f32 %v3543_v32  ;;  %v2381_v39 = vor.u32 1.1754944e-38, %v2380_v43 }
 0x212   : > { %v3545_v13 = vpop.eup %3544  ;;  %v2371_v22 = vsub.f32 1.0, %v2370_v57  ;;  %2930 = vst [vmem:[%s3999_s17 + $0x338] sm:$0xff] %v2802_v34  ;;  %v2358_v20 = vadd.f32 %v3539_v53, %v2357_v3  ;;  %v2393_v17 = vand.u32 2147483647, %v6761_v21  ;;  %3546 = vrcp.f32 %v6763_v23  ;;  %vm6850_vm12 = vmor %vm2374_vm10, %vm2375_vm9 }
 0x213   : > { %v2385_v16 = vmul.f32 %v3545_v13, %v6761_v21  ;;  %2931 = vst [vmem:[%s3999_s17 + $0x340] sm:$0xff] %v2803_v37  ;;  %vm2389_vm8 = vweird.f32 %v6761_v21  ;;  %vm2390_vm11 = vweird.f32 %v3545_v13  ;;  %v2395_v38 = vand.u32 2147483648, %v6761_v21 }
 0x214   : > { %v2372_v35 = vmul.f32 %v3543_v32, %v2371_v22  ;;  %v2362_v45 = vsel %vm6835_vm7, %v3539_v53, %v2358_v20  ;;  %v2408_v2 = vand.u32 2147483647, %v6763_v23  ;;  %v2410_v51 = vand.u32 2147483648, %v6763_v23  ;;  %vm6871_vm0 = vmor %vm2389_vm8, %vm2390_vm11  ;;  %v6890_v53 = vld [vmem:[%s3825_s24 + $0x388] sm:$0xff] }
 0x215   : > { %v2386_v19 = vsub.f32 1.0, %v2385_v16  ;;  %v2367_v6 = vsel %vm6786_vm4, %v2366_v42, %v2362_v45  ;;  %v6858_v10 = vadd.f32 1.0, %v3541_v24  ;;  %3548 = vpow2.f32 %v6727_v25 }
 0x216   : > { %v2373_v63 = vadd.f32 %v3543_v32, %v2372_v35  ;;  %v2804_v28 = vmul.f32 %v2367_v6, %v6644_v61  ;;  %vm6862_vm13 = vcmp.eq.f32.partialorder %v2393_v17, 8.507059e+37  ;;  %v2396_v25 = vor.u32 1.1754944e-38, %v2395_v38  ;;  %v6878_v61 = vld [vmem:[%s3825_s24 + $0x380] sm:$0xff] }
 0x217   : > { %v2387_v7 = vmul.f32 %v3545_v13, %v2386_v19  ;;  %vm2404_vm15 = vweird.f32 %v6763_v23  ;;  %3550 = vrcp.f32 %v6858_v10  ;;  %vm6883_vm1 = vcmp.eq.f32.partialorder %v2408_v2, 8.507059e+37 }
 0x218   : > { %v2377_v29 = vsel %vm6850_vm12, %v3543_v32, %v2373_v63  ;;  %v3547_v1 = vpop.eup %3546  ;;  %2932 = vst [vmem:[%s3999_s17 + $0x348] sm:$0xff] %v2804_v28  ;;  %v617_v42 = vmul.f32 1.442695, %v378_v18  ;;  %v2411_v60 = vor.u32 1.1754944e-38, %v2410_v51  ;;  %v2423_v24 = vand.u32 2147483647, %v6858_v10 }
 0x219   : > { %v2382_v33 = vsel %vm6827_vm5, %v2381_v39, %v2377_v29  ;;  %v2388_v12 = vadd.f32 %v3545_v13, %v2387_v7  ;;  %v2400_v31 = vmul.f32 %v3547_v1, %v6763_v23  ;;  %vm2405_vm2 = vweird.f32 %v3547_v1 }
 0x21a   : > { %v2805_v58 = vmul.f32 %v2382_v33, %v6647_v54  ;;  %3552 = vpow2.f32 %v617_v42  ;;  %v379_v18 = vsub.f32 0.0, %v6878_v61  ;;  %v380_v56 = vsub.f32 0.0, %v6890_v53  ;;  %vm6922_vm3 = vmor %vm2404_vm15, %vm2405_vm2  ;;  %v6973_v42 = vld [vmem:[%s3825_s24 + $0x3b0] sm:$0xff] }
 0x21b   : > { %v2392_v44 = vsel %vm6871_vm0, %v3545_v13, %v2388_v12  ;;  %v3549_v27 = vpop.eup %3548  ;;  %v2401_v46 = vsub.f32 1.0, %v2400_v31  ;;  %v381_v8 = vsub.f32 0.0, %v6893_v4  ;;  %v382_v50 = vsub.f32 0.0, %v6899_v14  ;;  %v6934_v13 = vld [vmem:[%s3825_s24 + $0x3a8] sm:$0xff] }
 0x21c   : > { %2933 = vst [vmem:[%s3999_s17 + $0x350] sm:$0xff] %v2805_v58  ;;  %v2397_v54 = vsel %vm6862_vm13, %v2396_v25, %v2392_v44  ;;  %v6913_v32 = vadd.f32 1.0, %v3549_v27  ;;  %v619_v55 = vmul.f32 1.442695, %v379_v18  ;;  %vm2419_vm4 = vweird.f32 %v6858_v10 }
 0x21d   : > { %v2806_v43 = vmul.f32 %v2397_v54, %v6652_v15  ;;  %v3551_v30 = vpop.eup %3550  ;;  %v2402_v59 = vmul.f32 %v3547_v1, %v2401_v46  ;;  %v621_v52 = vmul.f32 1.442695, %v380_v56  ;;  %v383_v26 = vsub.f32 0.0, %v6905_v5 }
 0x21e   : > { %v2415_v15 = vmul.f32 %v3551_v30, %v6858_v10  ;;  %v2425_v34 = vand.u32 2147483648, %v6858_v10  ;;  %3554 = vrcp.f32 %v6913_v32  ;;  %v623_v11 = vmul.f32 1.442695, %v381_v8 }
 0x21f   : > { %2934 = vst [vmem:[%s3999_s17 + $0x358] sm:$0xff] %v2806_v43  ;;  %v2403_v3 = vadd.f32 %v3547_v1, %v2402_v59  ;;  %vm2420_vm6 = vweird.f32 %v3551_v30  ;;  %vm6929_vm10 = vcmp.eq.f32.partialorder %v2423_v24, 8.507059e+37  ;;  %3556 = vpow2.f32 %v619_v55 }
 0x220   : > { %v3553_v23 = vpop.eup %3552  ;;  %v2416_v37 = vsub.f32 1.0, %v2415_v15  ;;  %v2438_v49 = vand.u32 2147483647, %v6913_v32  ;;  %3558 = vpow2.f32 %v621_v52  ;;  %v625_v22 = vmul.f32 1.442695, %v382_v50  ;;  %vm6949_vm14 = vmor %vm2419_vm4, %vm2420_vm6 }
 0x221   : > { %v2407_v39 = vsel %vm6922_vm3, %v3547_v1, %v2403_v3  ;;  %v2440_v20 = vand.u32 2147483648, %v6913_v32  ;;  %v6940_v16 = vadd.f32 1.0, %v3553_v23  ;;  %v627_v17 = vmul.f32 1.442695, %v383_v26 }
 0x222   : > { %v2412_v35 = vsel %vm6883_vm1, %v2411_v60, %v2407_v39  ;;  %v2417_v38 = vmul.f32 %v3551_v30, %v2416_v37  ;;  %3560 = vpow2.f32 %v623_v11  ;;  %v384_v45 = vsub.f32 0.0, %v6934_v13 }
 0x223   : > { %v2807_v62 = vmul.f32 %v2412_v35, %v6658_v36  ;;  %v2426_v2 = vor.u32 1.1754944e-38, %v2425_v34  ;;  %vm2434_vm5 = vweird.f32 %v6913_v32  ;;  %3562 = vrcp.f32 %v6940_v16 }
 0x224   : > { %v3555_v51 = vpop.eup %3554  ;;  %v2418_v6 = vadd.f32 %v3551_v30, %v2417_v38  ;;  %v2453_v63 = vand.u32 2147483647, %v6940_v16  ;;  %v2455_v28 = vand.u32 2147483648, %v6940_v16  ;;  %3564 = vpow2.f32 %v625_v22 }
 0x225   : > { %v3557_v36 = vpop.eup %3556  ;;  %2935 = vst [vmem:[%s3999_s17 + $0x360] sm:$0xff] %v2807_v62  ;;  %v2430_v10 = vmul.f32 %v3555_v51, %v6913_v32  ;;  %vm6959_vm7 = vcmp.eq.f32.partialorder %v2438_v49, 8.507059e+37  ;;  %v2441_v41 = vor.u32 1.1754944e-38, %v2440_v20  ;;  %3566 = vpow2.f32 %v627_v17 }
 0x226   : > { %v3559_v29 = vpop.eup %3558  ;;  %v2422_v47 = vsel %vm6949_vm14, %v3551_v30, %v2418_v6  ;;  %vm2449_vm9 = vweird.f32 %v6940_v16  ;;  %v6966_v25 = vadd.f32 1.0, %v3557_v36  ;;  %v629_v1 = vmul.f32 1.442695, %v384_v45 }
 0x227   : > { %v2427_v33 = vsel %vm6929_vm10, %v2426_v2, %v2422_v47  ;;  %v2431_v12 = vsub.f32 1.0, %v2430_v10  ;;  %vm2435_vm8 = vweird.f32 %v3555_v51  ;;  %v6970_v21 = vadd.f32 1.0, %v3559_v29 }
 0x228   : > { %v3561_v58 = vpop.eup %3560  ;;  %v2808_v31 = vmul.f32 %v2427_v33, %v6677_v9  ;;  %vm6976_vm11 = vcmp.eq.f32.partialorder %v2453_v63, 8.507059e+37  ;;  %v2456_v24 = vor.u32 1.1754944e-38, %v2455_v28  ;;  %3568 = vrcp.f32 %v6966_v25  ;;  %vm6988_vm12 = vmor %vm2434_vm5, %vm2435_vm8 }
 0x229   : > { %v3563_v44 = vpop.eup %3562  ;;  %v2432_v18 = vmul.f32 %v3555_v51, %v2431_v12  ;;  %v2468_v27 = vand.u32 2147483647, %v6966_v25  ;;  %v2470_v54 = vand.u32 2147483648, %v6966_v25  ;;  %3570 = vrcp.f32 %v6970_v21 }
 0x22a   : > { %v3565_v46 = vpop.eup %3564  ;;  %2936 = vst [vmem:[%s3999_s17 + $0x368] sm:$0xff] %v2808_v31  ;;  %v2445_v56 = vmul.f32 %v3563_v44, %v6940_v16  ;;  %v2483_v8 = vand.u32 2147483647, %v6970_v21  ;;  %3572 = vpow2.f32 %v629_v1  ;;  %v385_v43 = vsub.f32 0.0, %v6973_v42 }
 0x22b   : > { %v3567_v55 = vpop.eup %3566  ;;  %v2433_v50 = vadd.f32 %v3555_v51, %v2432_v18  ;;  %vm2464_vm13 = vweird.f32 %v6966_v25  ;;  %vm2479_vm0 = vweird.f32 %v6970_v21  ;;  %v6997_v30 = vadd.f32 1.0, %v3561_v58 }
 0x22c   : > { %v2446_v32 = vsub.f32 1.0, %v2445_v56  ;;  %vm2450_vm15 = vweird.f32 %v3563_v44  ;;  %v2485_v59 = vand.u32 2147483648, %v6970_v21  ;;  %v7000_v52 = vadd.f32 1.0, %v3565_v46 }
 0x22d   : > { %v2437_v26 = vsel %vm6988_vm12, %v3555_v51, %v2433_v50  ;;  %vm7004_vm1 = vcmp.eq.f32.partialorder %v2468_v27, 8.507059e+37  ;;  %v2471_v15 = vor.u32 1.1754944e-38, %v2470_v54  ;;  %3574 = vrcp.f32 %v6997_v30  ;;  %vm7022_vm4 = vmor %vm2449_vm9, %vm2450_vm15 }
 0x22e   : > { %v3569_v34 = vpop.eup %3568  ;;  %v2442_v11 = vsel %vm6959_vm7, %v2441_v41, %v2437_v26  ;;  %v2447_v3 = vmul.f32 %v3563_v44, %v2446_v32  ;;  %vm7011_vm2 = vcmp.eq.f32.partialorder %v2483_v8, 8.507059e+37  ;;  %v2498_v23 = vand.u32 2147483647, %v6997_v30 }
 0x22f   : > { %v7016_v37 = vadd.f32 1.0, %v3567_v55  ;;  %v3571_v49 = vpop.eup %3570  ;;  %v2809_v22 = vmul.f32 %v2442_v11, %v6691_v40  ;;  %v2460_v20 = vmul.f32 %v3569_v34, %v6966_v25  ;;  %v2500_v17 = vand.u32 2147483648, %v6997_v30 }
 0x230   : > { %3576 = vrcp.f32 %v7000_v52  ;;  %v3573_v35 = vpop.eup %3572  ;;  %v2448_v38 = vadd.f32 %v3563_v44, %v2447_v3  ;;  %v2475_v45 = vmul.f32 %v3571_v49, %v6970_v21  ;;  %v2486_v62 = vor.u32 1.1754944e-38, %v2485_v59  ;;  %v7088_v59 = vld [vmem:[%s3825_s24 + $0x3b8] sm:$0xff] }
 0x231   : > { %vm2494_vm3 = vweird.f32 %v6997_v30  ;;  %2937 = vst [vmem:[%s3999_s17 + $0x370] sm:$0xff] %v2809_v22  ;;  %v2461_v40 = vsub.f32 1.0, %v2460_v20  ;;  %vm2465_vm6 = vweird.f32 %v3569_v34  ;;  %vm2480_vm10 = vweird.f32 %v3571_v49 }
 0x232   : > { %v2513_v16 = vand.u32 2147483647, %v7000_v52  ;;  %v2452_v19 = vsel %vm7022_vm4, %v3563_v44, %v2448_v38  ;;  %v2476_v2 = vsub.f32 1.0, %v2475_v45  ;;  %vm7035_vm14 = vcmp.eq.f32.partialorder %v2498_v23, 8.507059e+37  ;;  %vm7046_vm7 = vmor %vm2464_vm13, %vm2465_vm6  ;;  %v7111_v23 = vld [vmem:[%s3825_s24 + $0x3c0] sm:$0xff] }
 0x233   : > { %3578 = vrcp.f32 %v7016_v37  ;;  %v3575_v6 = vpop.eup %3574  ;;  %v2457_v63 = vsel %vm6976_vm11, %v2456_v24, %v2452_v19  ;;  %v2462_v28 = vmul.f32 %v3569_v34, %v2461_v40  ;;  %v2501_v36 = vor.u32 1.1754944e-38, %v2500_v17  ;;  %vm7055_vm9 = vmor %vm2479_vm0, %vm2480_vm10  ;;  %v7121_v17 = vld [vmem:[%s3825_s24 + $0x3d0] sm:$0xff] }
 0x234   : > { %vm2509_vm5 = vweird.f32 %v7000_v52  ;;  %v2810_v10 = vmul.f32 %v2457_v63, %v6707_v0  ;;  %v2477_v41 = vmul.f32 %v3571_v49, %v2476_v2  ;;  %v2490_v29 = vmul.f32 %v3575_v6, %v6997_v30  ;;  %v7145_v63 = vld [vmem:[%s3825_s24 + $0x3e0] sm:$0xff]  ;;  %v7160_v0 = vld [vmem:[%s3825_s24 + $0x3f0] sm:$0xff] }
 0x235   : > { %v2515_v47 = vand.u32 2147483648, %v7000_v52  ;;  %v2463_v33 = vadd.f32 %v3569_v34, %v2462_v28  ;;  %vm2495_vm8 = vweird.f32 %v3575_v6  ;;  %vm7059_vm11 = vcmp.eq.f32.partialorder %v2513_v16, 8.507059e+37 }
 0x236   : > { %v3577_v1 = vpop.eup %3576  ;;  %vm2524_vm12 = vweird.f32 %v7016_v37  ;;  %2938 = vst [vmem:[%s3999_s17 + $0x378] sm:$0xff] %v2810_v10  ;;  %v2478_v25 = vadd.f32 %v3571_v49, %v2477_v41  ;;  %v2491_v58 = vsub.f32 1.0, %v2490_v29  ;;  %v2528_v60 = vand.u32 2147483647, %v7016_v37  ;;  %vm7082_vm0 = vmor %vm2494_vm3, %vm2495_vm8  ;;  %v7152_v41 = vld [vmem:[%s3825_s24 + $0x3e8] sm:$0xff] }
 0x237   : > { %v2505_v31 = vmul.f32 %v3577_v1, %v7000_v52  ;;  %v2467_v21 = vsel %vm7046_vm7, %v3569_v34, %v2463_v33  ;;  %vm2510_vm13 = vweird.f32 %v3577_v1  ;;  %v2530_v24 = vand.u32 2147483648, %v7016_v37 }
 0x238   : > { %v7070_v44 = vadd.f32 1.0, %v3573_v35  ;;  %v2472_v27 = vsel %vm7004_vm1, %v2471_v15, %v2467_v21  ;;  %v2482_v54 = vsel %vm7055_vm9, %v3571_v49, %v2478_v25  ;;  %v2492_v46 = vmul.f32 %v3575_v6, %v2491_v58  ;;  %vm7096_vm15 = vmor %vm2509_vm5, %vm2510_vm13  ;;  %v7114_v49 = vld [vmem:[%s3825_s24 + $0x3c8] sm:$0xff] }
 0x239   : > { %v3579_v18 = vpop.eup %3578  ;;  %v2506_v9 = vsub.f32 1.0, %v2505_v31  ;;  %v2811_v56 = vmul.f32 %v2472_v27, %v6878_v61  ;;  %v2487_v8 = vsel %vm7011_vm2, %v2486_v62, %v2482_v54  ;;  %v2516_v50 = vor.u32 1.1754944e-38, %v2515_v47  ;;  %v7134_v62 = vld [vmem:[%s3825_s24 + $0x3d8] sm:$0xff] }
 0x23a   : > { %v2520_v32 = vmul.f32 %v3579_v18, %v7016_v37  ;;  %v2812_v26 = vmul.f32 %v2487_v8, %v6890_v53  ;;  %v2493_v61 = vadd.f32 %v3575_v6, %v2492_v46  ;;  %3580 = vrcp.f32 %v7070_v44 }
 0x23b   : > { %v2507_v57 = vmul.f32 %v3577_v1, %v2506_v9  ;;  %2939 = vst [vmem:[%s3999_s17 + $0x380] sm:$0xff] %v2811_v56  ;;  %vm2525_vm1 = vweird.f32 %v3579_v18  ;;  %vm7100_vm2 = vcmp.eq.f32.partialorder %v2528_v60, 8.507059e+37  ;;  %v2531_v53 = vor.u32 1.1754944e-38, %v2530_v24  ;;  %v7167_v24 = vld [vmem:[%s3825_s24 + $0x3f8] sm:$0xff] }
 0x23c   : > { %v2521_v15 = vsub.f32 1.0, %v2520_v32  ;;  %2940 = vst [vmem:[%s3999_s17 + $0x388] sm:$0xff] %v2812_v26  ;;  %v2497_v11 = vsel %vm7082_vm0, %v3575_v6, %v2493_v61  ;;  %v631_v52 = vmul.f32 1.442695, %v385_v43  ;;  %v386_v48 = vsub.f32 0.0, %v7088_v59  ;;  %vm7129_vm3 = vmor %vm2524_vm12, %vm2525_vm1 }
 0x23d   : > { %v2508_v3 = vadd.f32 %v3577_v1, %v2507_v57  ;;  %v2502_v22 = vsel %vm7035_vm14, %v2501_v36, %v2497_v11  ;;  %vm2539_vm4 = vweird.f32 %v7070_v44  ;;  %v2543_v20 = vand.u32 2147483647, %v7070_v44 }
 0x23e   : > { %v2522_v39 = vmul.f32 %v3579_v18, %v2521_v15  ;;  %v2813_v35 = vmul.f32 %v2502_v22, %v6893_v4  ;;  %3582 = vpow2.f32 %v631_v52  ;;  %v633_v45 = vmul.f32 1.442695, %v386_v48 }
 0x23f   : > { %v2512_v43 = vsel %vm7096_vm15, %v3577_v1, %v2508_v3  ;;  %v387_v16 = vsub.f32 0.0, %v7111_v23  ;;  %v388_v19 = vsub.f32 0.0, %v7114_v49  ;;  %v2545_v51 = vand.u32 2147483648, %v7070_v44 }
 0x240   : > { %v2517_v40 = vsel %vm7059_vm11, %v2516_v50, %v2512_v43  ;;  %v2523_v4 = vadd.f32 %v3579_v18, %v2522_v39  ;;  %v3581_v2 = vpop.eup %3580  ;;  %2941 = vst [vmem:[%s3999_s17 + $0x390] sm:$0xff] %v2813_v35  ;;  %3584 = vpow2.f32 %v633_v45  ;;  %v389_v6 = vsub.f32 0.0, %v7121_v17 }
 0x241   : > { %v2814_v37 = vmul.f32 %v2517_v40, %v6899_v14  ;;  %v2535_v36 = vmul.f32 %v3581_v2, %v7070_v44  ;;  %v635_v10 = vmul.f32 1.442695, %v387_v16  ;;  %v390_v7 = vsub.f32 0.0, %v7134_v62 }
 0x242   : > { %v2527_v28 = vsel %vm7129_vm3, %v3579_v18, %v2523_v4  ;;  %vm2540_vm6 = vweird.f32 %v3581_v2  ;;  %v637_v29 = vmul.f32 1.442695, %v388_v19  ;;  %v639_v47 = vmul.f32 1.442695, %v389_v6 }
 0x243   : > { %2942 = vst [vmem:[%s3999_s17 + $0x398] sm:$0xff] %v2814_v37  ;;  %v2532_v14 = vsel %vm7100_vm2, %v2531_v53, %v2527_v28  ;;  %v2536_v33 = vsub.f32 1.0, %v2535_v36  ;;  %3586 = vpow2.f32 %v635_v10  ;;  %v391_v12 = vsub.f32 0.0, %v7145_v63  ;;  %vm7172_vm10 = vmor %vm2539_vm4, %vm2540_vm6 }
 0x244   : > { %v2815_v1 = vmul.f32 %v2532_v14, %v6905_v5  ;;  %v3583_v25 = vpop.eup %3582  ;;  %3588 = vpow2.f32 %v637_v29  ;;  %v392_v58 = vsub.f32 0.0, %v7152_v41  ;;  %v641_v21 = vmul.f32 1.442695, %v390_v7 }
 0x245   : > { %v2537_v31 = vmul.f32 %v3581_v2, %v2536_v33  ;;  %v7164_v60 = vadd.f32 1.0, %v3583_v25  ;;  %3590 = vpow2.f32 %v639_v47  ;;  %v2546_v27 = vor.u32 1.1754944e-38, %v2545_v51 }
 0x246   : > { %2943 = vst [vmem:[%s3999_s17 + $0x3a0] sm:$0xff] %v2815_v1  ;;  %v3585_v18 = vpop.eup %3584  ;;  %v393_v54 = vsub.f32 0.0, %v7160_v0  ;;  %vm2544_vm14 = vcmp.eq.f32.partialorder %v2543_v20, 8.507059e+37  ;;  %v643_v9 = vmul.f32 1.442695, %v391_v12  ;;  %v394_v55 = vsub.f32 0.0, %v7167_v24 }
 0x247   : > { %v2538_v46 = vadd.f32 %v3581_v2, %v2537_v31  ;;  %3592 = vrcp.f32 %v7164_v60  ;;  %v7178_v56 = vadd.f32 1.0, %v3585_v18  ;;  %v645_v8 = vmul.f32 1.442695, %v392_v58 }
 0x248   : > { %v2558_v32 = vand.u32 2147483647, %v7164_v60  ;;  %3594 = vpow2.f32 %v641_v21  ;;  %vm2554_vm5 = vweird.f32 %v7164_v60  ;;  %v647_v57 = vmul.f32 1.442695, %v393_v54 }
 0x249   : > { %v3587_v50 = vpop.eup %3586  ;;  %v2542_v44 = vsel %vm7172_vm10, %v3581_v2, %v2538_v46  ;;  %3596 = vrcp.f32 %v7178_v56  ;;  %v2560_v34 = vand.u32 2147483648, %v7164_v60  ;;  %v7194_v52 = vmul.f32 1.442695, %v394_v55 }
 0x24a   : > { %v3589_v26 = vpop.eup %3588  ;;  %v2547_v61 = vsel %vm2544_vm14, %v2546_v27, %v2542_v44  ;;  %v7188_v53 = vadd.f32 1.0, %v3587_v50  ;;  %3598 = vpow2.f32 %v643_v9  ;;  %vm7197_vm7 = vcmp.eq.f32.partialorder %v2558_v32, 8.507059e+37 }
 0x24b   : > { %v3591_v30 = vpop.eup %3590  ;;  %v2816_v15 = vmul.f32 %v2547_v61, %v6934_v13  ;;  %v7190_v11 = vadd.f32 1.0, %v3589_v26  ;;  %3600 = vpow2.f32 %v645_v8  ;;  %v2573_v13 = vand.u32 2147483647, %v7178_v56 }
 0x24c   : > { %v7192_v3 = vadd.f32 1.0, %v3591_v30  ;;  %v2575_v39 = vand.u32 2147483648, %v7178_v56  ;;  %3602 = vrcp.f32 %v7188_v53  ;;  %v2588_v35 = vand.u32 2147483647, %v7188_v53 }
 0x24d   : > { %v3593_v48 = vpop.eup %3592  ;;  %2944 = vst [vmem:[%s3999_s17 + $0x3a8] sm:$0xff] %v2816_v15  ;;  %v2590_v43 = vand.u32 2147483648, %v7188_v53  ;;  %3604 = vpow2.f32 %v647_v57  ;;  %v2561_v45 = vor.u32 1.1754944e-38, %v2560_v34  ;;  %vm2569_vm9 = vweird.f32 %v7178_v56 }
 0x24e   : > { %v2550_v20 = vmul.f32 %v3593_v48, %v7164_v60  ;;  %v3595_v38 = vpop.eup %3594  ;;  %3606 = vrcp.f32 %v7190_v11  ;;  %v2605_v40 = vand.u32 2147483648, %v7190_v11  ;;  %vm2555_vm8 = vweird.f32 %v3593_v48 }
 0x24f   : > { %v3597_v4 = vpop.eup %3596  ;;  %v2603_v19 = vand.u32 2147483647, %v7190_v11  ;;  %3608 = vrcp.f32 %v7192_v3  ;;  %vm7213_vm11 = vcmp.eq.f32.partialorder %v2573_v13, 8.507059e+37  ;;  %v2576_v6 = vor.u32 1.1754944e-38, %v2575_v39  ;;  %vm7225_vm15 = vmor %vm2554_vm5, %vm2555_vm8 }
 0x250   : > { %v2551_v16 = vsub.f32 1.0, %v2550_v20  ;;  %v3599_v2 = vpop.eup %3598  ;;  %v2565_v37 = vmul.f32 %v3597_v4, %v7178_v56  ;;  %vm2584_vm12 = vweird.f32 %v7188_v53  ;;  %vm7218_vm13 = vcmp.eq.f32.partialorder %v2588_v35, 8.507059e+37 }
 0x251   : > { %v3601_v28 = vpop.eup %3600  ;;  %v2591_v7 = vor.u32 1.1754944e-38, %v2590_v43  ;;  %vm2599_vm0 = vweird.f32 %v7190_v11  ;;  %vm2570_vm1 = vweird.f32 %v3597_v4  ;;  %v2606_v1 = vor.u32 1.1754944e-38, %v2605_v40 }
 0x252   : > { %v2552_v36 = vmul.f32 %v3593_v48, %v2551_v16  ;;  %v3603_v14 = vpop.eup %3602  ;;  %v2566_v47 = vsub.f32 1.0, %v2565_v37  ;;  %v7229_v33 = vadd.f32 1.0, %v3595_v38  ;;  %vm7234_vm2 = vcmp.eq.f32.partialorder %v2603_v19, 8.507059e+37  ;;  %vm7249_vm3 = vmor %vm2569_vm9, %vm2570_vm1 }
 0x253   : > { %v7231_v12 = vpop.eup %3604  ;;  %v2580_v58 = vmul.f32 %v3603_v14, %v7188_v53  ;;  %vm2614_vm4 = vweird.f32 %v7192_v3  ;;  %v2618_v60 = vand.u32 2147483647, %v7192_v3  ;;  %v2620_v5 = vand.u32 2147483648, %v7192_v3 }
 0x254   : > { %v2553_v25 = vadd.f32 %v3593_v48, %v2552_v36  ;;  %v3607_v21 = vpop.eup %3606  ;;  %v2567_v18 = vmul.f32 %v3597_v4, %v2566_v47  ;;  %3610 = vrcp.f32 %v7229_v33  ;;  %v7242_v27 = vadd.f32 1.0, %v3599_v2 }
 0x255   : > { %v3609_v54 = vpop.eup %3608  ;;  %v2581_v8 = vsub.f32 1.0, %v2580_v58  ;;  %vm2585_vm6 = vweird.f32 %v3603_v14  ;;  %v2595_v55 = vmul.f32 %v3607_v21, %v7190_v11  ;;  %v7257_v26 = vadd.f32 1.0, %v3601_v28 }
 0x256   : > { %v2557_v46 = vsel %vm7225_vm15, %v3593_v48, %v2553_v25  ;;  %v2568_v44 = vadd.f32 %v3597_v4, %v2567_v18  ;;  %v2610_v32 = vmul.f32 %v3609_v54, %v7192_v3  ;;  %vm2600_vm10 = vweird.f32 %v3607_v21  ;;  %vm7264_vm14 = vmor %vm2584_vm12, %vm2585_vm6 }
 0x257   : > { %v2562_v50 = vsel %vm7197_vm7, %v2561_v45, %v2557_v46  ;;  %v2582_v56 = vmul.f32 %v3603_v14, %v2581_v8  ;;  %v2596_v57 = vsub.f32 1.0, %v2595_v55  ;;  %vm2615_vm5 = vweird.f32 %v3609_v54  ;;  %vm7279_vm9 = vmor %vm2599_vm0, %vm2600_vm10 }
 0x258   : > { %v2817_v61 = vmul.f32 %v2562_v50, %v6973_v42  ;;  %v2572_v30 = vsel %vm7249_vm3, %v3597_v4, %v2568_v44  ;;  %v2611_v34 = vsub.f32 1.0, %v2610_v32  ;;  %3612 = vrcp.f32 %v7242_v27  ;;  %vm7290_vm8 = vmor %vm2614_vm4, %vm2615_vm5 }
 0x259   : > { %v2577_v42 = vsel %vm7213_vm11, %v2576_v6, %v2572_v30  ;;  %v2583_v48 = vadd.f32 %v3603_v14, %v2582_v56  ;;  %v2597_v22 = vmul.f32 %v3607_v21, %v2596_v57  ;;  %vm7272_vm7 = vcmp.eq.f32.partialorder %v2618_v60, 8.507059e+37 }
 0x25a   : > { %2945 = vst [vmem:[%s3999_s17 + $0x3b0] sm:$0xff] %v2817_v61  ;;  %v3611_v53 = vpop.eup %3610  ;;  %v2818_v39 = vmul.f32 %v2577_v42, %v7088_v59  ;;  %v2612_v35 = vmul.f32 %v3609_v54, %v2611_v34  ;;  %v2633_v43 = vand.u32 2147483647, %v7229_v33  ;;  %v2635_v38 = vand.u32 2147483648, %v7229_v33 }
 0x25b   : > { %v2587_v45 = vsel %vm7264_vm14, %v3603_v14, %v2583_v48  ;;  %v2598_v40 = vadd.f32 %v3607_v21, %v2597_v22  ;;  %v2621_v11 = vor.u32 1.1754944e-38, %v2620_v5  ;;  %v2625_v4 = vmul.f32 %v3611_v53, %v7229_v33 }
 0x25c   : > { %2946 = vst [vmem:[%s3999_s17 + $0x3b8] sm:$0xff] %v2818_v39  ;;  %v2592_v16 = vsel %vm7218_vm13, %v2591_v7, %v2587_v45  ;;  %v2613_v19 = vadd.f32 %v3609_v54, %v2612_v35  ;;  %vm2629_vm11 = vweird.f32 %v7229_v33  ;;  %vm2630_vm12 = vweird.f32 %v3611_v53 }
 0x25d   : > { %v2819_v2 = vmul.f32 %v2592_v16, %v7111_v23  ;;  %v2602_v3 = vsel %vm7279_vm9, %v3607_v21, %v2598_v40  ;;  %v2626_v37 = vsub.f32 1.0, %v2625_v4  ;;  %3614 = vrcp.f32 %v7257_v26  ;;  %vm7320_vm0 = vmor %vm2629_vm11, %vm2630_vm12 }
 0x25e   : > { %v3613_v51 = vpop.eup %3612  ;;  %v2607_v6 = vsel %vm7234_vm2, %v2606_v1, %v2602_v3  ;;  %v2617_v28 = vsel %vm7290_vm8, %v3609_v54, %v2613_v19  ;;  %vm7307_vm13 = vcmp.eq.f32.partialorder %v2633_v43, 8.507059e+37  ;;  %v2636_v10 = vor.u32 1.1754944e-38, %v2635_v38 }
 0x25f   : > { %2947 = vst [vmem:[%s3999_s17 + $0x3c0] sm:$0xff] %v2819_v2  ;;  %v2820_v23 = vmul.f32 %v2607_v6, %v7114_v49  ;;  %v2622_v7 = vsel %vm7272_vm7, %v2621_v11, %v2617_v28  ;;  %v2627_v14 = vmul.f32 %v3611_v53, %v2626_v37  ;;  %v2640_v29 = vmul.f32 %v3613_v51, %v7242_v27 }
 0x260   : > { %v2821_v47 = vmul.f32 %v2622_v7, %v7121_v17  ;;  %vm2644_vm15 = vweird.f32 %v7242_v27  ;;  %v2648_v25 = vand.u32 2147483647, %v7242_v27  ;;  %v2650_v49 = vand.u32 2147483648, %v7242_v27 }
 0x261   : > { %2948 = vst [vmem:[%s3999_s17 + $0x3c8] sm:$0xff] %v2820_v23  ;;  %v2628_v58 = vadd.f32 %v3611_v53, %v2627_v14  ;;  %v2641_v31 = vsub.f32 1.0, %v2640_v29  ;;  %vm2645_vm1 = vweird.f32 %v3613_v51  ;;  %v777_v60 = vadd.f32 1.0, %v7231_v12 }
 0x262   : > { %2949 = vst [vmem:[%s3999_s17 + $0x3d0] sm:$0xff] %v2821_v47  ;;  %3616 = vpow2.f32 %v7194_v52  ;;  %vm2646_vm2 = vmor %vm2644_vm15, %vm2645_vm1  ;;  %v2651_v5 = vor.u32 1.1754944e-38, %v2650_v49  ;;  %vm2649_vm4 = vcmp.eq.f32.partialorder %v2648_v25, 8.507059e+37  ;;  %v2665_v52 = vand.u32 2147483648, %v7257_v26 }
 0x263   : > { %v3615_v17 = vpop.eup %3614  ;;  %v2632_v33 = vsel %vm7320_vm0, %v3611_v53, %v2628_v58  ;;  %v2642_v21 = vmul.f32 %v3613_v51, %v2641_v31  ;;  %3618 = vrcp.f32 %v777_v60  ;;  %vm2659_vm3 = vweird.f32 %v7257_v26 }
 0x264   : > { %v2637_v18 = vsel %vm7307_vm13, %v2636_v10, %v2632_v33  ;;  %v2655_v54 = vmul.f32 %v3615_v17, %v7257_v26  ;;  %vm2660_vm6 = vweird.f32 %v3615_v17  ;;  %v2663_v8 = vand.u32 2147483647, %v7257_v26 }
 0x265   : > { %v2822_v12 = vmul.f32 %v2637_v18, %v7134_v62  ;;  %v2643_v46 = vadd.f32 %v3613_v51, %v2642_v21  ;;  %vm2661_vm10 = vmor %vm2659_vm3, %vm2660_vm6  ;;  %v2666_v62 = vor.u32 1.1754944e-38, %v2665_v52  ;;  %vm2674_vm5 = vweird.f32 %v777_v60 }
 0x266   : > { %v2656_v9 = vsub.f32 1.0, %v2655_v54  ;;  %vm2664_vm14 = vcmp.eq.f32.partialorder %v2663_v8, 8.507059e+37  ;;  %v2680_v15 = vand.u32 2147483648, %v777_v60  ;;  %v2678_v42 = vand.u32 2147483647, %v777_v60 }
 0x267   : > { %2950 = vst [vmem:[%s3999_s17 + $0x3d8] sm:$0xff] %v2822_v12  ;;  %v2647_v55 = vsel %vm2646_vm2, %v3613_v51, %v2643_v46 }
 0x268   : > { %v3617_v27 = vpop.eup %3616  ;;  %v2652_v50 = vsel %vm2649_vm4, %v2651_v5, %v2647_v55  ;;  %v2657_v44 = vmul.f32 %v3615_v17, %v2656_v9  ;;  %v2681_v13 = vor.u32 1.1754944e-38, %v2680_v15  ;;  %vm2679_vm8 = vcmp.eq.f32.partialorder %v2678_v42, 8.507059e+37 }
 0x269   : > { %v3619_v32 = vpop.eup %3618  ;;  %v2823_v61 = vmul.f32 %v2652_v50, %v7145_v63  ;;  %v778_v56 = vadd.f32 1.0, %v3617_v27 }
 0x26a   : > { %v2658_v57 = vadd.f32 %v3615_v17, %v2657_v44  ;;  %v2670_v30 = vmul.f32 %v3619_v32, %v777_v60  ;;  %vm2675_vm7 = vweird.f32 %v3619_v32 }
 0x26b   : > { %2951 = vst [vmem:[%s3999_s17 + $0x3e0] sm:$0xff] %v2823_v61  ;;  %3620 = vrcp.f32 %v778_v56  ;;  %vm2676_vm9 = vmor %vm2674_vm5, %vm2675_vm7  ;;  %vm2689_vm11 = vweird.f32 %v778_v56  ;;  %v2695_v38 = vand.u32 2147483648, %v778_v56 }
 0x26c   : > { %v2662_v26 = vsel %vm2661_vm10, %v3615_v17, %v2658_v57  ;;  %v2671_v34 = vsub.f32 1.0, %v2670_v30 }
 0x26d   : > { %v2667_v48 = vsel %vm2664_vm14, %v2666_v62, %v2662_v26  ;;  %v2696_v11 = vor.u32 1.1754944e-38, %v2695_v38 }
 0x26e   : > { %v2824_v22 = vmul.f32 %v2667_v48, %v7152_v41  ;;  %v2672_v63 = vmul.f32 %v3619_v32, %v2671_v34  ;;  %v2693_v41 = vand.u32 2147483647, %v778_v56 }
 0x270   : > { %2952 = vst [vmem:[%s3999_s17 + $0x3e8] sm:$0xff] %v2824_v22  ;;  %v2673_v53 = vadd.f32 %v3619_v32, %v2672_v63  ;;  %vm2694_vm0 = vcmp.eq.f32.partialorder %v2693_v41, 8.507059e+37 }
 0x271   : > { %v3621_v39 = vpop.eup %3620 }
 0x272   : > { %v2677_v20 = vsel %vm2676_vm9, %v3619_v32, %v2673_v53  ;;  %v2685_v35 = vmul.f32 %v3621_v39, %v778_v56  ;;  %vm2690_vm12 = vweird.f32 %v3621_v39 }
 0x273   : > { %v2682_v43 = vsel %vm2679_vm8, %v2681_v13, %v2677_v20  ;;  %vm2691_vm13 = vmor %vm2689_vm11, %vm2690_vm12 }
 0x274   : > { %v2825_v45 = vmul.f32 %v2682_v43, %v7160_v0  ;;  %v2686_v40 = vsub.f32 1.0, %v2685_v35 }
 0x276   : > { %2953 = vst [vmem:[%s3999_s17 + $0x3f0] sm:$0xff] %v2825_v45  ;;  %v2687_v59 = vmul.f32 %v3621_v39, %v2686_v40 }
 0x278   : > { %v2688_v4 = vadd.f32 %v3621_v39, %v2687_v59 }
 0x27a   : > { %v2692_v16 = vsel %vm2691_vm13, %v3621_v39, %v2688_v4 }
 0x27b   : > { %v2697_v0 = vsel %vm2694_vm0, %v2696_v11, %v2692_v16 }
 0x27c   : > { %v2826_v19 = vmul.f32 %v2697_v0, %v7167_v24 }
 0x27e   : > { %2954 = vst [vmem:[%s3999_s17 + $0x3f8] sm:$0xff] %v2826_v19 }
 0x27f   : > { %3679 = shalt.err (!%p3676_p4)
}
 0x280   : > { %s3722_s16 = smov 128   ;;  %s3723_s20 = smov 8  }
 0x281   : > { %3062 = dma.vmem_to_hbm [thread:$0]  (%p3783_p10), %s2969_s10, 16384, %s2971_s29, %s2956_s30, %s3722_s16, %s3722_s16, %s3723_s20  }
 0x282 PF: > { %p3073_p5 = scmp.ge.s32.totalorder %s3718_s9, 2  ;;  %s2985_s21 = sand.u32 1, %s3706_s6  }
 0x283   : > { %s2986_s22 = scalar_lea.sflag [#allocation4], %s2985_s21 }
 0x284   : > { %p3069_p7 = pnand %p3073_p5, %p3787_p11 }
 0x286   : > { %p3070_p8 = pneg %p3069_p7 }
 0x288   : > { %3701 = dma.done.wait (%p3070_p8), %s2986_s22, 16384  }
 0x289   : > { %3703 = vsyncadd (%p3070_p8), %s2986_s22, 4294950912  ;;  %p14_p9 = scmp.ge.s32.totalorder %s3759_s12, 6   ;;  %s7873_s6 = smov %s3710_s7 }
 0x28a   : > { %s7874_s7 = smov %s3714_s8  ;;  %s7875_s8 = smov %s3771_s15 }
 0x28b   : > { %s7876_s9 = smov %s3759_s12  ;;  %16 = sbr.rel (!%p14_p9) target bundleno = 5 (0x5), region = 69 }
 0x290   :  { %2992 = vsyncpa [#allocation3], 1 }
 0x291   :  { %2994 = vsyncpa [#allocation3 + $0x1], 1 }
 0x292   :  { %2995 = vsyncpa [#allocation4], 1 }
 0x293   :  { %2997 = vsyncpa [#allocation4 + $0x1], 1 }

</bundles_post_ra>
